<compile_context>
chip_gen: v6e
topology: v6e:2x2x1
jax: 0.10.0
libtpu: 0.0.40
codegen_flags: <defaults>
</compile_context>

<pallas_src>
import jax
import jax.numpy as jnp
from jax.experimental import pallas as pl
from jax.experimental.pallas import tpu as pltpu

ATTRIBUTES = 32     # stat_model.shape[1] (synthetic small choice)
HIDDEN = 1024
BATCH = 32          # whole batch handled in one kernel invocation
OUT_LANES = 128     # lane-dense output block; wrapper slices column 0


def mlp_kernel(a_ref, b3_ref, x_ref, w1_ref, b1_ref, w2q_ref, w2s_ref,
               b2_ref, w3_ref, o_ref):
    # PReLU with a single shared parameter (nn.PReLU() default, init 0.25).
    # Hoist the SMEM scalar once; max(h,0) + a*min(h,0) keeps it on the VPU.
    a = a_ref[0]

    def prelu(h):
        return jnp.maximum(h, 0.0) + a * jnp.minimum(h, 0.0)

    # Layer 1: (B, A) @ (A, H) on the MXU, bf16 inputs, f32 accumulation.
    x = x_ref[...].astype(jnp.bfloat16)
    h1 = jnp.dot(x, w1_ref[...], preferred_element_type=jnp.float32)
    h1 = prelu(h1 + b1_ref[...])

    # Layer 2: w2 is stored int8 in HBM (halves the dominant DMA).  int8
    # values are exactly representable in bf16, so cast and run the bf16 MXU
    # path; the per-column dequant scale is folded into the epilogue.
    w2 = w2q_ref[...].astype(jnp.bfloat16)                          # (H, H)
    h2 = jnp.dot(h1.astype(jnp.bfloat16), w2,
                 preferred_element_type=jnp.float32)
    h2 = prelu(h2 * w2s_ref[...] + b2_ref[...])

    # Layer 3: the (H, 1) weight is stored transposed as a (1, H) row; an N=1
    # MXU matmul would be lane-degenerate, so do a VPU multiply + lane reduce.
    w3 = w3_ref[...].astype(jnp.float32)                            # (1, H)
    h3 = jnp.sum(h2 * w3, axis=-1, keepdims=True) + b3_ref[0]       # (B, 1)
    h3 = prelu(h3)

    # Lane-dense output: replicate the (B, 1) column across 128 lanes so the
    # store is an unmasked vst; the wrapper slices column 0.
    o_ref[...] = jnp.broadcast_to(h3, o_ref.shape)


def train_model_forward(x, params):
    w1, b1, w2q, w2s, b2, w3_row, b3, a = params
    B = x.shape[0]

    smem = lambda: pl.BlockSpec(memory_space=pltpu.MemorySpace.SMEM)
    vmem = lambda: pl.BlockSpec(memory_space=pltpu.MemorySpace.VMEM)

    flops = 2 * B * (ATTRIBUTES * HIDDEN + HIDDEN * HIDDEN + HIDDEN)
    bytes_accessed = (
        w1.size * 2 + w3_row.size * 2          # bf16 weights
        + w2q.size * 1                         # int8 w2 (the dominant term)
        + (w2s.size + b1.size + b2.size) * 4   # f32 scales / biases
        + x.size * 4 + B * OUT_LANES * 4       # activations in / out
    )

    out = pl.pallas_call(
        mlp_kernel,
        out_shape=jax.ShapeDtypeStruct((B, OUT_LANES), jnp.float32),
        # No grid: the kernel runs once, every array is a single VMEM-resident
        # block (single-buffered), scalars live in SMEM.
        in_specs=[
            smem(),   # PReLU a
            smem(),   # b3
            vmem(),   # x
            vmem(),   # w1 (bf16)
            vmem(),   # b1
            vmem(),   # w2 (int8)
            vmem(),   # w2 per-column scale
            vmem(),   # b2
            vmem(),   # w3 row (bf16)
        ],
        out_specs=vmem(),
        cost_estimate=pl.CostEstimate(
            flops=flops, transcendentals=0, bytes_accessed=bytes_accessed),
    )(a, b3, x, w1, b1, w2q, w2s, b2, w3_row)

    # x.squeeze() in the PyTorch module: (B, 1) -> (B,)
    return out[:, 0]


def xavier_uniform(key, shape):
    # shape = (fan_in, fan_out) since weights are stored (in, out)
    fan_in, fan_out = shape
    bound = jnp.sqrt(6.0 / (fan_in + fan_out))
    return jax.random.uniform(key, shape, jnp.float32, -bound, bound)


def quantize_int8_per_col(w):
    # Symmetric per-output-column int8 quantization; scale applied in the
    # kernel epilogue (dot(h, q) * scale == dot(h, q * scale)).
    scale = jnp.max(jnp.abs(w), axis=0, keepdims=True) / 127.0     # (1, H)
    q = jnp.clip(jnp.round(w / scale), -127, 127).astype(jnp.int8)
    return q, scale.astype(jnp.float32)


def init_params(key):
    ks = jax.random.split(key, 7)
    w1 = xavier_uniform(ks[0], (ATTRIBUTES, HIDDEN)).astype(jnp.bfloat16)
    b1 = jax.random.uniform(ks[1], (1, HIDDEN), jnp.float32,
                            -1.0 / jnp.sqrt(ATTRIBUTES),
                            1.0 / jnp.sqrt(ATTRIBUTES))
    # w2 dominates HBM traffic -> int8 + per-column f32 scale.
    w2q, w2s = quantize_int8_per_col(xavier_uniform(ks[2], (HIDDEN, HIDDEN)))
    b2 = jax.random.uniform(ks[3], (1, HIDDEN), jnp.float32,
                            -1.0 / jnp.sqrt(HIDDEN), 1.0 / jnp.sqrt(HIDDEN))
    # Layer-3 weight kept transposed as a lane-friendly (1, HIDDEN) row.
    w3_row = xavier_uniform(ks[4], (HIDDEN, 1)).T.astype(jnp.bfloat16)
    b3 = jax.random.uniform(ks[5], (1,), jnp.float32,
                            -1.0 / jnp.sqrt(HIDDEN), 1.0 / jnp.sqrt(HIDDEN))
    a = jnp.array([0.25], dtype=jnp.float32)  # nn.PReLU() default init
    return (w1, b1, w2q, w2s, b2, w3_row, b3, a)


def reference_forward(x, params):
    # f32 reference using the same stored (bf16 / dequantized-int8) weights.
    w1, b1, w2q, w2s, b2, w3_row, b3, a = params
    prelu = lambda h: jnp.where(h >= 0, h, a[0] * h)
    w2 = w2q.astype(jnp.float32) * w2s
    h = prelu(x @ w1.astype(jnp.float32) + b1)
    h = prelu(h @ w2 + b2)
    h = prelu(h @ w3_row.astype(jnp.float32).T + b3)
    return h.squeeze(-1)


if __name__ == "__main__":
    key = jax.random.PRNGKey(0)
    k_x, k_p = jax.random.split(key)
    # x emulates the standardized feature matrix (zero mean / unit std per col)
    x = jax.random.normal(k_x, (BATCH, ATTRIBUTES), jnp.float32)
    params = init_params(k_p)

    y = train_model_forward(x, params)
    y = jax.block_until_ready(y)

    y_ref = reference_forward(x, params)
    assert y.shape == (BATCH,)
    # bf16 matmul inputs (f32 accumulation) vs f32 reference -> loosened tol.
    assert jnp.allclose(y, y_ref, atol=2e-2, rtol=2e-2), \
        float(jnp.max(jnp.abs(y - y_ref)))
    print("KERNEL_OK")
</pallas_src>

<mosaic_0001>
module attributes {stable_mosaic.version = 11 : i64} {
  func.func @mlp_kernel(%arg0: memref<1xf32, #tpu.memory_space<smem>>, %arg1: memref<1xf32, #tpu.memory_space<smem>>, %arg2: memref<32x32xf32, #tpu.memory_space<vmem>>, %arg3: memref<32x1024xbf16, #tpu.memory_space<vmem>>, %arg4: memref<1x1024xf32, #tpu.memory_space<vmem>>, %arg5: memref<1024x1024xi8, #tpu.memory_space<vmem>>, %arg6: memref<1x1024xf32, #tpu.memory_space<vmem>>, %arg7: memref<1x1024xf32, #tpu.memory_space<vmem>>, %arg8: memref<1x1024xbf16, #tpu.memory_space<vmem>>, %arg9: memref<32x128xf32, #tpu.memory_space<vmem>>) attributes {dimension_semantics = [], scalar_prefetch = 0 : i64, scratch_operands = 0 : i64, tpu.core_type = #tpu.core_type<tc>} {
    %c0 = arith.constant 0 : index
    %0 = memref.load %arg0[%c0] : memref<1xf32, #tpu.memory_space<smem>>
    %c0_0 = arith.constant 0 : index
    %c0_1 = arith.constant 0 : index
    %1 = vector.load %arg2[%c0_0, %c0_1] : memref<32x32xf32, #tpu.memory_space<vmem>>, vector<32x32xf32>
    %2 = arith.truncf %1 : vector<32x32xf32> to vector<32x32xbf16>
    %c0_2 = arith.constant 0 : index
    %c0_3 = arith.constant 0 : index
    %3 = vector.load %arg3[%c0_2, %c0_3] : memref<32x1024xbf16, #tpu.memory_space<vmem>>, vector<32x1024xbf16>
    %cst = arith.constant dense<0.000000e+00> : vector<32x1024xf32>
    %4 = tpu.matmul %2, %3, %cst {dimension_numbers = #tpu.dot_dimension_numbers<[1], [0], [0], [1], [0, 0, 1, 1], [], []>} : vector<32x32xbf16>, vector<32x1024xbf16>, vector<32x1024xf32> -> vector<32x1024xf32>
    %c0_4 = arith.constant 0 : index
    %c0_5 = arith.constant 0 : index
    %5 = vector.load %arg4[%c0_4, %c0_5] : memref<1x1024xf32, #tpu.memory_space<vmem>>, vector<1x1024xf32>
    %6 = vector.broadcast %5 : vector<1x1024xf32> to vector<32x1024xf32>
    %7 = arith.addf %4, %6 : vector<32x1024xf32>
    %cst_6 = arith.constant 0.000000e+00 : f32
    %8 = vector.broadcast %cst_6 : f32 to vector<32x1024xf32>
    %9 = arith.maximumf %7, %8 : vector<32x1024xf32>
    %cst_7 = arith.constant 0.000000e+00 : f32
    %10 = vector.broadcast %cst_7 : f32 to vector<32x1024xf32>
    %11 = arith.minimumf %7, %10 : vector<32x1024xf32>
    %12 = vector.broadcast %0 : f32 to vector<32x1024xf32>
    %13 = arith.mulf %12, %11 : vector<32x1024xf32>
    %14 = arith.addf %9, %13 : vector<32x1024xf32>
    %c0_8 = arith.constant 0 : index
    %c0_9 = arith.constant 0 : index
    %15 = vector.load %arg5[%c0_8, %c0_9] : memref<1024x1024xi8, #tpu.memory_space<vmem>>, vector<1024x1024xi8>
    %16 = arith.sitofp %15 : vector<1024x1024xi8> to vector<1024x1024xbf16>
    %17 = arith.truncf %14 : vector<32x1024xf32> to vector<32x1024xbf16>
    %cst_10 = arith.constant dense<0.000000e+00> : vector<32x1024xf32>
    %18 = tpu.matmul %17, %16, %cst_10 {dimension_numbers = #tpu.dot_dimension_numbers<[1], [0], [0], [1], [0, 0, 1, 1], [], []>} : vector<32x1024xbf16>, vector<1024x1024xbf16>, vector<32x1024xf32> -> vector<32x1024xf32>
    %c0_11 = arith.constant 0 : index
    %c0_12 = arith.constant 0 : index
    %19 = vector.load %arg6[%c0_11, %c0_12] : memref<1x1024xf32, #tpu.memory_space<vmem>>, vector<1x1024xf32>
    %20 = vector.broadcast %19 : vector<1x1024xf32> to vector<32x1024xf32>
    %21 = arith.mulf %18, %20 : vector<32x1024xf32>
    %c0_13 = arith.constant 0 : index
    %c0_14 = arith.constant 0 : index
    %22 = vector.load %arg7[%c0_13, %c0_14] : memref<1x1024xf32, #tpu.memory_space<vmem>>, vector<1x1024xf32>
    %23 = vector.broadcast %22 : vector<1x1024xf32> to vector<32x1024xf32>
    %24 = arith.addf %21, %23 : vector<32x1024xf32>
    %cst_15 = arith.constant 0.000000e+00 : f32
    %25 = vector.broadcast %cst_15 : f32 to vector<32x1024xf32>
    %26 = arith.maximumf %24, %25 : vector<32x1024xf32>
    %cst_16 = arith.constant 0.000000e+00 : f32
    %27 = vector.broadcast %cst_16 : f32 to vector<32x1024xf32>
    %28 = arith.minimumf %24, %27 : vector<32x1024xf32>
    %29 = vector.broadcast %0 : f32 to vector<32x1024xf32>
    %30 = arith.mulf %29, %28 : vector<32x1024xf32>
    %31 = arith.addf %26, %30 : vector<32x1024xf32>
    %c0_17 = arith.constant 0 : index
    %c0_18 = arith.constant 0 : index
    %32 = vector.load %arg8[%c0_17, %c0_18] : memref<1x1024xbf16, #tpu.memory_space<vmem>>, vector<1x1024xbf16>
    %33 = arith.extf %32 : vector<1x1024xbf16> to vector<1x1024xf32>
    %34 = vector.broadcast %33 : vector<1x1024xf32> to vector<32x1024xf32>
    %35 = arith.mulf %31, %34 : vector<32x1024xf32>
    %cst_19 = arith.constant dense<0.000000e+00> : vector<32xf32>
    %36 = vector.multi_reduction <add>, %35, %cst_19 [1] : vector<32x1024xf32> to vector<32xf32>
    %37 = vector.shape_cast %36 : vector<32xf32> to vector<32x1xf32>
    %c0_20 = arith.constant 0 : index
    %38 = memref.load %arg1[%c0_20] : memref<1xf32, #tpu.memory_space<smem>>
    %39 = vector.broadcast %38 : f32 to vector<32x1xf32>
    %40 = arith.addf %37, %39 : vector<32x1xf32>
    %cst_21 = arith.constant 0.000000e+00 : f32
    %41 = vector.broadcast %cst_21 : f32 to vector<32x1xf32>
    %42 = arith.maximumf %40, %41 : vector<32x1xf32>
    %cst_22 = arith.constant 0.000000e+00 : f32
    %43 = vector.broadcast %cst_22 : f32 to vector<32x1xf32>
    %44 = arith.minimumf %40, %43 : vector<32x1xf32>
    %45 = vector.broadcast %0 : f32 to vector<32x1xf32>
    %46 = arith.mulf %45, %44 : vector<32x1xf32>
    %47 = arith.addf %42, %46 : vector<32x1xf32>
    %48 = vector.shape_cast %47 : vector<32x1xf32> to vector<32x1xf32>
    %49 = vector.broadcast %48 : vector<32x1xf32> to vector<32x128xf32>
    %c0_23 = arith.constant 0 : index
    %c0_24 = arith.constant 0 : index
    %50 = vector.load %arg9[%c0_23, %c0_24] : memref<32x128xf32, #tpu.memory_space<vmem>>, vector<32x128xf32>
    tpu.vector_store %arg9[%c0_23, %c0_24], %49 {strides = array<i32>} : memref<32x128xf32, #tpu.memory_space<vmem>>, vector<32x128xf32>,
    return
  }
}

</mosaic_0001>

<bundles_post_ra>
// kernel: tpu_custom_call.1
= control target key start
LH: loop header
LB: loop body
LE: loop exit
PB: predicated region body
PF: predicated region fallthrough
CT: control target
= control target key end

     0   :  { %16 = vsyncpa [#allocation5], 0  ;;  %s3883_s0 = inlined_call_operand.<no memory space> [shape: f32[1], index: 0, kind: input, shape index: {}]   ;;  %s3884_s1 = inlined_call_operand.<no memory space> [shape: f32[1], index: 1, kind: input, shape index: {}]   ;;  %s3885_s2 = inlined_call_operand.hbm [shape: f32[32,32], index: 2, kind: input, shape index: {}]   ;;  %s3886_s3 = inlined_call_operand.hbm [shape: bf16[32,1024], index: 3, kind: input, shape index: {}]   ;;  %s3887_s4 = inlined_call_operand.hbm [shape: f32[1,1024], index: 4, kind: input, shape index: {}]   ;;  %s3888_s5 = inlined_call_operand.hbm [shape: s8[1024,1024], index: 5, kind: input, shape index: {}]   ;;  %s3889_s6 = inlined_call_operand.vmem [shape: f32[1,1024], index: 6, kind: input, shape index: {}]   ;;  %s3890_s7 = inlined_call_operand.hbm [shape: f32[1,1024], index: 7, kind: input, shape index: {}]   ;;  %s3891_s8 = inlined_call_operand.hbm [shape: bf16[1,1024], index: 8, kind: input, shape index: {}]   ;;  %s3892_s9 = inlined_call_operand.hbm [shape: f32[32,128], index: 9, kind: output, shape index: {}]  }
   0x1   :  { %17 = vsyncpa [#allocation8], 0 }
   0x2   :  { %18 = vsyncpa [#allocation11], 0 }
   0x3   :  { %19 = vsyncpa [#allocation14], 0 }
   0x4   :  { %20 = vsyncpa [#allocation6], 0  ;;  %s2895_s30 = smov [#allocation7]  }
   0x5   :  { %s42_s10 = sshll.u32 %s2895_s30, 4  ;;  %s43_s10 = int_to_ptr.vmem [resolvable:$true] %s42_s10 }
   0x6   :  { %s2753_s11 = scalar_lea.vmem %s43_s10, 2048  ;;  %p2758_p1 = scmp.lt.s32.totalorder %s43_s10, %s43_s10 }
   0x7   :  { %p2754_p0 = scmp.ne.s32.totalorder %s43_s10, %s2753_s11  ;;  %p2759_p2 = scmp.lt.s32.totalorder %s2753_s11, %s2753_s11 }
   0x9   :  { %p2760_p3 = por %p2759_p2, %p2758_p1 }
   0xb   :  { %p2761_p4 = pnand %p2760_p3, %p2754_p0 }
   0xd   :  { %2764 = shalt.err (!%p2761_p4)
}
   0xe   :  { %s2896_s12 = smov 512   ;;  %s2897_s13 = smov 32  }
   0xf   :  { %48 = dma.hbm_to_vmem [thread:$0]  %s3886_s3, 2048, %s43_s10, [#allocation8], %s2896_s12, %s2896_s12, %s2897_s13  }
  0x10   :  { %s2898_s16 = smov [#allocation10]  }
  0x11   :  { %s64_s17 = sshll.u32 %s2898_s16, 4  ;;  %s65_s17 = int_to_ptr.vmem [resolvable:$true] %s64_s17 }
  0x12   :  { %s2773_s18 = scalar_lea.vmem %s65_s17, 32768  ;;  %p2778_p6 = scmp.lt.s32.totalorder %s65_s17, %s65_s17 }
  0x13   :  { %p2774_p5 = scmp.ne.s32.totalorder %s65_s17, %s2773_s18  ;;  %p2779_p7 = scmp.lt.s32.totalorder %s2773_s18, %s2773_s18 }
  0x15   :  { %p2780_p8 = por %p2779_p7, %p2778_p6 }
  0x17   :  { %p2781_p9 = pnand %p2780_p8, %p2774_p5 }
  0x19   :  { %2784 = shalt.err (!%p2781_p9)
}
  0x1a   :  { %s2899_s19 = smov 1024   ;;  %s2900_s20 = smov 64  }
  0x1b   :  { %70 = dma.hbm_to_vmem [thread:$0]  %s3888_s5, 32768, %s65_s17, [#allocation11], %s2899_s19, %s2899_s19, %s2900_s20  }
  0x1c   :  { %s2901_s23 = smov [#allocation4]  }
  0x1d   :  { %s30_s24 = sshll.u32 %s2901_s23, 4  ;;  %s31_s24 = int_to_ptr.vmem [resolvable:$true] %s30_s24 }
  0x1e   :  { %s2793_s3 = scalar_lea.vmem %s31_s24, 512  ;;  %p2798_p11 = scmp.lt.s32.totalorder %s31_s24, %s31_s24 }
  0x1f   :  { %p2794_p10 = scmp.ne.s32.totalorder %s31_s24, %s2793_s3  ;;  %p2799_p12 = scmp.lt.s32.totalorder %s2793_s3, %s2793_s3 }
  0x21   :  { %p2800_p13 = por %p2799_p12, %p2798_p11 }
  0x23   :  { %p2801_p0 = pnand %p2800_p13, %p2794_p10 }
  0x25   :  { %2804 = shalt.err (!%p2801_p0)
}
  0x26   :  { %s2902_s25 = smov 128   ;;  %s2903_s26 = smov 8  }
  0x27   :  { %36 = dma.hbm_to_vmem [thread:$0]  %s3885_s2, 512, %s31_s24, [#allocation5], %s2902_s25, %s2902_s25, %s2903_s26  }
  0x28   :  { %s2904_s5 = smov [#allocation9]   ;;  %s2905_s30 = smov [#allocation12]  }
  0x29   :  { %s55_s29 = sshll.u32 %s2904_s5, 4  ;;  %s79_s10 = sshll.u32 %s2905_s30, 4  ;;  %s56_s29 = int_to_ptr.vmem [resolvable:$true] %s55_s29  ;;  %s80_s10 = int_to_ptr.vmem [resolvable:$true] %s79_s10 }
  0x2a   :  { %s2813_s11 = scalar_lea.vmem %s56_s29, 128  ;;  %p2818_p2 = scmp.lt.s32.totalorder %s56_s29, %s56_s29 }
  0x2b   :  { %p2814_p1 = scmp.ne.s32.totalorder %s56_s29, %s2813_s11  ;;  %p2819_p3 = scmp.lt.s32.totalorder %s2813_s11, %s2813_s11 }
  0x2d   :  { %p2820_p4 = por %p2819_p3, %p2818_p2 }
  0x2f   :  { %p2821_p5 = pnand %p2820_p4, %p2814_p1 }
  0x31   :  { %2824 = shalt.err (!%p2821_p5)
}
  0x32   :  { %58 = dma.hbm_to_vmem [thread:$0]  %s3887_s4, 128, %s56_s29, [#allocation8]  }
  0x33   :  { %s2833_s14 = scalar_lea.vmem %s80_s10, 128  ;;  %p2838_p7 = scmp.lt.s32.totalorder %s80_s10, %s80_s10 }
  0x34   :  { %p2834_p6 = scmp.ne.s32.totalorder %s80_s10, %s2833_s14  ;;  %p2839_p8 = scmp.lt.s32.totalorder %s2833_s14, %s2833_s14 }
  0x36   :  { %p2840_p9 = por %p2839_p8, %p2838_p7 }
  0x38   :  { %p2841_p10 = pnand %p2840_p9, %p2834_p6 }
  0x3a   :  { %2844 = shalt.err (!%p2841_p10)
}
  0x3b   :  { %82 = dma.hbm_to_vmem [thread:$0]  %s3890_s7, 128, %s80_s10, [#allocation11]  }
  0x3c   :  { %s2906_s16 = smov [#allocation13]  }
  0x3d   :  { %s89_s17 = sshll.u32 %s2906_s16, 4  ;;  %s90_s17 = int_to_ptr.vmem [resolvable:$true] %s89_s17 }
  0x3e   :  { %s2853_s18 = scalar_lea.vmem %s90_s17, 128  ;;  %p2858_p12 = scmp.lt.s32.totalorder %s90_s17, %s90_s17 }
  0x3f   :  { %p2854_p11 = scmp.ne.s32.totalorder %s90_s17, %s2853_s18  ;;  %p2859_p13 = scmp.lt.s32.totalorder %s2853_s18, %s2853_s18 }
  0x41   :  { %p2860_p0 = por %p2859_p13, %p2858_p12 }
  0x43   :  { %p2861_p1 = pnand %p2860_p0, %p2854_p11 }
  0x45   :  { %2864 = shalt.err (!%p2861_p1)
}
  0x46   :  { %92 = dma.hbm_to_vmem [thread:$0]  %s3891_s8, 128, %s90_s17, [#allocation14]  }
  0x47   :  { %2885 = dma.done.wait [#allocation5], 512  }
  0x48   :  { %2886 = vsyncadd [#allocation5], 4294966784 }
  0x49   :  { %2887 = dma.done.wait [#allocation8], 2176  }
  0x4a   :  { %2888 = vsyncadd [#allocation8], 4294965120 }
  0x4b   :  { %2889 = dma.done.wait [#allocation11], 32896  }
  0x4c   :  { %2890 = vsyncadd [#allocation11], 4294934400 }
  0x4d   :  { %2891 = dma.done.wait [#allocation14], 128  }
  0x4e   :  { %2892 = vsyncadd [#allocation14], 4294967168  ;;  %v2907_v0 = vmov 0   ;;  %v127_v1 = vld [vmem:[#allocation7 + $0x40] sm:$0xff]  ;;  %v128_v3 = vld [vmem:[#allocation7 + $0x48] sm:$0xff]  ;;  %vm257_vm0 = vcmask 261120  }
  0x4f   :  { %296 = vmatprep.mubr.bf16.mxu0 %v2907_v0  ;;  %349 = vmatprep.mubr.bf16.mxu1 %v2907_v0  ;;  %v131_v2 = vld [vmem:[#allocation7 + $0x60] sm:$0xff]  ;;  %v132_v5 = vld [vmem:[#allocation7 + $0x68] sm:$0xff]  ;;  %v129_v18 = vld [vmem:[#allocation7 + $0x50] sm:$0xff] }
  0x50   :  { %v2713_v4 = vcombine.high %v127_v1, %v131_v2  ;;  %v2712_v6 = vcombine.low %v127_v1, %v131_v2  ;;  %v119_v7 = vld [vmem:[#allocation7] sm:$0xff]  ;;  %v2715_v9 = vcombine.high %v128_v3, %v132_v5  ;;  %v2714_v10 = vcombine.low %v128_v3, %v132_v5  ;;  %v120_v12 = vld [vmem:[#allocation7 + $0x8] sm:$0xff]  ;;  %v133_v19 = vld [vmem:[#allocation7 + $0x70] sm:$0xff] }
  0x51   :  { %v123_v8 = vld [vmem:[#allocation7 + $0x20] sm:$0xff]  ;;  %v124_v13 = vld [vmem:[#allocation7 + $0x28] sm:$0xff]  ;;  %v130_v20 = vld [vmem:[#allocation7 + $0x58] sm:$0xff]  ;;  %v2717_v22 = vcombine.high %v129_v18, %v133_v19  ;;  %v2716_v30 = vcombine.low %v129_v18, %v133_v19 }
  0x52   :  { %v2705_v11 = vcombine.high %v119_v7, %v123_v8  ;;  %276 = vmatprep.subr.bf16.mxu0 %v2713_v4  ;;  %v2707_v14 = vcombine.high %v120_v12, %v124_v13  ;;  %v113_v15 = vld [vmem:[#allocation4] sm:$0xff]  ;;  %v114_v16 = vld [vmem:[#allocation4 + $0x8] sm:$0xff]  ;;  %329 = vmatprep.subr.bf16.mxu1 %v2715_v9  ;;  %v2704_v17 = vcombine.low %v119_v7, %v123_v8  ;;  %v134_v23 = vld [vmem:[#allocation7 + $0x78] sm:$0xff] }
  0x53   :  { %277 = vmatpush1.bf16.msra.mxu0 %v2712_v6  ;;  %330 = vmatpush1.bf16.msra.mxu1 %v2714_v10  ;;  %v2706_v21 = vcombine.low %v120_v12, %v124_v13  ;;  %v2719_v24 = vcombine.high %v130_v20, %v134_v23  ;;  %v117_v25 = vpack.c.bf16 %v114_v16, %v113_v15  ;;  %v121_v26 = vld [vmem:[#allocation7 + $0x10] sm:$0xff]  ;;  %v122_v28 = vld [vmem:[#allocation7 + $0x18] sm:$0xff]  ;;  %v629_v43 = vld [vmem:[#allocation10 + $0xc0] sm:$0xff] }
  0x54   :  { %278 = vmatprep.subr.bf16.mxu0 %v2705_v11  ;;  %331 = vmatprep.subr.bf16.mxu1 %v2707_v14  ;;  %v125_v27 = vld [vmem:[#allocation7 + $0x30] sm:$0xff]  ;;  %v126_v29 = vld [vmem:[#allocation7 + $0x38] sm:$0xff]  ;;  %v2718_v31 = vcombine.low %v130_v20, %v134_v23  ;;  %v693_v44 = vld [vmem:[#allocation10 + $0x2c0] sm:$0xff]  ;;  %v917_v45 = vunpack.c.h.s8.bf16 %v629_v43  ;;  %v909_v51 = vunpack.c.l.s8.bf16 %v629_v43 }
  0x55   :  { %v2709_v32 = vcombine.high %v121_v26, %v125_v27  ;;  %v2711_v33 = vcombine.high %v122_v28, %v126_v29  ;;  %v630_v34 = vld [vmem:[#allocation10 + $0xc8] sm:$0xff]  ;;  %v116_v36 = vld [vmem:[#allocation4 + $0x18] sm:$0xff]  ;;  %v2708_v38 = vcombine.low %v121_v26, %v125_v27  ;;  %v2710_v39 = vcombine.low %v122_v28, %v126_v29  ;;  %v621_v54 = vld [vmem:[#allocation10 + $0x80] sm:$0xff] }
  0x56   :  { %v115_v35 = vld [vmem:[#allocation4 + $0x10] sm:$0xff]  ;;  %v918_v40 = vunpack.c.h.s8.bf16 %v630_v34  ;;  %v1045_v46 = vunpack.c.h.s8.bf16 %v693_v44  ;;  %v910_v47 = vunpack.c.l.s8.bf16 %v630_v34  ;;  %v1037_v52 = vunpack.c.l.s8.bf16 %v693_v44  ;;  %v685_v56 = vld [vmem:[#allocation10 + $0x280] sm:$0xff] }
  0x57   :  { %279 = vmatpush1.bf16.msra.mxu0 %v2704_v17  ;;  %332 = vmatpush1.bf16.msra.mxu1 %v2706_v21  ;;  %v694_v37 = vld [vmem:[#allocation10 + $0x2c8] sm:$0xff]  ;;  %v118_v41 = vpack.c.bf16 %v116_v36, %v115_v35  ;;  %v901_v57 = vunpack.c.h.s8.bf16 %v621_v54  ;;  %v1029_v58 = vunpack.c.h.s8.bf16 %v685_v56  ;;  %v893_v63 = vunpack.c.l.s8.bf16 %v621_v54  ;;  %v613_v2 = vld [vmem:[#allocation10 + $0x40] sm:$0xff] }
  0x58   :  { %382 = vmatprep.subr.bf16.mxu0 %v2717_v22  ;;  %435 = vmatprep.subr.bf16.mxu1 %v2719_v24  ;;  %v1046_v42 = vunpack.c.h.s8.bf16 %v694_v37  ;;  %v1038_v48 = vunpack.c.l.s8.bf16 %v694_v37  ;;  %v622_v49 = vld [vmem:[#allocation10 + $0x88] sm:$0xff]  ;;  %v677_v4 = vld [vmem:[#allocation10 + $0x240] sm:$0xff]  ;;  %v885_v5 = vunpack.c.h.s8.bf16 %v613_v2  ;;  %v877_v11 = vunpack.c.l.s8.bf16 %v613_v2 }
  0x59   :  { %v686_v50 = vld [vmem:[#allocation10 + $0x288] sm:$0xff]  ;;  %v902_v53 = vunpack.c.h.s8.bf16 %v622_v49  ;;  %v894_v59 = vunpack.c.l.s8.bf16 %v622_v49  ;;  %v1013_v6 = vunpack.c.h.s8.bf16 %v677_v4  ;;  %v1005_v12 = vunpack.c.l.s8.bf16 %v677_v4  ;;  %v605_v14 = vld [vmem:[#allocation10] sm:$0xff] }
  0x5a   :  { %2720 = vmatmul.mubr.msk.bf16.vlgmr.msra.gmra.mxu0 %vm257_vm0, %v117_v25  ;;  %2722 = vmatmul.mubr.msk.bf16.vlgmr.msra.gmra.mxu1 %vm257_vm0, %v117_v25  ;;  %v1030_v55 = vunpack.c.h.s8.bf16 %v686_v50  ;;  %v1022_v60 = vunpack.c.l.s8.bf16 %v686_v50  ;;  %v614_v61 = vld [vmem:[#allocation10 + $0x48] sm:$0xff]  ;;  %v669_v16 = vld [vmem:[#allocation10 + $0x200] sm:$0xff]  ;;  %v869_v17 = vunpack.c.h.s8.bf16 %v605_v14  ;;  %v861_v23 = vunpack.c.l.s8.bf16 %v605_v14  ;;  %v3007_v14 = vld [vmem:[#allocation9] sm:$0xff] }
  0x5b   :  { %306 = vmatprep.mubr.bf16.mxu0 %v2907_v0  ;;  %359 = vmatprep.mubr.bf16.mxu1 %v2907_v0  ;;  %v678_v62 = vld [vmem:[#allocation10 + $0x248] sm:$0xff]  ;;  %v886_v1 = vunpack.c.h.s8.bf16 %v614_v61  ;;  %v878_v7 = vunpack.c.l.s8.bf16 %v614_v61  ;;  %v997_v18 = vunpack.c.h.s8.bf16 %v669_v16  ;;  %v989_v24 = vunpack.c.l.s8.bf16 %v669_v16  ;;  %v661_v26 = vld [vmem:[#allocation10 + $0x1c0] sm:$0xff] }
  0x5c   :  { %383 = vmatpush1.bf16.msra.mxu0 %v2716_v30  ;;  %436 = vmatpush1.bf16.msra.mxu1 %v2718_v31  ;;  %v1014_v3 = vunpack.c.h.s8.bf16 %v678_v62  ;;  %v1006_v8 = vunpack.c.l.s8.bf16 %v678_v62  ;;  %v606_v9 = vld [vmem:[#allocation10 + $0x8] sm:$0xff]  ;;  %v725_v28 = vld [vmem:[#allocation10 + $0x3c0] sm:$0xff]  ;;  %v981_v29 = vunpack.c.h.s8.bf16 %v661_v26  ;;  %v973_v35 = vunpack.c.l.s8.bf16 %v661_v26 }
  0x5d   :  { %384 = vmatprep.subr.bf16.mxu0 %v2709_v32  ;;  %437 = vmatprep.subr.bf16.mxu1 %v2711_v33  ;;  %v670_v10 = vld [vmem:[#allocation10 + $0x208] sm:$0xff]  ;;  %v870_v13 = vunpack.c.h.s8.bf16 %v606_v9  ;;  %v862_v19 = vunpack.c.l.s8.bf16 %v606_v9  ;;  %v1109_v30 = vunpack.c.h.s8.bf16 %v725_v28  ;;  %v1101_v36 = vunpack.c.l.s8.bf16 %v725_v28 }
  0x5e   :  { %v998_v15 = vunpack.c.h.s8.bf16 %v670_v10  ;;  %v990_v20 = vunpack.c.l.s8.bf16 %v670_v10  ;;  %v662_v21 = vld [vmem:[#allocation10 + $0x1c8] sm:$0xff]  ;;  %v3042_v26 = vstv %s3883_s0 }
  0x5f   :  { %v726_v22 = vld [vmem:[#allocation10 + $0x3c8] sm:$0xff]  ;;  %v974_v31 = vunpack.c.l.s8.bf16 %v662_v21 }
  0x60   :  { %385 = vmatpush1.bf16.msra.mxu0 %v2708_v38  ;;  %438 = vmatpush1.bf16.msra.mxu1 %v2710_v39  ;;  %v1110_v27 = vunpack.c.h.s8.bf16 %v726_v22  ;;  %v1102_v32 = vunpack.c.l.s8.bf16 %v726_v22  ;;  %v654_v33 = vld [vmem:[#allocation10 + $0x188] sm:$0xff]  ;;  %v653_v38 = vld [vmem:[#allocation10 + $0x180] sm:$0xff] }
  0x61   :  { %1389 = vmatprep.subr.bf16.mxu0 %v918_v40  ;;  %1442 = vmatprep.subr.bf16.mxu1 %v1046_v42  ;;  %v718_v34 = vld [vmem:[#allocation10 + $0x388] sm:$0xff]  ;;  %v966_v37 = vunpack.c.h.s8.bf16 %v654_v33  ;;  %v717_v40 = vld [vmem:[#allocation10 + $0x380] sm:$0xff]  ;;  %v958_v43 = vunpack.c.l.s8.bf16 %v654_v33 }
  0x62   :  { %2721 = vmatmul.mubr.msk.bf16.gmra.mxu0 %vm257_vm0, %v118_v41  ;;  %2723 = vmatmul.mubr.msk.bf16.gmra.mxu1 %vm257_vm0, %v118_v41  ;;  %v1094_v39 = vunpack.c.h.s8.bf16 %v718_v34  ;;  %v1093_v42 = vunpack.c.h.s8.bf16 %v717_v40  ;;  %v1086_v44 = vunpack.c.l.s8.bf16 %v718_v34 }
  0x63   :  { %402 = vmatprep.mubr.bf16.mxu0 %v2907_v0  ;;  %455 = vmatprep.mubr.bf16.mxu1 %v2907_v0 }
  0x6a   :  { %2724 = vmatmul.mubr.msk.bf16.vlgmr.msra.gmra.mxu0 %vm257_vm0, %v117_v25  ;;  %2726 = vmatmul.mubr.msk.bf16.vlgmr.msra.gmra.mxu1 %vm257_vm0, %v117_v25  ;;  %v982_v25 = vunpack.c.h.s8.bf16 %v662_v21  ;;  %v3030_v21 = vld [vmem:[#allocation10 + $0x4c0] sm:$0xff] }
  0x6b   :  { %412 = vmatprep.mubr.bf16.mxu0 %v2907_v0  ;;  %465 = vmatprep.mubr.bf16.mxu1 %v2907_v0  ;;  %v1021_v0 = vunpack.c.l.s8.bf16 %v685_v56 }
  0x6c   :  { %1390 = vmatpush1.bf16.msra.mxu0 %v917_v45  ;;  %1443 = vmatpush1.bf16.msra.mxu1 %v1045_v46  ;;  %v957_v45 = vunpack.c.l.s8.bf16 %v653_v38  ;;  %v1085_v46 = vunpack.c.l.s8.bf16 %v717_v40 }
  0x6d   :  { %1391 = vmatprep.subr.bf16.mxu0 %v910_v47  ;;  %1444 = vmatprep.subr.bf16.mxu1 %v1038_v48  ;;  %v646_v47 = vld [vmem:[#allocation10 + $0x148] sm:$0xff] }
  0x6e   :  { %v710_v48 = vld [vmem:[#allocation10 + $0x348] sm:$0xff]  ;;  %v950_v49 = vunpack.c.h.s8.bf16 %v646_v47 }
  0x6f   :  { %v1078_v50 = vunpack.c.h.s8.bf16 %v710_v48  ;;  %v1070_v56 = vunpack.c.l.s8.bf16 %v710_v48 }
  0x70   :  { %1392 = vmatpush1.bf16.msra.mxu0 %v909_v51  ;;  %1445 = vmatpush1.bf16.msra.mxu1 %v1037_v52  ;;  %v645_v51 = vld [vmem:[#allocation10 + $0x140] sm:$0xff] }
  0x71   :  { %1393 = vmatprep.subr.bf16.mxu0 %v902_v53  ;;  %1446 = vmatprep.subr.bf16.mxu1 %v1030_v55  ;;  %v709_v52 = vld [vmem:[#allocation10 + $0x340] sm:$0xff]  ;;  %v949_v53 = vunpack.c.h.s8.bf16 %v645_v51  ;;  %v942_v55 = vunpack.c.l.s8.bf16 %v646_v47 }
  0x72   :  { %2725 = vmatmul.mubr.msk.bf16.gmra.mxu0 %vm257_vm0, %v118_v41  ;;  %2727 = vmatmul.mubr.msk.bf16.gmra.mxu1 %vm257_vm0, %v118_v41  ;;  %v965_v41 = vunpack.c.h.s8.bf16 %v653_v38  ;;  %v1077_v54 = vunpack.c.h.s8.bf16 %v709_v52 }
  0x74   :  { %1394 = vmatpush1.bf16.msra.mxu0 %v901_v57  ;;  %1447 = vmatpush1.bf16.msra.mxu1 %v1029_v58  ;;  %v941_v57 = vunpack.c.l.s8.bf16 %v645_v51  ;;  %v1069_v58 = vunpack.c.l.s8.bf16 %v709_v52 }
  0x75   :  { %1395 = vmatprep.subr.bf16.mxu0 %v894_v59  ;;  %1448 = vmatprep.subr.bf16.mxu1 %v1022_v60  ;;  %v638_v59 = vld [vmem:[#allocation10 + $0x108] sm:$0xff] }
  0x76   :  { %v702_v60 = vld [vmem:[#allocation10 + $0x308] sm:$0xff]  ;;  %v934_v61 = vunpack.c.h.s8.bf16 %v638_v59 }
  0x77   :  { %v1062_v62 = vunpack.c.h.s8.bf16 %v702_v60  ;;  %v1054_v4 = vunpack.c.l.s8.bf16 %v702_v60 }
  0x78   :  { %1396 = vmatpush1.bf16.msra.mxu0 %v893_v63  ;;  %1449 = vmatpush1.bf16.msra.mxu1 %v1021_v0  ;;  %v637_v63 = vld [vmem:[#allocation10 + $0x100] sm:$0xff] }
  0x79   :  { %1397 = vmatprep.subr.bf16.mxu0 %v886_v1  ;;  %1450 = vmatprep.subr.bf16.mxu1 %v1014_v3  ;;  %v701_v0 = vld [vmem:[#allocation10 + $0x300] sm:$0xff]  ;;  %v933_v1 = vunpack.c.h.s8.bf16 %v637_v63  ;;  %v926_v3 = vunpack.c.l.s8.bf16 %v638_v59 }
  0x7a   :  { %v1061_v2 = vunpack.c.h.s8.bf16 %v701_v0 }
  0x7c   :  { %1398 = vmatpush1.bf16.msra.mxu0 %v885_v5  ;;  %1451 = vmatpush1.bf16.msra.mxu1 %v1013_v6  ;;  %v925_v5 = vunpack.c.l.s8.bf16 %v637_v63  ;;  %v1053_v6 = vunpack.c.l.s8.bf16 %v701_v0 }
  0x7d   :  { %1399 = vmatprep.subr.bf16.mxu0 %v878_v7  ;;  %1452 = vmatprep.subr.bf16.mxu1 %v1006_v8  ;;  %v2996_v7 = vld [vmem:[#allocation10 + $0x4c8] sm:$0xff] }
  0x7e   :  { %v2998_v8 = vld [vmem:[#allocation10 + $0x6c8] sm:$0xff]  ;;  %v1174_v9 = vunpack.c.h.s8.bf16 %v2996_v7  ;;  %v1166_v38 = vunpack.c.l.s8.bf16 %v2996_v7 }
  0x7f   :  { %v1302_v10 = vunpack.c.h.s8.bf16 %v2998_v8 }
  0x80   :  { %1400 = vmatpush1.bf16.msra.mxu0 %v877_v11  ;;  %1453 = vmatpush1.bf16.msra.mxu1 %v1005_v12  ;;  %v137_v11 = vlaneseq }
  0x81   :  { %1401 = vmatprep.subr.bf16.mxu0 %v870_v13  ;;  %1454 = vmatprep.subr.bf16.mxu1 %v998_v15 }
  0x82   :  { %v3002_v12 = vshrl.u32 %v137_v11, 7 }
  0x84   :  { %1402 = vmatpush1.bf16.msra.mxu0 %v869_v17  ;;  %1455 = vmatpush1.bf16.msra.mxu1 %v997_v18  ;;  %v3005_v13 = vsub.s32 0, %v3002_v12  ;;  %v3010_v15 = vsub.s32 2, %v3002_v12  ;;  %v3013_v16 = vsub.s32 1, %v3002_v12  ;;  %v3016_v17 = vsub.s32 3, %v3002_v12 }
  0x85   :  { %1403 = vmatprep.subr.bf16.mxu0 %v862_v19  ;;  %1456 = vmatprep.subr.bf16.mxu1 %v990_v20  ;;  %v3052_v33 = vsub.s32 7, %v3002_v12 }
  0x86   :  { %3904 = vst [vmem:[#allocation21_spill] sm:$0xff] %v3016_v17  ;;  %v3020_v18 = vrot.slane %v3007_v14, %v3005_v13  ;;  %v3024_v19 = vrot.slane %v3007_v14, %v3010_v15  ;;  %v3028_v20 = vrot.slane %v3007_v14, %v3013_v16 }
  0x87   :  { %3906 = vst [vmem:[#allocation23_spill] sm:$0xff] %v3052_v33 }
  0x88   :  { %1404 = vmatpush1.bf16.msra.mxu0 %v861_v23  ;;  %1457 = vmatpush1.bf16.msra.mxu1 %v989_v24  ;;  %v3034_v23 = vrot.slane %v3007_v14, %v3016_v17  ;;  %v3036_v24 = vld [vmem:[#allocation10 + $0x6c0] sm:$0xff] }
  0x89   :  { %1405 = vmatprep.subr.bf16.mxu0 %v982_v25  ;;  %1458 = vmatprep.subr.bf16.mxu1 %v1110_v27  ;;  %v1293_v48 = vunpack.c.l.s8.bf16 %v3036_v24 }
  0x8c   :  { %1406 = vmatpush2.bf16.msra.mxu0 %v981_v29  ;;  %1459 = vmatpush2.bf16.msra.mxu1 %v1109_v30  ;;  %v1173_v30 = vunpack.c.h.s8.bf16 %v3030_v21 }
  0x8d   :  { %1407 = vmatprep.subr.bf16.mxu0 %v974_v31  ;;  %1460 = vmatprep.subr.bf16.mxu1 %v1102_v32  ;;  %v3046_v31 = vld [vmem:[#allocation10 + $0x488] sm:$0xff]  ;;  %v3049_v32 = vsub.s32 5, %v3002_v12 }
  0x8f   :  { %3905 = vst [vmem:[#allocation22_spill] sm:$0xff] %v3049_v32 }
  0x90   :  { %1408 = vmatpush2.bf16.msra.mxu0 %v973_v35  ;;  %1461 = vmatpush2.bf16.msra.mxu1 %v1101_v36 }
  0x91   :  { %1409 = vmatprep.subr.bf16.mxu0 %v966_v37  ;;  %1462 = vmatprep.subr.bf16.mxu1 %v1094_v39  ;;  %v1301_v37 = vunpack.c.h.s8.bf16 %v3036_v24  ;;  %v3057_v39 = vld [vmem:[#allocation10 + $0x688] sm:$0xff] }
  0x92   :  { %v1286_v52 = vunpack.c.h.s8.bf16 %v3057_v39 }
  0x94   :  { %1410 = vmatpush2.bf16.msra.mxu0 %v965_v41  ;;  %1463 = vmatpush2.bf16.msra.mxu1 %v1093_v42 }
  0x95   :  { %1411 = vmatprep.subr.bf16.mxu0 %v958_v43  ;;  %1464 = vmatprep.subr.bf16.mxu1 %v1086_v44  ;;  %v1294_v43 = vunpack.c.l.s8.bf16 %v2998_v8  ;;  %v1165_v44 = vunpack.c.l.s8.bf16 %v3030_v21  ;;  %v1278_v21 = vunpack.c.l.s8.bf16 %v3057_v39 }
  0x98   :  { %1412 = vmatpush2.bf16.msra.mxu0 %v957_v45  ;;  %1465 = vmatpush2.bf16.msra.mxu1 %v1085_v46 }
  0x99   :  { %1413 = vmatprep.subr.bf16.mxu0 %v950_v49  ;;  %1466 = vmatprep.subr.bf16.mxu1 %v1078_v50  ;;  %v1158_v49 = vunpack.c.h.s8.bf16 %v3046_v31 }
  0x9c   :  { %1414 = vmatpush2.bf16.msra.mxu0 %v949_v53  ;;  %1467 = vmatpush2.bf16.msra.mxu1 %v1077_v54  ;;  %v3069_v53 = vrot.slane %v3007_v14, %v3049_v32  ;;  %v3073_v54 = vrot.slane %v3007_v14, %v3052_v33 }
  0x9d   :  { %1415 = vmatprep.subr.bf16.mxu0 %v942_v55  ;;  %1468 = vmatprep.subr.bf16.mxu1 %v1070_v56 }
  0xa0   :  { %1416 = vmatpush2.bf16.msra.mxu0 %v941_v57  ;;  %1469 = vmatpush2.bf16.msra.mxu1 %v1069_v58 }
  0xa1   :  { %1417 = vmatprep.subr.bf16.mxu0 %v934_v61  ;;  %1470 = vmatprep.subr.bf16.mxu1 %v1062_v62 }
  0xa4   :  { %1418 = vmatpush2.bf16.msra.mxu0 %v933_v1  ;;  %1471 = vmatpush2.bf16.msra.mxu1 %v1061_v2 }
  0xa5   :  { %1419 = vmatprep.subr.bf16.mxu0 %v926_v3  ;;  %1472 = vmatprep.subr.bf16.mxu1 %v1054_v4 }
  0xa8   :  { %1420 = vmatpush2.bf16.msra.mxu0 %v925_v5  ;;  %1473 = vmatpush2.bf16.msra.mxu1 %v1053_v6 }
  0xa9   :  { %1495 = vmatprep.subr.bf16.mxu0 %v1174_v9  ;;  %1548 = vmatprep.subr.bf16.mxu1 %v1302_v10 }
 0x11a   :  { %v298_v22 = vpop.f32.mrf.mxu0  ;;  %v351_v27 = vpop.f32.mrf.mxu1 }
 0x11b   :  { %v299_v25 = vadd.f32 %v298_v22, %v3020_v18  ;;  %v352_v28 = vadd.f32 %v351_v27, %v3024_v19 }
 0x11c   :  { %v300_v29 = vpop.f32.mrf.mxu0  ;;  %v353_v36 = vpop.f32.mrf.mxu1 }
 0x11d   :  { %v508_v34 = vmin.f32 %v299_v25, 0.0  ;;  %v301_v35 = vadd.f32 %v300_v29, %v3028_v20  ;;  %v510_v40 = vmin.f32 %v352_v28, 0.0  ;;  %v354_v41 = vadd.f32 %v353_v36, %v3034_v23 }
 0x11e   :  { %v302_v42 = vpop.f32.mrf.mxu0  ;;  %v355_v47 = vpop.f32.mrf.mxu1  ;;  %v476_v55 = vmax.f32 %v299_v25, 0.0  ;;  %v478_v60 = vmax.f32 %v352_v28, 0.0 }
 0x11f   :  { %v509_v45 = vmin.f32 %v301_v35, 0.0  ;;  %v303_v46 = vadd.f32 %v302_v42, %v3020_v18  ;;  %v356_v50 = vadd.f32 %v355_v47, %v3024_v19  ;;  %v541_v56 = vmul.f32 %v3042_v26, %v508_v34 }
 0x120   :  { %v304_v51 = vpop.f32.mrf.mxu0  ;;  %v511_v57 = vmin.f32 %v354_v41, 0.0  ;;  %v357_v59 = vpop.f32.mrf.mxu1  ;;  %v543_v61 = vmul.f32 %v3042_v26, %v510_v40  ;;  %v477_v1 = vmax.f32 %v301_v35, 0.0  ;;  %v479_v6 = vmax.f32 %v354_v41, 0.0 }
 0x121   :  { %v516_v58 = vmin.f32 %v303_v46, 0.0  ;;  %v542_v62 = vmul.f32 %v3042_v26, %v509_v45  ;;  %v518_v63 = vmin.f32 %v356_v50, 0.0  ;;  %v305_v3 = vadd.f32 %v304_v51, %v3028_v20 }
 0x122   :  { %v308_v0 = vpop.f32.mrf.mxu0  ;;  %v358_v4 = vadd.f32 %v357_v59, %v3034_v23  ;;  %v361_v5 = vpop.f32.mrf.mxu1  ;;  %v484_v9 = vmax.f32 %v303_v46, 0.0  ;;  %v573_v25 = vadd.f32 %v541_v56, %v476_v55  ;;  %v544_v27 = vmul.f32 %v3042_v26, %v511_v57 }
 0x123   :  { %v549_v2 = vmul.f32 %v3042_v26, %v516_v58  ;;  %v551_v10 = vmul.f32 %v3042_v26, %v518_v63  ;;  %v3083_v11 = vadd.f32 %v308_v0, %v3020_v18  ;;  %v486_v28 = vmax.f32 %v356_v50, 0.0 }
 0x124   :  { %v310_v22 = vpop.f32.mrf.mxu0  ;;  %v517_v29 = vmin.f32 %v305_v3, 0.0  ;;  %v363_v34 = vpop.f32.mrf.mxu1  ;;  %v575_v35 = vadd.f32 %v543_v61, %v478_v60  ;;  %v574_v36 = vadd.f32 %v542_v62, %v477_v1  ;;  %v519_v42 = vmin.f32 %v358_v4, 0.0 }
 0x125   :  { %v581_v40 = vadd.f32 %v549_v2, %v484_v9  ;;  %v583_v47 = vadd.f32 %v551_v10, %v486_v28  ;;  %v485_v41 = vmax.f32 %v305_v3, 0.0  ;;  %v3088_v51 = vadd.f32 %v361_v5, %v3024_v19 }
 0x126   :  { %v312_v45 = vpop.f32.mrf.mxu0  ;;  %v550_v46 = vmul.f32 %v3042_v26, %v517_v29  ;;  %v365_v58 = vpop.f32.mrf.mxu1  ;;  %v487_v59 = vmax.f32 %v358_v4, 0.0  ;;  %v552_v55 = vmul.f32 %v3042_v26, %v519_v42  ;;  %v524_v50 = vmin.f32 %v3083_v11, 0.0 }
 0x127   :  { %v311_v56 = vadd.f32 %v310_v22, %v3028_v20  ;;  %v576_v60 = vadd.f32 %v544_v27, %v479_v6  ;;  %v364_v62 = vadd.f32 %v363_v34, %v3034_v23  ;;  %v313_v63 = vadd.f32 %v312_v45, %v3020_v18 }
 0x128   :  { %v314_v57 = vpop.f32.mrf.mxu0  ;;  %v582_v61 = vadd.f32 %v550_v46, %v485_v41  ;;  %v367_v0 = vpop.f32.mrf.mxu1  ;;  %v3095_v1 = vpack.c.bf16 %v581_v40, %v573_v25  ;;  %v584_v2 = vadd.f32 %v552_v55, %v487_v59  ;;  %v492_v3 = vmax.f32 %v3083_v11, 0.0  ;;  %v749_v59 = vld [vmem:[#allocation10 + $0x480] sm:$0xff] }
 0x129   :  { %v525_v4 = vmin.f32 %v311_v56, 0.0  ;;  %v3100_v9 = vpack.c.bf16 %v583_v47, %v575_v35  ;;  %v526_v6 = vmin.f32 %v3088_v51, 0.0  ;;  %v527_v22 = vmin.f32 %v364_v62, 0.0 }
 0x12a   :  { %v3098_v5 = vpop.f32.mrf.mxu0  ;;  %v3102_v10 = vpack.c.bf16 %v582_v61, %v574_v36  ;;  %v3105_v27 = vpop.f32.mrf.mxu1  ;;  %v3107_v28 = vpack.c.bf16 %v584_v2, %v576_v60  ;;  %v557_v18 = vmul.f32 %v3042_v26, %v524_v50  ;;  %v493_v25 = vmax.f32 %v311_v56, 0.0 }
 0x12b   :  { %v532_v29 = vmin.f32 %v313_v63, 0.0  ;;  %v558_v11 = vmul.f32 %v3042_v26, %v525_v4  ;;  %v366_v35 = vadd.f32 %v365_v58, %v3024_v19  ;;  %v315_v36 = vadd.f32 %v314_v57, %v3028_v20 }
 0x12c   :  { %v406_v34 = vpop.f32.mrf.mxu0  ;;  %1421 = vmatprep.mubr.bf16.mxu0 %v3102_v10  ;;  %v368_v40 = vadd.f32 %v367_v0, %v3034_v23  ;;  %1474 = vmatprep.mubr.bf16.mxu1 %v3107_v28  ;;  %v495_v42 = vmax.f32 %v364_v62, 0.0  ;;  %v560_v45 = vmul.f32 %v3042_v26, %v527_v22  ;;  %v500_v47 = vmax.f32 %v313_v63, 0.0  ;;  %v459_v46 = vpop.f32.mrf.mxu1 }
 0x12d   :  { %1422 = vmatmul.mubr.bf16.vlgmr.msra.gmra.mxu0 %v3095_v1  ;;  %v565_v41 = vmul.f32 %v3042_v26, %v532_v29  ;;  %1475 = vmatmul.mubr.bf16.vlgmr.msra.gmra.mxu1 %v3100_v9  ;;  %v494_v19 = vmax.f32 %v3088_v51, 0.0  ;;  %v559_v20 = vmul.f32 %v3042_v26, %v526_v6  ;;  %v502_v23 = vmax.f32 %v366_v35, 0.0 }
 0x12e   :  { %1496 = vmatpush1.bf16.msra.mxu0 %v1173_v30  ;;  %v534_v58 = vmin.f32 %v366_v35, 0.0  ;;  %1549 = vmatpush1.bf16.msra.mxu1 %v1301_v37  ;;  %v501_v55 = vmax.f32 %v315_v36, 0.0  ;;  %v533_v50 = vmin.f32 %v315_v36, 0.0  ;;  %v503_v56 = vmax.f32 %v368_v40, 0.0  ;;  %v3128_v60 = vpop.f32.mrf.mxu0  ;;  %v813_v30 = vld [vmem:[#allocation10 + $0x680] sm:$0xff]  ;;  %v3136_v2 = vpop.f32.mrf.mxu1 }
 0x12f   :  { %1497 = vmatprep.subr.bf16.mxu0 %v1166_v38  ;;  %v535_v57 = vmin.f32 %v368_v40, 0.0  ;;  %1550 = vmatprep.subr.bf16.mxu1 %v1294_v43  ;;  %v589_v51 = vadd.f32 %v557_v18, %v492_v3  ;;  %v590_v61 = vadd.f32 %v558_v11, %v493_v25  ;;  %v407_v37 = vadd.f32 %v406_v34, %v3069_v53  ;;  %v742_v34 = vld [vmem:[#allocation10 + $0x448] sm:$0xff]  ;;  %v741_v36 = vld [vmem:[#allocation10 + $0x440] sm:$0xff] }
 0x130   :  { %v567_v62 = vmul.f32 %v3042_v26, %v534_v58  ;;  %v592_v63 = vadd.f32 %v560_v45, %v495_v42  ;;  %v597_v7 = vadd.f32 %v565_v41, %v500_v47  ;;  %v566_v38 = vmul.f32 %v3042_v26, %v533_v50  ;;  %v410_v29 = vpop.f32.mrf.mxu0  ;;  %v806_v11 = vld [vmem:[#allocation10 + $0x648] sm:$0xff] }
 0x131   :  { %v568_v0 = vmul.f32 %v3042_v26, %v535_v57  ;;  %v1157_v8 = vunpack.c.h.s8.bf16 %v749_v59  ;;  %v591_v43 = vadd.f32 %v559_v20, %v494_v19  ;;  %v513_v3 = vmin.f32 %v407_v37, 0.0  ;;  %v805_v20 = vld [vmem:[#allocation10 + $0x640] sm:$0xff] }
 0x132   :  { %1498 = vmatpush1.bf16.msra.mxu0 %v1165_v44  ;;  %v599_v4 = vadd.f32 %v567_v62, %v502_v23  ;;  %1551 = vmatpush1.bf16.msra.mxu1 %v1293_v48  ;;  %v1285_v6 = vunpack.c.h.s8.bf16 %v813_v30  ;;  %v1150_v22 = vunpack.c.l.s8.bf16 %v3046_v31  ;;  %v598_v18 = vadd.f32 %v566_v38, %v501_v55  ;;  %v463_v31 = vpop.f32.mrf.mxu1 }
 0x133   :  { %1499 = vmatprep.subr.bf16.mxu0 %v1158_v49  ;;  %v600_v25 = vadd.f32 %v568_v0, %v503_v56  ;;  %1552 = vmatprep.subr.bf16.mxu1 %v1286_v52  ;;  %v1149_v44 = vunpack.c.l.s8.bf16 %v749_v59  ;;  %v3148_v35 = vpack.c.bf16 %v597_v7, %v589_v51  ;;  %v460_v49 = vadd.f32 %v459_v46, %v3073_v54 }
 0x134   :  { %v3150_v24 = vpack.c.bf16 %v598_v18, %v590_v61  ;;  %v3155_v40 = vpack.c.bf16 %v599_v4, %v591_v43  ;;  %v481_v42 = vmax.f32 %v407_v37, 0.0  ;;  %v546_v52 = vmul.f32 %v3042_v26, %v513_v3  ;;  %v733_v18 = vld [vmem:[#allocation10 + $0x400] sm:$0xff] }
 0x135   :  { %v3152_v48 = vpack.c.bf16 %v600_v25, %v592_v63  ;;  %v411_v39 = vadd.f32 %v410_v29, %v3069_v53  ;;  %v1277_v45 = vunpack.c.l.s8.bf16 %v813_v30  ;;  %v1142_v47 = vunpack.c.h.s8.bf16 %v742_v34  ;;  %v734_v63 = vld [vmem:[#allocation10 + $0x408] sm:$0xff]  ;;  %v797_v29 = vld [vmem:[#allocation10 + $0x600] sm:$0xff] }
 0x136   :  { %1500 = vmatpush1.bf16.msra.mxu0 %v1157_v8  ;;  %3907 = vst [vmem:[#allocation24_spill] sm:$0xff] %v3155_v40  ;;  %1553 = vmatpush1.bf16.msra.mxu1 %v1285_v6  ;;  %v1270_v41 = vunpack.c.h.s8.bf16 %v806_v11  ;;  %v515_v19 = vmin.f32 %v460_v49, 0.0  ;;  %v483_v46 = vmax.f32 %v460_v49, 0.0  ;;  %v464_v59 = vadd.f32 %v463_v31, %v3073_v54  ;;  %v798_v8 = vld [vmem:[#allocation10 + $0x608] sm:$0xff] }
 0x137   :  { %1501 = vmatprep.subr.bf16.mxu0 %v1150_v22  ;;  %1554 = vmatprep.subr.bf16.mxu1 %v1278_v21  ;;  %v489_v23 = vmax.f32 %v411_v39, 0.0  ;;  %v521_v58 = vmin.f32 %v411_v39, 0.0  ;;  %v1141_v55 = vunpack.c.h.s8.bf16 %v741_v36  ;;  %v578_v56 = vadd.f32 %v546_v52, %v481_v42  ;;  %v790_v31 = vld [vmem:[#allocation10 + $0x5c8] sm:$0xff] }
 0x138   :  { %1431 = vmatprep.mubr.bf16.mxu0 %v3150_v24  ;;  %1484 = vmatprep.mubr.bf16.mxu1 %v3152_v48  ;;  %v548_v50 = vmul.f32 %v3042_v26, %v515_v19  ;;  %v491_v30 = vmax.f32 %v464_v59, 0.0  ;;  %v523_v51 = vmin.f32 %v464_v59, 0.0  ;;  %v1269_v61 = vunpack.c.h.s8.bf16 %v805_v20  ;;  %v846_v59 = vld [vmem:[#allocation10 + $0x788] sm:$0xff] }
 0x139   :  { %1432 = vmatmul.mubr.bf16.gmra.mxu0 %v3148_v35  ;;  %1485 = vmatmul.mubr.bf16.gmra.mxu1 %v3155_v40  ;;  %v554_v57 = vmul.f32 %v3042_v26, %v521_v58  ;;  %v1134_v62 = vunpack.c.l.s8.bf16 %v742_v34  ;;  %v1262_v37 = vunpack.c.l.s8.bf16 %v806_v11  ;;  %v1133_v43 = vunpack.c.l.s8.bf16 %v741_v36  ;;  %v854_v36 = vld [vmem:[#allocation10 + $0x7c8] sm:$0xff] }
 0x13a   :  { %1502 = vmatpush1.bf16.msra.mxu0 %v1149_v44  ;;  %1555 = vmatpush1.bf16.msra.mxu1 %v1277_v45  ;;  %v580_v7 = vadd.f32 %v548_v50, %v483_v46  ;;  %v556_v0 = vmul.f32 %v3042_v26, %v523_v51  ;;  %v1261_v6 = vunpack.c.l.s8.bf16 %v805_v20  ;;  %v1126_v22 = vunpack.c.h.s8.bf16 %v734_v63  ;;  %v789_v45 = vld [vmem:[#allocation10 + $0x5c0] sm:$0xff]  ;;  %v782_v58 = vld [vmem:[#allocation10 + $0x588] sm:$0xff] }
 0x13b   :  { %1503 = vmatprep.subr.bf16.mxu0 %v1142_v47  ;;  %1556 = vmatprep.subr.bf16.mxu1 %v1270_v41  ;;  %v586_v38 = vadd.f32 %v554_v57, %v489_v23  ;;  %v1254_v25 = vunpack.c.h.s8.bf16 %v798_v8  ;;  %v1125_v44 = vunpack.c.h.s8.bf16 %v733_v18  ;;  %v1253_v34 = vunpack.c.h.s8.bf16 %v797_v29  ;;  %v853_v41 = vld [vmem:[#allocation10 + $0x7c0] sm:$0xff] }
 0x13c   :  { %v588_v3 = vadd.f32 %v556_v0, %v491_v30  ;;  %v1118_v11 = vunpack.c.l.s8.bf16 %v734_v63  ;;  %v1246_v49 = vunpack.c.l.s8.bf16 %v798_v8  ;;  %v1117_v42 = vunpack.c.l.s8.bf16 %v733_v18  ;;  %v781_v51 = vld [vmem:[#allocation10 + $0x580] sm:$0xff] }
 0x13d   :  { %v3167_v4 = vpack.c.bf16 %v586_v38, %v578_v56  ;;  %v1245_v52 = vunpack.c.l.s8.bf16 %v797_v29  ;;  %v1238_v39 = vunpack.c.h.s8.bf16 %v790_v31  ;;  %v1366_v47 = vunpack.c.h.s8.bf16 %v854_v36  ;;  %v3175_v56 = vpop.f32.mrf.mxu1 }
 0x13e   :  { %1504 = vmatpush1.bf16.msra.mxu0 %v1141_v55  ;;  %1557 = vmatpush1.bf16.msra.mxu1 %v1269_v61  ;;  %v3169_v21 = vpack.c.bf16 %v588_v3, %v580_v7  ;;  %v1237_v19 = vunpack.c.h.s8.bf16 %v789_v45  ;;  %v1365_v20 = vunpack.c.h.s8.bf16 %v853_v41  ;;  %v1230_v46 = vunpack.c.l.s8.bf16 %v790_v31  ;;  %v3173_v55 = vpop.f32.mrf.mxu0 }
 0x13f   :  { %3908 = vst [vmem:[#allocation25_spill] sm:$0xff] %v3167_v4  ;;  %1505 = vmatprep.subr.bf16.mxu0 %v1134_v62  ;;  %1558 = vmatprep.subr.bf16.mxu1 %v1262_v37  ;;  %v1358_v23 = vunpack.c.l.s8.bf16 %v854_v36  ;;  %v1229_v50 = vunpack.c.l.s8.bf16 %v789_v45  ;;  %v1357_v57 = vunpack.c.l.s8.bf16 %v853_v41  ;;  %v1222_v30 = vunpack.c.h.s8.bf16 %v782_v58  ;;  %v845_v37 = vld [vmem:[#allocation10 + $0x780] sm:$0xff]  ;;  %v469_v0 = vpop.f32.mrf.mxu1 }
 0x140   :  { %3909 = vst [vmem:[#allocation26_spill] sm:$0xff] %v3169_v21  ;;  %1527 = vmatprep.mubr.bf16.mxu0 %v3167_v4  ;;  %1580 = vmatprep.mubr.bf16.mxu1 %v3169_v21  ;;  %v3178_v61 = vsub.s32 4, %v3002_v12  ;;  %v1350_v62 = vunpack.c.h.s8.bf16 %v846_v59  ;;  %v3181_v63 = vsub.s32 6, %v3002_v12  ;;  %v416_v7 = vpop.f32.mrf.mxu0  ;;  %v1221_v38 = vunpack.c.h.s8.bf16 %v781_v51  ;;  %v838_v12 = vld [vmem:[#allocation10 + $0x748] sm:$0xff] }
 0x141   :  { %v1349_v8 = vunpack.c.h.s8.bf16 %v845_v37  ;;  %v1213_v29 = vunpack.c.l.s8.bf16 %v781_v51 }
 0x142   :  { %1506 = vmatpush1.bf16.msra.mxu0 %v1133_v43  ;;  %1559 = vmatpush1.bf16.msra.mxu1 %v1261_v6  ;;  %3910 = vst [vmem:[#allocation27_spill] sm:$0xff] %v3181_v63  ;;  %v1214_v43 = vunpack.c.l.s8.bf16 %v782_v58  ;;  %v3185_v3 = vrot.slane %v3007_v14, %v3178_v61  ;;  %v1342_v6 = vunpack.c.l.s8.bf16 %v846_v59  ;;  %v3189_v18 = vrot.slane %v3007_v14, %v3181_v63 }
 0x143   :  { %1507 = vmatprep.subr.bf16.mxu0 %v1126_v22  ;;  %1560 = vmatprep.subr.bf16.mxu1 %v1254_v25  ;;  %v774_v22 = vld [vmem:[#allocation10 + $0x548] sm:$0xff]  ;;  %v418_v25 = vpop.f32.mrf.mxu0  ;;  %v1334_v14 = vunpack.c.h.s8.bf16 %v838_v12 }
 0x144   :  { %v1206_v31 = vunpack.c.h.s8.bf16 %v774_v22  ;;  %v3199_v36 = vadd.f32 %v3098_v5, %v3185_v3  ;;  %v3209_v45 = vadd.f32 %v3105_v27, %v3189_v18 }
 0x145   :  { %v420_v5 = vpop.f32.mrf.mxu0 }
 0x146   :  { %1508 = vmatpush1.bf16.msra.mxu0 %v1125_v44  ;;  %1561 = vmatpush1.bf16.msra.mxu1 %v1253_v34  ;;  %v3191_v44 = vld [vmem:[#allocation10 + $0x540] sm:$0xff]  ;;  %v512_v51 = vmin.f32 %v3199_v36, 0.0 }
 0x147   :  { %1509 = vmatprep.subr.bf16.mxu0 %v1118_v11  ;;  %1562 = vmatprep.subr.bf16.mxu1 %v1246_v49  ;;  %v3193_v34 = vld [vmem:[#allocation10 + $0x740] sm:$0xff]  ;;  %v3195_v11 = vpop.f32.mrf.mxu1  ;;  %v1341_v49 = vunpack.c.l.s8.bf16 %v845_v37  ;;  %v1197_v58 = vunpack.c.l.s8.bf16 %v3191_v44 }
 0x148   :  { %v1333_v41 = vunpack.c.h.s8.bf16 %v3193_v34  ;;  %v1325_v59 = vunpack.c.l.s8.bf16 %v3193_v34 }
 0x149   :  { %v473_v27 = vpop.f32.mrf.mxu1 }
 0x14a   :  { %1510 = vmatpush1.bf16.msra.mxu0 %v1117_v42  ;;  %1563 = vmatpush1.bf16.msra.mxu1 %v1245_v52  ;;  %v3201_v42 = vld [vmem:[#allocation10 + $0x508] sm:$0xff] }
 0x14b   :  { %1511 = vmatprep.subr.bf16.mxu0 %v1238_v39  ;;  %1564 = vmatprep.subr.bf16.mxu1 %v1366_v47  ;;  %v3203_v52 = vld [vmem:[#allocation10 + $0x708] sm:$0xff]  ;;  %v3205_v39 = vld [vmem:[#allocation10 + $0x500] sm:$0xff]  ;;  %v1205_v47 = vunpack.c.h.s8.bf16 %v3191_v44  ;;  %v480_v44 = vmax.f32 %v3199_v36, 0.0 }
 0x14e   :  { %1512 = vmatpush2.bf16.msra.mxu0 %v1237_v19  ;;  %1565 = vmatpush2.bf16.msra.mxu1 %v1365_v20  ;;  %v1198_v19 = vunpack.c.l.s8.bf16 %v774_v22  ;;  %v3213_v20 = vld [vmem:[#allocation10 + $0x700] sm:$0xff]  ;;  %v1182_v22 = vunpack.c.l.s8.bf16 %v3201_v42 }
 0x14f   :  { %1513 = vmatprep.subr.bf16.mxu0 %v1230_v46  ;;  %1566 = vmatprep.subr.bf16.mxu1 %v1358_v23  ;;  %v3217_v46 = vadd.f32 %v3128_v60, %v3185_v3  ;;  %v1326_v23 = vunpack.c.l.s8.bf16 %v838_v12  ;;  %v1189_v60 = vunpack.c.h.s8.bf16 %v3205_v39  ;;  %v1317_v37 = vunpack.c.h.s8.bf16 %v3213_v20 }
 0x150   :  { %v1310_v12 = vunpack.c.l.s8.bf16 %v3203_v52 }
 0x152   :  { %1514 = vmatpush2.bf16.msra.mxu0 %v1229_v50  ;;  %1567 = vmatpush2.bf16.msra.mxu1 %v1357_v57  ;;  %v3223_v50 = vadd.f32 %v3136_v2, %v3189_v18  ;;  %v1190_v57 = vunpack.c.h.s8.bf16 %v3201_v42  ;;  %v3236_v2 = vld [vmem:[#allocation10 + $0xd8] sm:$0xff] }
 0x153   :  { %1515 = vmatprep.subr.bf16.mxu0 %v1222_v30  ;;  %1568 = vmatprep.subr.bf16.mxu1 %v1350_v62  ;;  %v1318_v30 = vunpack.c.h.s8.bf16 %v3203_v52  ;;  %v3230_v62 = vadd.f32 %v416_v7, %v3069_v53  ;;  %v520_v7 = vmin.f32 %v3217_v46, 0.0 }
 0x154   :  { %v522_v34 = vmin.f32 %v3223_v50, 0.0 }
 0x156   :  { %1516 = vmatpush2.bf16.msra.mxu0 %v1221_v38  ;;  %1569 = vmatpush2.bf16.msra.mxu1 %v1349_v8  ;;  %v3234_v38 = vadd.f32 %v420_v5, %v3069_v53  ;;  %v514_v8 = vmin.f32 %v3209_v45, 0.0  ;;  %v472_v5 = vadd.f32 %v3195_v11, %v3189_v18 }
 0x157   :  { %1517 = vmatprep.subr.bf16.mxu0 %v1214_v43  ;;  %1570 = vmatprep.subr.bf16.mxu1 %v1342_v6  ;;  %v3240_v43 = vadd.f32 %v469_v0, %v3073_v54  ;;  %v3243_v6 = vadd.f32 %v473_v27, %v3073_v54  ;;  %v3254_v54 = vadd.f32 %v3173_v55, %v3185_v3  ;;  %v920_v0 = vunpack.c.h.s8.bf16 %v3236_v2 }
 0x158   :  { %v537_v42 = vmin.f32 %v3234_v38, 0.0  ;;  %v547_v36 = vmul.f32 %v3042_v26, %v514_v8  ;;  %v555_v27 = vmul.f32 %v3042_v26, %v522_v34 }
 0x159   :  { %v531_v52 = vmin.f32 %v3240_v43, 0.0  ;;  %v539_v55 = vmin.f32 %v3243_v6, 0.0  ;;  %v507_v8 = vmax.f32 %v3243_v6, 0.0 }
 0x15a   :  { %1518 = vmatpush2.bf16.msra.mxu0 %v1213_v29  ;;  %1571 = vmatpush2.bf16.msra.mxu1 %v1341_v49  ;;  %v545_v49 = vmul.f32 %v3042_v26, %v512_v51  ;;  %v3275_v51 = vld [vmem:[#allocation10 + $0xd0] sm:$0xff]  ;;  %v570_v11 = vmul.f32 %v3042_v26, %v537_v42 }
 0x15b   :  { %1519 = vmatprep.subr.bf16.mxu0 %v1206_v31  ;;  %1572 = vmatprep.subr.bf16.mxu1 %v1334_v14  ;;  %v482_v31 = vmax.f32 %v3209_v45, 0.0  ;;  %v529_v14 = vmin.f32 %v3230_v62, 0.0  ;;  %v468_v45 = vadd.f32 %v3175_v56, %v3189_v18  ;;  %v499_v56 = vmax.f32 %v3240_v43, 0.0 }
 0x15c   :  { %v505_v18 = vmax.f32 %v3234_v38, 0.0  ;;  %v577_v29 = vadd.f32 %v545_v49, %v480_v44  ;;  %v496_v38 = vmax.f32 %v3254_v54, 0.0  ;;  %v506_v49 = vmax.f32 %v472_v5, 0.0 }
 0x15d   :  { %v579_v43 = vadd.f32 %v547_v36, %v482_v31  ;;  %v498_v63 = vmax.f32 %v468_v45, 0.0  ;;  %v3912_v31 = vunpack.c.l.s8.bf16 %v3213_v20  ;;  %v912_v36 = vunpack.c.l.s8.bf16 %v3236_v2 }
 0x15e   :  { %1520 = vmatpush2.bf16.msra.mxu0 %v1205_v47  ;;  %1573 = vmatpush2.bf16.msra.mxu1 %v1333_v41  ;;  %v419_v47 = vadd.f32 %v418_v25, %v3185_v3  ;;  %v488_v41 = vmax.f32 %v3217_v46, 0.0  ;;  %v528_v3 = vmin.f32 %v3254_v54, 0.0  ;;  %v497_v25 = vmax.f32 %v3230_v62, 0.0  ;;  %v696_v46 = vld [vmem:[#allocation10 + $0x2d8] sm:$0xff] }
 0x15f   :  { %1521 = vmatprep.subr.bf16.mxu0 %v1198_v19  ;;  %1574 = vmatprep.subr.bf16.mxu1 %v1326_v23  ;;  %v553_v19 = vmul.f32 %v3042_v26, %v520_v7  ;;  %v490_v23 = vmax.f32 %v3223_v50, 0.0  ;;  %v564_v50 = vmul.f32 %v3042_v26, %v531_v52  ;;  %v572_v62 = vmul.f32 %v3042_v26, %v539_v55  ;;  %v695_v55 = vld [vmem:[#allocation10 + $0x2d0] sm:$0xff] }
 0x160   :  { %v538_v7 = vmin.f32 %v472_v5, 0.0  ;;  %v1048_v34 = vunpack.c.h.s8.bf16 %v696_v46  ;;  %v561_v52 = vmul.f32 %v3042_v26, %v528_v3  ;;  %v602_v6 = vadd.f32 %v570_v11, %v505_v18  ;;  %v623_v3 = vld [vmem:[#allocation10 + $0x90] sm:$0xff]  ;;  %v680_v18 = vld [vmem:[#allocation10 + $0x258] sm:$0xff] }
 0x161   :  { %v587_v42 = vadd.f32 %v555_v27, %v490_v23  ;;  %v596_v33 = vadd.f32 %v564_v50, %v499_v56  ;;  %v604_v17 = vadd.f32 %v572_v62, %v507_v8  ;;  %v911_v2 = vunpack.c.l.s8.bf16 %v3275_v51  ;;  %v615_v8 = vld [vmem:[#allocation10 + $0x50] sm:$0xff] }
 0x162   :  { %1522 = vmatpush2.bf16.msra.mxu0 %v1197_v58  ;;  %1575 = vmatpush2.bf16.msra.mxu1 %v1325_v59  ;;  %v562_v58 = vmul.f32 %v3042_v26, %v529_v14  ;;  %v536_v59 = vmin.f32 %v419_v47, 0.0  ;;  %v919_v14 = vunpack.c.h.s8.bf16 %v3275_v51  ;;  %v571_v54 = vmul.f32 %v3042_v26, %v538_v7 }
 0x163   :  { %1523 = vmatprep.subr.bf16.mxu0 %v1190_v57  ;;  %1576 = vmatprep.subr.bf16.mxu1 %v1318_v30  ;;  %v530_v57 = vmin.f32 %v468_v45, 0.0  ;;  %v585_v30 = vadd.f32 %v553_v19, %v488_v41  ;;  %v1040_v19 = vunpack.c.l.s8.bf16 %v696_v46  ;;  %v624_v45 = vld [vmem:[#allocation10 + $0x98] sm:$0xff]  ;;  %v593_v5 = vadd.f32 %v561_v52, %v496_v38 }
 0x164   :  { %v594_v53 = vadd.f32 %v562_v58, %v497_v25  ;;  %v569_v32 = vmul.f32 %v3042_v26, %v536_v59  ;;  %v603_v27 = vadd.f32 %v571_v54, %v506_v49  ;;  %v903_v25 = vunpack.c.h.s8.bf16 %v623_v3  ;;  %v616_v58 = vld [vmem:[#allocation10 + $0x58] sm:$0xff] }
 0x165   :  { %v563_v44 = vmul.f32 %v3042_v26, %v530_v57  ;;  %v896_v51 = vunpack.c.l.s8.bf16 %v624_v45  ;;  %v895_v11 = vunpack.c.l.s8.bf16 %v623_v3  ;;  %v888_v59 = vunpack.c.h.s8.bf16 %v616_v58  ;;  %v679_v57 = vld [vmem:[#allocation10 + $0x250] sm:$0xff]  ;;  %v672_v38 = vld [vmem:[#allocation10 + $0x218] sm:$0xff] }
 0x166   :  { %1524 = vmatpush2.bf16.msra.mxu0 %v1189_v60  ;;  %1577 = vmatpush2.bf16.msra.mxu1 %v1317_v37  ;;  %v504_v60 = vmax.f32 %v419_v47, 0.0  ;;  %v3911_v37 = vunpack.c.l.s8.bf16 %v3205_v39  ;;  %v3297_v47 = vpack.c.bf16 %v587_v42, %v579_v43  ;;  %v3299_v41 = vpack.c.bf16 %v602_v6, %v594_v53  ;;  %v656_v3 = vld [vmem:[#allocation10 + $0x198] sm:$0xff] }
 0x167   :  { %1525 = vmatprep.subr.bf16.mxu0 %v1182_v22  ;;  %1578 = vmatprep.subr.bf16.mxu1 %v1310_v12  ;;  %v3292_v22 = vpack.c.bf16 %v585_v30, %v577_v29  ;;  %v1047_v12 = vunpack.c.h.s8.bf16 %v695_v55  ;;  %v3301_v39 = vpack.c.bf16 %v604_v17, %v596_v33  ;;  %v688_v29 = vld [vmem:[#allocation10 + $0x298] sm:$0xff]  ;;  %v595_v20 = vadd.f32 %v563_v44, %v498_v63  ;;  %v671_v44 = vld [vmem:[#allocation10 + $0x210] sm:$0xff] }
 0x168   :  { %v601_v23 = vadd.f32 %v569_v32, %v504_v60  ;;  %v1039_v53 = vunpack.c.l.s8.bf16 %v695_v55  ;;  %v1032_v17 = vunpack.c.h.s8.bf16 %v688_v29  ;;  %v687_v32 = vld [vmem:[#allocation10 + $0x290] sm:$0xff]  ;;  %v1024_v56 = vunpack.c.l.s8.bf16 %v688_v29  ;;  %v608_v30 = vld [vmem:[#allocation10 + $0x18] sm:$0xff] }
 0x169   :  { %v3310_v63 = vpack.c.bf16 %v603_v27, %v595_v20  ;;  %v1031_v46 = vunpack.c.h.s8.bf16 %v687_v32  ;;  %v1023_v50 = vunpack.c.l.s8.bf16 %v687_v32  ;;  %v1016_v62 = vunpack.c.h.s8.bf16 %v680_v18  ;;  %v607_v55 = vld [vmem:[#allocation10 + $0x10] sm:$0xff] }
 0x16a   :  { %1526 = vmatpush2.bf16.msra.mxu0 %v3911_v37  ;;  %1579 = vmatpush2.bf16.msra.mxu1 %v3912_v31  ;;  %v3307_v33 = vpack.c.bf16 %v601_v23, %v593_v5  ;;  %v887_v7 = vunpack.c.h.s8.bf16 %v615_v8  ;;  %v1008_v43 = vunpack.c.l.s8.bf16 %v680_v18  ;;  %v879_v42 = vunpack.c.l.s8.bf16 %v615_v8  ;;  %v663_v23 = vld [vmem:[#allocation10 + $0x1d0] sm:$0xff]  ;;  %v648_v8 = vld [vmem:[#allocation10 + $0x158] sm:$0xff] }
 0x16b   :  { %1601 = vmatprep.subr.bf16.mxu0 %v920_v0  ;;  %1654 = vmatprep.subr.bf16.mxu1 %v1048_v34  ;;  %v904_v0 = vunpack.c.h.s8.bf16 %v624_v45  ;;  %v1015_v34 = vunpack.c.h.s8.bf16 %v679_v57  ;;  %v1007_v52 = vunpack.c.l.s8.bf16 %v679_v57  ;;  %v872_v6 = vunpack.c.h.s8.bf16 %v608_v30  ;;  %v727_v20 = vld [vmem:[#allocation10 + $0x3d0] sm:$0xff] }
 0x16c   :  { %v1000_v60 = vunpack.c.h.s8.bf16 %v672_v38  ;;  %v871_v49 = vunpack.c.h.s8.bf16 %v607_v55  ;;  %v999_v54 = vunpack.c.h.s8.bf16 %v671_v44  ;;  %v864_v37 = vunpack.c.l.s8.bf16 %v608_v30  ;;  %v711_v30 = vld [vmem:[#allocation10 + $0x350] sm:$0xff] }
 0x16d   :  { %1528 = vmatmul.mubr.bf16.vlgmr.msra.gmra.mxu0 %v3292_v22  ;;  %1581 = vmatmul.mubr.bf16.vlgmr.msra.gmra.mxu1 %v3297_v47  ;;  %v992_v31 = vunpack.c.l.s8.bf16 %v672_v38  ;;  %v991_v45 = vunpack.c.l.s8.bf16 %v671_v44  ;;  %v983_v27 = vunpack.c.h.s8.bf16 %v663_v23  ;;  %v975_v32 = vunpack.c.l.s8.bf16 %v663_v23  ;;  %v760_v23 = vld [vmem:[#allocation10 + $0x4d8] sm:$0xff] }
 0x16e   :  { %1602 = vmatpush1.bf16.msra.mxu0 %v919_v14  ;;  %1655 = vmatpush1.bf16.msra.mxu1 %v1047_v12  ;;  %v880_v14 = vunpack.c.l.s8.bf16 %v616_v58  ;;  %v664_v12 = vld [vmem:[#allocation10 + $0x1d8] sm:$0xff] }
 0x16f   :  { %1603 = vmatprep.subr.bf16.mxu0 %v912_v36  ;;  %1656 = vmatprep.subr.bf16.mxu1 %v1040_v19  ;;  %v728_v36 = vld [vmem:[#allocation10 + $0x3d8] sm:$0xff]  ;;  %v863_v19 = vunpack.c.l.s8.bf16 %v607_v55  ;;  %v984_v5 = vunpack.c.h.s8.bf16 %v664_v12 }
 0x170   :  { %1537 = vmatprep.mubr.bf16.mxu0 %v3299_v41  ;;  %1590 = vmatprep.mubr.bf16.mxu1 %v3301_v39  ;;  %v1112_v29 = vunpack.c.h.s8.bf16 %v728_v36  ;;  %v640_v55 = vld [vmem:[#allocation10 + $0x118] sm:$0xff] }
 0x172   :  { %1604 = vmatpush1.bf16.msra.mxu0 %v911_v2  ;;  %1657 = vmatpush1.bf16.msra.mxu1 %v1039_v53  ;;  %v1111_v2 = vunpack.c.h.s8.bf16 %v727_v20  ;;  %v976_v53 = vunpack.c.l.s8.bf16 %v664_v12  ;;  %v703_v12 = vld [vmem:[#allocation10 + $0x310] sm:$0xff] }
 0x173   :  { %1605 = vmatprep.subr.bf16.mxu0 %v904_v0  ;;  %1658 = vmatprep.subr.bf16.mxu1 %v1032_v17  ;;  %v1104_v0 = vunpack.c.l.s8.bf16 %v728_v36  ;;  %v720_v17 = vld [vmem:[#allocation10 + $0x398] sm:$0xff] }
 0x174   :  { %v1096_v58 = vunpack.c.h.s8.bf16 %v720_v17 }
 0x175   :  { %1538 = vmatmul.mubr.bf16.gmra.mxu0 %v3307_v33  ;;  %1591 = vmatmul.mubr.bf16.gmra.mxu1 %v3310_v63 }
 0x176   :  { %1606 = vmatpush1.bf16.msra.mxu0 %v903_v25  ;;  %1633 = vmatprep.mubr.bf16.mxu0 %v3102_v10  ;;  %v1103_v25 = vunpack.c.l.s8.bf16 %v727_v20 }
 0x177   :  { %1659 = vmatpush1.bf16.msra.mxu1 %v1031_v46  ;;  %1686 = vmatprep.mubr.bf16.mxu1 %v3107_v28  ;;  %v968_v46 = vunpack.c.h.s8.bf16 %v656_v3 }
 0x178   :  { %1607 = vmatprep.subr.bf16.mxu0 %v896_v51  ;;  %1660 = vmatprep.subr.bf16.mxu1 %v1024_v56  ;;  %v655_v51 = vld [vmem:[#allocation10 + $0x190] sm:$0xff] }
 0x179   :  { %v719_v56 = vld [vmem:[#allocation10 + $0x390] sm:$0xff]  ;;  %v967_v18 = vunpack.c.h.s8.bf16 %v655_v51  ;;  %v959_v57 = vunpack.c.l.s8.bf16 %v655_v51  ;;  %v752_v51 = vld [vmem:[#allocation10 + $0x498] sm:$0xff] }
 0x17a   :  { %1608 = vmatpush1.bf16.msra.mxu0 %v895_v11  ;;  %v1095_v11 = vunpack.c.h.s8.bf16 %v719_v56 }
 0x17b   :  { %1661 = vmatpush1.bf16.msra.mxu1 %v1023_v50  ;;  %1609 = vmatprep.subr.bf16.mxu0 %v888_v59  ;;  %v960_v50 = vunpack.c.l.s8.bf16 %v656_v3  ;;  %v1088_v59 = vunpack.c.l.s8.bf16 %v720_v17  ;;  %v823_v3 = vld [vmem:[#allocation10 + $0x6d0] sm:$0xff] }
 0x17c   :  { %1662 = vmatprep.subr.bf16.mxu1 %v1016_v62  ;;  %v712_v62 = vld [vmem:[#allocation10 + $0x358] sm:$0xff] }
 0x17e   :  { %1610 = vmatpush1.bf16.msra.mxu0 %v887_v7  ;;  %v1087_v7 = vunpack.c.l.s8.bf16 %v719_v56 }
 0x17f   :  { %1663 = vmatpush1.bf16.msra.mxu1 %v1015_v34  ;;  %1611 = vmatprep.subr.bf16.mxu0 %v880_v14  ;;  %v952_v34 = vunpack.c.h.s8.bf16 %v648_v8  ;;  %v647_v14 = vld [vmem:[#allocation10 + $0x150] sm:$0xff] }
 0x180   :  { %1664 = vmatprep.subr.bf16.mxu1 %v1008_v43  ;;  %v1080_v43 = vunpack.c.h.s8.bf16 %v712_v62  ;;  %v951_v38 = vunpack.c.h.s8.bf16 %v647_v14  ;;  %v943_v44 = vunpack.c.l.s8.bf16 %v647_v14  ;;  %v744_v14 = vld [vmem:[#allocation10 + $0x458] sm:$0xff] }
 0x182   :  { %1612 = vmatpush1.bf16.msra.mxu0 %v879_v42  ;;  %v1079_v42 = vunpack.c.h.s8.bf16 %v711_v30 }
 0x183   :  { %1665 = vmatpush1.bf16.msra.mxu1 %v1007_v52  ;;  %1613 = vmatprep.subr.bf16.mxu0 %v872_v6  ;;  %v944_v52 = vunpack.c.l.s8.bf16 %v648_v8  ;;  %v1072_v6 = vunpack.c.l.s8.bf16 %v712_v62  ;;  %v815_v8 = vld [vmem:[#allocation10 + $0x690] sm:$0xff] }
 0x184   :  { %1666 = vmatprep.subr.bf16.mxu1 %v1000_v60  ;;  %v704_v60 = vld [vmem:[#allocation10 + $0x318] sm:$0xff] }
 0x186   :  { %1614 = vmatpush1.bf16.msra.mxu0 %v871_v49  ;;  %v1071_v49 = vunpack.c.l.s8.bf16 %v711_v30 }
 0x187   :  { %1667 = vmatpush1.bf16.msra.mxu1 %v999_v54  ;;  %1615 = vmatprep.subr.bf16.mxu0 %v864_v37  ;;  %v936_v54 = vunpack.c.h.s8.bf16 %v640_v55  ;;  %v639_v37 = vld [vmem:[#allocation10 + $0x110] sm:$0xff] }
 0x188   :  { %1668 = vmatprep.subr.bf16.mxu1 %v992_v31  ;;  %v1064_v31 = vunpack.c.h.s8.bf16 %v704_v60  ;;  %v935_v36 = vunpack.c.h.s8.bf16 %v639_v37  ;;  %v927_v20 = vunpack.c.l.s8.bf16 %v639_v37  ;;  %v736_v37 = vld [vmem:[#allocation10 + $0x418] sm:$0xff] }
 0x18a   :  { %1616 = vmatpush1.bf16.msra.mxu0 %v863_v19  ;;  %v1063_v19 = vunpack.c.h.s8.bf16 %v703_v12 }
 0x18b   :  { %1669 = vmatpush1.bf16.msra.mxu1 %v991_v45  ;;  %1617 = vmatprep.subr.bf16.mxu0 %v984_v5  ;;  %v928_v45 = vunpack.c.l.s8.bf16 %v640_v55  ;;  %v1056_v5 = vunpack.c.l.s8.bf16 %v704_v60  ;;  %v807_v55 = vld [vmem:[#allocation10 + $0x650] sm:$0xff] }
 0x18c   :  { %1670 = vmatprep.subr.bf16.mxu1 %v1112_v29  ;;  %v824_v29 = vld [vmem:[#allocation10 + $0x6d8] sm:$0xff] }
 0x18e   :  { %1618 = vmatpush2.bf16.msra.mxu0 %v983_v27  ;;  %v1055_v27 = vunpack.c.l.s8.bf16 %v703_v12 }
 0x18f   :  { %1671 = vmatpush2.bf16.msra.mxu1 %v1111_v2  ;;  %1619 = vmatprep.subr.bf16.mxu0 %v976_v53  ;;  %v1176_v2 = vunpack.c.h.s8.bf16 %v760_v23  ;;  %v1304_v53 = vunpack.c.h.s8.bf16 %v824_v29 }
 0x190   :  { %1672 = vmatprep.subr.bf16.mxu1 %v1104_v0  ;;  %v759_v0 = vld [vmem:[#allocation10 + $0x4d0] sm:$0xff] }
 0x191   :  { %v1175_v17 = vunpack.c.h.s8.bf16 %v759_v0  ;;  %v1167_v56 = vunpack.c.l.s8.bf16 %v759_v0  ;;  %v856_v0 = vld [vmem:[#allocation10 + $0x7d8] sm:$0xff] }
 0x192   :  { %1620 = vmatpush2.bf16.msra.mxu0 %v975_v32  ;;  %v1303_v32 = vunpack.c.h.s8.bf16 %v823_v3 }
 0x193   :  { %1673 = vmatpush2.bf16.msra.mxu1 %v1103_v25  ;;  %1621 = vmatprep.subr.bf16.mxu0 %v968_v46  ;;  %v1168_v25 = vunpack.c.l.s8.bf16 %v760_v23  ;;  %v1296_v46 = vunpack.c.l.s8.bf16 %v824_v29  ;;  %v799_v23 = vld [vmem:[#allocation10 + $0x610] sm:$0xff] }
 0x194   :  { %1674 = vmatprep.subr.bf16.mxu1 %v1096_v58  ;;  %v816_v58 = vld [vmem:[#allocation10 + $0x698] sm:$0xff] }
 0x196   :  { %1622 = vmatpush2.bf16.msra.mxu0 %v967_v18  ;;  %v1295_v18 = vunpack.c.l.s8.bf16 %v823_v3 }
 0x197   :  { %1675 = vmatpush2.bf16.msra.mxu1 %v1095_v11  ;;  %1623 = vmatprep.subr.bf16.mxu0 %v960_v50  ;;  %v1160_v11 = vunpack.c.h.s8.bf16 %v752_v51  ;;  %v751_v50 = vld [vmem:[#allocation10 + $0x490] sm:$0xff] }
 0x198   :  { %1676 = vmatprep.subr.bf16.mxu1 %v1088_v59  ;;  %v1288_v59 = vunpack.c.h.s8.bf16 %v816_v58  ;;  %v1159_v62 = vunpack.c.h.s8.bf16 %v751_v50  ;;  %v1151_v30 = vunpack.c.l.s8.bf16 %v751_v50  ;;  %v784_v50 = vld [vmem:[#allocation10 + $0x598] sm:$0xff] }
 0x19a   :  { %1624 = vmatpush2.bf16.msra.mxu0 %v959_v57  ;;  %v1287_v57 = vunpack.c.h.s8.bf16 %v815_v8 }
 0x19b   :  { %1677 = vmatpush2.bf16.msra.mxu1 %v1087_v7  ;;  %1625 = vmatprep.subr.bf16.mxu0 %v952_v34  ;;  %v1152_v7 = vunpack.c.l.s8.bf16 %v752_v51  ;;  %v1280_v34 = vunpack.c.l.s8.bf16 %v816_v58  ;;  %v855_v51 = vld [vmem:[#allocation10 + $0x7d0] sm:$0xff] }
 0x19c   :  { %1678 = vmatprep.subr.bf16.mxu1 %v1080_v43  ;;  %v808_v43 = vld [vmem:[#allocation10 + $0x658] sm:$0xff] }
 0x19e   :  { %1626 = vmatpush2.bf16.msra.mxu0 %v951_v38  ;;  %v1279_v38 = vunpack.c.l.s8.bf16 %v815_v8 }
 0x19f   :  { %1679 = vmatpush2.bf16.msra.mxu1 %v1079_v42  ;;  %1627 = vmatprep.subr.bf16.mxu0 %v944_v52  ;;  %v1144_v42 = vunpack.c.h.s8.bf16 %v744_v14  ;;  %v743_v52 = vld [vmem:[#allocation10 + $0x450] sm:$0xff] }
 0x1a0   :  { %1680 = vmatprep.subr.bf16.mxu1 %v1072_v6  ;;  %v1272_v6 = vunpack.c.h.s8.bf16 %v808_v43  ;;  %v1143_v60 = vunpack.c.h.s8.bf16 %v743_v52  ;;  %v1135_v12 = vunpack.c.l.s8.bf16 %v743_v52  ;;  %v776_v52 = vld [vmem:[#allocation10 + $0x558] sm:$0xff] }
 0x1a2   :  { %1628 = vmatpush2.bf16.msra.mxu0 %v943_v44  ;;  %v1271_v44 = vunpack.c.h.s8.bf16 %v807_v55 }
 0x1a3   :  { %1681 = vmatpush2.bf16.msra.mxu1 %v1071_v49  ;;  %1629 = vmatprep.subr.bf16.mxu0 %v936_v54  ;;  %v1136_v49 = vunpack.c.l.s8.bf16 %v744_v14  ;;  %v1264_v54 = vunpack.c.l.s8.bf16 %v808_v43  ;;  %v847_v14 = vld [vmem:[#allocation10 + $0x790] sm:$0xff] }
 0x1a4   :  { %1682 = vmatprep.subr.bf16.mxu1 %v1064_v31  ;;  %v800_v31 = vld [vmem:[#allocation10 + $0x618] sm:$0xff] }
 0x1a6   :  { %1630 = vmatpush2.bf16.msra.mxu0 %v935_v36  ;;  %v1263_v36 = vunpack.c.l.s8.bf16 %v807_v55 }
 0x1a7   :  { %1683 = vmatpush2.bf16.msra.mxu1 %v1063_v19  ;;  %1631 = vmatprep.subr.bf16.mxu0 %v928_v45  ;;  %v1128_v19 = vunpack.c.h.s8.bf16 %v736_v37  ;;  %v735_v45 = vld [vmem:[#allocation10 + $0x410] sm:$0xff] }
 0x1a8   :  { %1684 = vmatprep.subr.bf16.mxu1 %v1056_v5  ;;  %v1256_v5 = vunpack.c.h.s8.bf16 %v800_v31  ;;  %v1127_v29 = vunpack.c.h.s8.bf16 %v735_v45  ;;  %v1119_v3 = vunpack.c.l.s8.bf16 %v735_v45  ;;  %v768_v45 = vld [vmem:[#allocation10 + $0x518] sm:$0xff] }
 0x1aa   :  { %1632 = vmatpush2.bf16.msra.mxu0 %v927_v20  ;;  %v1255_v20 = vunpack.c.h.s8.bf16 %v799_v23 }
 0x1ab   :  { %1685 = vmatpush2.bf16.msra.mxu1 %v1055_v27  ;;  %1707 = vmatprep.subr.bf16.mxu0 %v1176_v2  ;;  %v1120_v27 = vunpack.c.l.s8.bf16 %v736_v37  ;;  %v1248_v2 = vunpack.c.l.s8.bf16 %v800_v31  ;;  %v839_v37 = vld [vmem:[#allocation10 + $0x750] sm:$0xff] }
 0x1ac   :  { %1760 = vmatprep.subr.bf16.mxu1 %v1304_v53  ;;  %v792_v53 = vld [vmem:[#allocation10 + $0x5d8] sm:$0xff] }
 0x1ad   :  { %1634 = vmatmul.mubr.bf16.vlgmr.msra.gmra.mxu0 %v3095_v1 }
 0x1ae   :  { %1687 = vmatmul.mubr.bf16.vlgmr.msra.gmra.mxu1 %v3100_v9  ;;  %1643 = vmatprep.mubr.bf16.mxu0 %v3150_v24 }
 0x1af   :  { %1696 = vmatprep.mubr.bf16.mxu1 %v3152_v48  ;;  %1708 = vmatpush1.bf16.msra.mxu0 %v1175_v17  ;;  %v1247_v17 = vunpack.c.l.s8.bf16 %v799_v23 }
 0x1b0   :  { %1761 = vmatpush1.bf16.msra.mxu1 %v1303_v32  ;;  %1709 = vmatprep.subr.bf16.mxu0 %v1168_v25  ;;  %v1240_v32 = vunpack.c.h.s8.bf16 %v792_v53  ;;  %v791_v25 = vld [vmem:[#allocation10 + $0x5d0] sm:$0xff] }
 0x1b1   :  { %1762 = vmatprep.subr.bf16.mxu1 %v1296_v46  ;;  %v1368_v46 = vunpack.c.h.s8.bf16 %v856_v0  ;;  %v1239_v58 = vunpack.c.h.s8.bf16 %v791_v25  ;;  %v1231_v8 = vunpack.c.l.s8.bf16 %v791_v25  ;;  %v634_v25 = vld [vmem:[#allocation10 + $0xe8] sm:$0xff] }
 0x1b3   :  { %1710 = vmatpush1.bf16.msra.mxu0 %v1167_v56  ;;  %v1367_v56 = vunpack.c.h.s8.bf16 %v855_v51 }
 0x1b4   :  { %1763 = vmatpush1.bf16.msra.mxu1 %v1295_v18  ;;  %1711 = vmatprep.subr.bf16.mxu0 %v1160_v11  ;;  %v1232_v18 = vunpack.c.l.s8.bf16 %v792_v53  ;;  %v1360_v11 = vunpack.c.l.s8.bf16 %v856_v0  ;;  %v831_v53 = vld [vmem:[#allocation10 + $0x710] sm:$0xff] }
 0x1b5   :  { %1644 = vmatmul.mubr.bf16.gmra.mxu0 %v3148_v35  ;;  %1764 = vmatprep.subr.bf16.mxu1 %v1288_v59  ;;  %v848_v59 = vld [vmem:[#allocation10 + $0x798] sm:$0xff] }
 0x1b6   :  { %1697 = vmatmul.mubr.bf16.gmra.mxu1 %v3155_v40  ;;  %1739 = vmatprep.mubr.bf16.mxu0 %v3167_v4 }
 0x1b7   :  { %1712 = vmatpush1.bf16.msra.mxu0 %v1159_v62  ;;  %1792 = vmatprep.mubr.bf16.mxu1 %v3169_v21  ;;  %v1359_v62 = vunpack.c.l.s8.bf16 %v855_v51 }
 0x1b8   :  { %1765 = vmatpush1.bf16.msra.mxu1 %v1287_v57  ;;  %1713 = vmatprep.subr.bf16.mxu0 %v1152_v7  ;;  %v1224_v57 = vunpack.c.h.s8.bf16 %v784_v50  ;;  %v783_v7 = vld [vmem:[#allocation10 + $0x590] sm:$0xff] }
 0x1b9   :  { %1766 = vmatprep.subr.bf16.mxu1 %v1280_v34  ;;  %v1352_v34 = vunpack.c.h.s8.bf16 %v848_v59  ;;  %v1223_v43 = vunpack.c.h.s8.bf16 %v783_v7  ;;  %v1215_v55 = vunpack.c.l.s8.bf16 %v783_v7 }
 0x1bb   :  { %1714 = vmatpush1.bf16.msra.mxu0 %v1151_v30  ;;  %v1351_v30 = vunpack.c.h.s8.bf16 %v847_v14 }
 0x1bc   :  { %1767 = vmatpush1.bf16.msra.mxu1 %v1279_v38  ;;  %1715 = vmatprep.subr.bf16.mxu0 %v1144_v42  ;;  %v1216_v38 = vunpack.c.l.s8.bf16 %v784_v50  ;;  %v1344_v42 = vunpack.c.l.s8.bf16 %v848_v59  ;;  %v697_v50 = vld [vmem:[#allocation10 + $0x2e0] sm:$0xff] }
 0x1bd   :  { %1768 = vmatprep.subr.bf16.mxu1 %v1272_v6  ;;  %v840_v6 = vld [vmem:[#allocation10 + $0x758] sm:$0xff] }
 0x1bf   :  { %1716 = vmatpush1.bf16.msra.mxu0 %v1143_v60  ;;  %v1343_v60 = vunpack.c.l.s8.bf16 %v847_v14  ;;  %v626_v14 = vld [vmem:[#allocation10 + $0xa8] sm:$0xff] }
 0x1c0   :  { %1769 = vmatpush1.bf16.msra.mxu1 %v1271_v44  ;;  %1717 = vmatprep.subr.bf16.mxu0 %v1136_v49  ;;  %v1208_v44 = vunpack.c.h.s8.bf16 %v776_v52  ;;  %v775_v49 = vld [vmem:[#allocation10 + $0x550] sm:$0xff] }
 0x1c1   :  { %1770 = vmatprep.subr.bf16.mxu1 %v1264_v54  ;;  %v1336_v54 = vunpack.c.h.s8.bf16 %v840_v6  ;;  %v1207_v31 = vunpack.c.h.s8.bf16 %v775_v49  ;;  %v1199_v23 = vunpack.c.l.s8.bf16 %v775_v49  ;;  %v625_v49 = vld [vmem:[#allocation10 + $0xa0] sm:$0xff] }
 0x1c3   :  { %1718 = vmatpush1.bf16.msra.mxu0 %v1135_v12  ;;  %v1335_v12 = vunpack.c.h.s8.bf16 %v839_v37 }
 0x1c4   :  { %1771 = vmatpush1.bf16.msra.mxu1 %v1263_v36  ;;  %1719 = vmatprep.subr.bf16.mxu0 %v1128_v19  ;;  %v1200_v36 = vunpack.c.l.s8.bf16 %v776_v52  ;;  %v1328_v19 = vunpack.c.l.s8.bf16 %v840_v6 }
 0x1c5   :  { %1772 = vmatprep.subr.bf16.mxu1 %v1256_v5  ;;  %v832_v5 = vld [vmem:[#allocation10 + $0x718] sm:$0xff] }
 0x1c7   :  { %1720 = vmatpush1.bf16.msra.mxu0 %v1127_v29  ;;  %v1327_v29 = vunpack.c.l.s8.bf16 %v839_v37 }
 0x1c8   :  { %1773 = vmatpush1.bf16.msra.mxu1 %v1255_v20  ;;  %1721 = vmatprep.subr.bf16.mxu0 %v1120_v27  ;;  %v1192_v20 = vunpack.c.h.s8.bf16 %v768_v45  ;;  %v767_v27 = vld [vmem:[#allocation10 + $0x510] sm:$0xff] }
 0x1c9   :  { %1774 = vmatprep.subr.bf16.mxu1 %v1248_v2  ;;  %v1320_v2 = vunpack.c.h.s8.bf16 %v832_v5  ;;  %v1191_v0 = vunpack.c.h.s8.bf16 %v767_v27  ;;  %v1183_v51 = vunpack.c.l.s8.bf16 %v767_v27  ;;  %v618_v27 = vld [vmem:[#allocation10 + $0x68] sm:$0xff] }
 0x1cb   :  { %1722 = vmatpush1.bf16.msra.mxu0 %v1119_v3  ;;  %v1319_v3 = vunpack.c.h.s8.bf16 %v831_v53 }
 0x1cc   :  { %1775 = vmatpush1.bf16.msra.mxu1 %v1247_v17  ;;  %1723 = vmatprep.subr.bf16.mxu0 %v1240_v32  ;;  %v1184_v17 = vunpack.c.l.s8.bf16 %v768_v45  ;;  %v1312_v32 = vunpack.c.l.s8.bf16 %v832_v5  ;;  %v905_v45 = vunpack.c.h.s8.bf16 %v625_v49 }
 0x1cd   :  { %1776 = vmatprep.subr.bf16.mxu1 %v1368_v46  ;;  %v698_v46 = vld [vmem:[#allocation10 + $0x2e8] sm:$0xff] }
 0x1cf   :  { %1724 = vmatpush2.bf16.msra.mxu0 %v1239_v58  ;;  %v1311_v58 = vunpack.c.l.s8.bf16 %v831_v53  ;;  %v897_v53 = vunpack.c.l.s8.bf16 %v625_v49 }
 0x1d0   :  { %1777 = vmatpush2.bf16.msra.mxu1 %v1367_v56  ;;  %1725 = vmatprep.subr.bf16.mxu0 %v1232_v18  ;;  %v922_v56 = vunpack.c.h.s8.bf16 %v634_v25  ;;  %v1050_v18 = vunpack.c.h.s8.bf16 %v698_v46 }
 0x1d1   :  { %1778 = vmatprep.subr.bf16.mxu1 %v1360_v11  ;;  %v633_v11 = vld [vmem:[#allocation10 + $0xe0] sm:$0xff] }
 0x1d2   :  { %v921_v59 = vunpack.c.h.s8.bf16 %v633_v11  ;;  %v913_v52 = vunpack.c.l.s8.bf16 %v633_v11 }
 0x1d3   :  { %1726 = vmatpush2.bf16.msra.mxu0 %v1231_v8 }
 0x1d4   :  { %1779 = vmatpush2.bf16.msra.mxu1 %v1359_v62  ;;  %1727 = vmatprep.subr.bf16.mxu0 %v1224_v57  ;;  %v1049_v62 = vunpack.c.h.s8.bf16 %v697_v50  ;;  %v914_v57 = vunpack.c.l.s8.bf16 %v634_v25 }
 0x1d5   :  { %1780 = vmatprep.subr.bf16.mxu1 %v1352_v34  ;;  %v1042_v34 = vunpack.c.l.s8.bf16 %v698_v46  ;;  %v681_v46 = vld [vmem:[#allocation10 + $0x260] sm:$0xff] }
 0x1d7   :  { %1728 = vmatpush2.bf16.msra.mxu0 %v1223_v43 }
 0x1d8   :  { %1781 = vmatpush2.bf16.msra.mxu1 %v1351_v30  ;;  %1729 = vmatprep.subr.bf16.mxu0 %v1216_v38  ;;  %v690_v38 = vld [vmem:[#allocation10 + $0x2a8] sm:$0xff] }
 0x1d9   :  { %1782 = vmatprep.subr.bf16.mxu1 %v1344_v42  ;;  %v1034_v37 = vunpack.c.h.s8.bf16 %v690_v38 }
 0x1db   :  { %1730 = vmatpush2.bf16.msra.mxu0 %v1215_v55 }
 0x1dc   :  { %1783 = vmatpush2.bf16.msra.mxu1 %v1343_v60  ;;  %1731 = vmatprep.subr.bf16.mxu0 %v1208_v44  ;;  %v1041_v60 = vunpack.c.l.s8.bf16 %v697_v50  ;;  %v906_v44 = vunpack.c.h.s8.bf16 %v626_v14  ;;  %v1017_v50 = vunpack.c.h.s8.bf16 %v681_v46 }
 0x1dd   :  { %1784 = vmatprep.subr.bf16.mxu1 %v1336_v54 }
 0x1df   :  { %1732 = vmatpush2.bf16.msra.mxu0 %v1207_v31  ;;  %v689_v31 = vld [vmem:[#allocation10 + $0x2a0] sm:$0xff] }
 0x1e0   :  { %1785 = vmatpush2.bf16.msra.mxu1 %v1335_v12  ;;  %1733 = vmatprep.subr.bf16.mxu0 %v1200_v36 }
 0x1e1   :  { %1786 = vmatprep.subr.bf16.mxu1 %v1328_v19 }
 0x1e3   :  { %1734 = vmatpush2.bf16.msra.mxu0 %v1199_v23  ;;  %v1033_v23 = vunpack.c.h.s8.bf16 %v689_v31 }
 0x1e4   :  { %1787 = vmatpush2.bf16.msra.mxu1 %v1327_v29  ;;  %1735 = vmatprep.subr.bf16.mxu0 %v1192_v20  ;;  %v898_v29 = vunpack.c.l.s8.bf16 %v626_v14  ;;  %v1026_v20 = vunpack.c.l.s8.bf16 %v690_v38  ;;  %v674_v14 = vld [vmem:[#allocation10 + $0x228] sm:$0xff] }
 0x1e5   :  { %1788 = vmatprep.subr.bf16.mxu1 %v1320_v2  ;;  %v682_v2 = vld [vmem:[#allocation10 + $0x268] sm:$0xff] }
 0x1e6   :  { %v1018_v25 = vunpack.c.h.s8.bf16 %v682_v2 }
 0x1e7   :  { %1736 = vmatpush2.bf16.msra.mxu0 %v1191_v0  ;;  %v1025_v0 = vunpack.c.l.s8.bf16 %v689_v31 }
 0x1e8   :  { %1789 = vmatpush2.bf16.msra.mxu1 %v1319_v3  ;;  %1737 = vmatprep.subr.bf16.mxu0 %v1184_v17  ;;  %v890_v3 = vunpack.c.h.s8.bf16 %v618_v27  ;;  %v617_v17 = vld [vmem:[#allocation10 + $0x60] sm:$0xff] }
 0x1e9   :  { %1790 = vmatprep.subr.bf16.mxu1 %v1312_v32 }
 0x1eb   :  { %1738 = vmatpush2.bf16.msra.mxu0 %v1183_v51 }
 0x1ec   :  { %1791 = vmatpush2.bf16.msra.mxu1 %v1311_v58  ;;  %1813 = vmatprep.subr.bf16.mxu0 %v922_v56 }
 0x1ed   :  { %1866 = vmatprep.subr.bf16.mxu1 %v1050_v18  ;;  %v1423_v8 = vpop.f32.mrf.mxu0  ;;  %v1476_v7 = vpop.f32.mrf.mxu1  ;;  %v889_v18 = vunpack.c.h.s8.bf16 %v617_v17 }
 0x1ee   :  { %1740 = vmatmul.mubr.bf16.vlgmr.msra.gmra.mxu0 %v3292_v22  ;;  %v3326_v43 = vadd.f32 %v1476_v7, %v1423_v8  ;;  %v610_v7 = vld [vmem:[#allocation10 + $0x28] sm:$0xff] }
 0x1ef   :  { %1793 = vmatmul.mubr.bf16.vlgmr.msra.gmra.mxu1 %v3297_v47  ;;  %1749 = vmatprep.mubr.bf16.mxu0 %v3299_v41  ;;  %v1425_v30 = vpop.f32.mrf.mxu0  ;;  %v1478_v42 = vpop.f32.mrf.mxu1 }
 0x1f0   :  { %1802 = vmatprep.mubr.bf16.mxu1 %v3301_v39  ;;  %1814 = vmatpush1.bf16.msra.mxu0 %v921_v59  ;;  %v3330_v6 = vadd.f32 %v1478_v42, %v1425_v30  ;;  %v882_v59 = vunpack.c.l.s8.bf16 %v618_v27  ;;  %v881_v42 = vunpack.c.l.s8.bf16 %v617_v17 }
 0x1f1   :  { %1867 = vmatpush1.bf16.msra.mxu1 %v1049_v62  ;;  %1815 = vmatprep.subr.bf16.mxu0 %v914_v57  ;;  %v1427_v55 = vpop.f32.mrf.mxu0  ;;  %v1480_v54 = vpop.f32.mrf.mxu1  ;;  %v1010_v57 = vunpack.c.l.s8.bf16 %v682_v2 }
 0x1f2   :  { %1868 = vmatprep.subr.bf16.mxu1 %v1042_v34  ;;  %v3332_v12 = vadd.f32 %v1480_v54, %v1427_v55  ;;  %v1009_v55 = vunpack.c.l.s8.bf16 %v681_v46  ;;  %v1002_v54 = vunpack.c.h.s8.bf16 %v674_v14 }
 0x1f3   :  { %v1429_v36 = vpop.f32.mrf.mxu0  ;;  %v1482_v19 = vpop.f32.mrf.mxu1 }
 0x1f4   :  { %1816 = vmatpush1.bf16.msra.mxu0 %v913_v52  ;;  %v3334_v5 = vadd.f32 %v1482_v19, %v1429_v36  ;;  %v866_v19 = vunpack.c.l.s8.bf16 %v610_v7 }
 0x1f5   :  { %1869 = vmatpush1.bf16.msra.mxu1 %v1041_v60  ;;  %1817 = vmatprep.subr.bf16.mxu0 %v906_v44  ;;  %v874_v60 = vunpack.c.h.s8.bf16 %v610_v7  ;;  %v609_v44 = vld [vmem:[#allocation10 + $0x20] sm:$0xff] }
 0x1f6   :  { %1750 = vmatmul.mubr.bf16.gmra.mxu0 %v3307_v33  ;;  %1870 = vmatprep.subr.bf16.mxu1 %v1034_v37  ;;  %v673_v37 = vld [vmem:[#allocation10 + $0x220] sm:$0xff]  ;;  %v873_v31 = vunpack.c.h.s8.bf16 %v609_v44 }
 0x1f7   :  { %1803 = vmatmul.mubr.bf16.gmra.mxu1 %v3310_v63  ;;  %1845 = vmatprep.mubr.bf16.mxu0 %v3102_v10  ;;  %v1001_v36 = vunpack.c.h.s8.bf16 %v673_v37  ;;  %v993_v27 = vunpack.c.l.s8.bf16 %v673_v37 }
 0x1f8   :  { %1818 = vmatpush1.bf16.msra.mxu0 %v905_v45  ;;  %1898 = vmatprep.mubr.bf16.mxu1 %v3107_v28  ;;  %v994_v45 = vunpack.c.l.s8.bf16 %v674_v14 }
 0x1f9   :  { %1871 = vmatpush1.bf16.msra.mxu1 %v1033_v23  ;;  %1819 = vmatprep.subr.bf16.mxu0 %v898_v29  ;;  %v1433_v32 = vpop.f32.mrf.mxu0  ;;  %v1486_v51 = vpop.f32.mrf.mxu1  ;;  %v666_v23 = vld [vmem:[#allocation10 + $0x1e8] sm:$0xff] }
 0x1fa   :  { %1872 = vmatprep.subr.bf16.mxu1 %v1026_v20  ;;  %v3340_v58 = vadd.f32 %v1486_v51, %v1433_v32  ;;  %v730_v29 = vld [vmem:[#allocation10 + $0x3e8] sm:$0xff]  ;;  %v865_v20 = vunpack.c.l.s8.bf16 %v609_v44  ;;  %v986_v2 = vunpack.c.h.s8.bf16 %v666_v23 }
 0x1fb   :  { %v1435_v56 = vpop.f32.mrf.mxu0  ;;  %v1488_v11 = vpop.f32.mrf.mxu1  ;;  %v1106_v46 = vunpack.c.l.s8.bf16 %v730_v29  ;;  %v658_v51 = vld [vmem:[#allocation10 + $0x1a8] sm:$0xff] }
 0x1fc   :  { %1820 = vmatpush1.bf16.msra.mxu0 %v897_v53  ;;  %v3342_v8 = vadd.f32 %v1488_v11, %v1435_v56  ;;  %v665_v53 = vld [vmem:[#allocation10 + $0x1e0] sm:$0xff]  ;;  %v722_v56 = vld [vmem:[#allocation10 + $0x3a8] sm:$0xff]  ;;  %v962_v14 = vunpack.c.l.s8.bf16 %v658_v51 }
 0x1fd   :  { %1873 = vmatpush1.bf16.msra.mxu1 %v1025_v0  ;;  %1821 = vmatprep.subr.bf16.mxu0 %v890_v3  ;;  %v1437_v62 = vpop.f32.mrf.mxu0  ;;  %v1490_v34 = vpop.f32.mrf.mxu1  ;;  %v1114_v0 = vunpack.c.h.s8.bf16 %v730_v29  ;;  %v729_v3 = vld [vmem:[#allocation10 + $0x3e0] sm:$0xff]  ;;  %v985_v17 = vunpack.c.h.s8.bf16 %v665_v53  ;;  %v642_v29 = vld [vmem:[#allocation10 + $0x128] sm:$0xff] }
 0x1fe   :  { %1874 = vmatprep.subr.bf16.mxu1 %v1018_v25  ;;  %v3344_v30 = vadd.f32 %v1490_v34, %v1437_v62  ;;  %v1113_v32 = vunpack.c.h.s8.bf16 %v729_v3  ;;  %v978_v25 = vunpack.c.l.s8.bf16 %v666_v23  ;;  %v1105_v11 = vunpack.c.l.s8.bf16 %v729_v3 }
 0x1ff   :  { %v1439_v38 = vpop.f32.mrf.mxu0  ;;  %v1492_v52 = vpop.f32.mrf.mxu1  ;;  %v1098_v62 = vunpack.c.h.s8.bf16 %v722_v56 }
 0x200   :  { %1822 = vmatpush1.bf16.msra.mxu0 %v889_v18  ;;  %v3346_v49 = vadd.f32 %v1492_v52, %v1439_v38  ;;  %v977_v18 = vunpack.c.l.s8.bf16 %v665_v53  ;;  %v1090_v38 = vunpack.c.l.s8.bf16 %v722_v56  ;;  %v714_v52 = vld [vmem:[#allocation10 + $0x368] sm:$0xff]  ;;  %v938_v53 = vunpack.c.h.s8.bf16 %v642_v29 }
 0x201   :  { %1875 = vmatpush1.bf16.msra.mxu1 %v1017_v50  ;;  %1823 = vmatprep.subr.bf16.mxu0 %v882_v59  ;;  %v970_v50 = vunpack.c.h.s8.bf16 %v658_v51  ;;  %v657_v59 = vld [vmem:[#allocation10 + $0x1a0] sm:$0xff]  ;;  %v1082_v37 = vunpack.c.h.s8.bf16 %v714_v52  ;;  %v1074_v23 = vunpack.c.l.s8.bf16 %v714_v52  ;;  %v762_v56 = vld [vmem:[#allocation10 + $0x4e8] sm:$0xff] }
 0x202   :  { %1876 = vmatprep.subr.bf16.mxu1 %v1010_v57  ;;  %v721_v57 = vld [vmem:[#allocation10 + $0x3a0] sm:$0xff]  ;;  %v969_v7 = vunpack.c.h.s8.bf16 %v657_v59 }
 0x203   :  { %v1097_v34 = vunpack.c.h.s8.bf16 %v721_v57 }
 0x204   :  { %1824 = vmatpush1.bf16.msra.mxu0 %v881_v42  ;;  %v650_v42 = vld [vmem:[#allocation10 + $0x168] sm:$0xff] }
 0x205   :  { %1877 = vmatpush1.bf16.msra.mxu1 %v1009_v55  ;;  %1825 = vmatprep.subr.bf16.mxu0 %v874_v60  ;;  %v961_v55 = vunpack.c.l.s8.bf16 %v657_v59  ;;  %v1089_v60 = vunpack.c.l.s8.bf16 %v721_v57  ;;  %v954_v44 = vunpack.c.h.s8.bf16 %v650_v42  ;;  %v1178_v59 = vunpack.c.h.s8.bf16 %v762_v56 }
 0x206   :  { %1878 = vmatprep.subr.bf16.mxu1 %v1002_v54  ;;  %v649_v54 = vld [vmem:[#allocation10 + $0x160] sm:$0xff] }
 0x208   :  { %1826 = vmatpush1.bf16.msra.mxu0 %v873_v31  ;;  %v713_v31 = vld [vmem:[#allocation10 + $0x360] sm:$0xff] }
 0x209   :  { %1879 = vmatpush1.bf16.msra.mxu1 %v1001_v36  ;;  %1827 = vmatprep.subr.bf16.mxu0 %v866_v19  ;;  %v953_v36 = vunpack.c.h.s8.bf16 %v649_v54  ;;  %v1081_v19 = vunpack.c.h.s8.bf16 %v713_v31 }
 0x20a   :  { %1880 = vmatprep.subr.bf16.mxu1 %v994_v45  ;;  %v946_v45 = vunpack.c.l.s8.bf16 %v650_v42 }
 0x20c   :  { %1828 = vmatpush1.bf16.msra.mxu0 %v865_v20  ;;  %v706_v20 = vld [vmem:[#allocation10 + $0x328] sm:$0xff] }
 0x20d   :  { %1881 = vmatpush1.bf16.msra.mxu1 %v993_v27  ;;  %1829 = vmatprep.subr.bf16.mxu0 %v986_v2  ;;  %v945_v27 = vunpack.c.l.s8.bf16 %v649_v54  ;;  %v1073_v2 = vunpack.c.l.s8.bf16 %v713_v31  ;;  %v1066_v3 = vunpack.c.h.s8.bf16 %v706_v20  ;;  %v1058_v51 = vunpack.c.l.s8.bf16 %v706_v20 }
 0x20e   :  { %1882 = vmatprep.subr.bf16.mxu1 %v1114_v0  ;;  %v641_v0 = vld [vmem:[#allocation10 + $0x120] sm:$0xff] }
 0x210   :  { %1830 = vmatpush2.bf16.msra.mxu0 %v985_v17  ;;  %v705_v17 = vld [vmem:[#allocation10 + $0x320] sm:$0xff] }
 0x211   :  { %1883 = vmatpush2.bf16.msra.mxu1 %v1113_v32  ;;  %1831 = vmatprep.subr.bf16.mxu0 %v978_v25  ;;  %v937_v32 = vunpack.c.h.s8.bf16 %v641_v0  ;;  %v1065_v25 = vunpack.c.h.s8.bf16 %v705_v17 }
 0x212   :  { %1884 = vmatprep.subr.bf16.mxu1 %v1106_v46  ;;  %v930_v46 = vunpack.c.l.s8.bf16 %v642_v29 }
 0x214   :  { %1832 = vmatpush2.bf16.msra.mxu0 %v977_v18  ;;  %v826_v18 = vld [vmem:[#allocation10 + $0x6e8] sm:$0xff] }
 0x215   :  { %1885 = vmatpush2.bf16.msra.mxu1 %v1105_v11  ;;  %1833 = vmatprep.subr.bf16.mxu0 %v970_v50  ;;  %v929_v11 = vunpack.c.l.s8.bf16 %v641_v0  ;;  %v1057_v50 = vunpack.c.l.s8.bf16 %v705_v17  ;;  %v1306_v57 = vunpack.c.h.s8.bf16 %v826_v18  ;;  %v3383_v0 = vld [vmem:[#allocation10 + $0x6a0] sm:$0xff] }
 0x216   :  { %1886 = vmatprep.subr.bf16.mxu1 %v1098_v62  ;;  %v2513_v62 = vld [vmem:[#allocation13] sm:$0xff] }
 0x217   :  { %v3357_v52 = vunpack.c.l.bf16 %v2513_v62 }
 0x218   :  { %1834 = vmatpush2.bf16.msra.mxu0 %v969_v7  ;;  %v761_v7 = vld [vmem:[#allocation10 + $0x4e0] sm:$0xff] }
 0x219   :  { %1887 = vmatpush2.bf16.msra.mxu1 %v1097_v34  ;;  %1835 = vmatprep.subr.bf16.mxu0 %v962_v14  ;;  %v3348_v34 = vld [vmem:[#allocation10 + $0x6e0] sm:$0xff]  ;;  %v3353_v14 = vld [vmem:[%s3889_s6] sm:$0xff]  ;;  %v2525_v17 = vrot.slane %v3357_v52, %v3010_v15 }
 0x21a   :  { %1888 = vmatprep.subr.bf16.mxu1 %v1090_v38  ;;  %v3355_v38 = vld [vmem:[#allocation12] sm:$0xff]  ;;  %v1305_v54 = vunpack.c.h.s8.bf16 %v3348_v34  ;;  %v3363_v31 = vrot.slane %v3353_v14, %v3005_v13 }
 0x21c   :  { %1836 = vmatpush2.bf16.msra.mxu0 %v961_v55  ;;  %v1177_v55 = vunpack.c.h.s8.bf16 %v761_v7 }
 0x21d   :  { %1889 = vmatpush2.bf16.msra.mxu1 %v1089_v60  ;;  %1837 = vmatprep.subr.bf16.mxu0 %v954_v44 }
 0x21e   :  { %1890 = vmatprep.subr.bf16.mxu1 %v1082_v37  ;;  %v1170_v37 = vunpack.c.l.s8.bf16 %v762_v56 }
 0x220   :  { %1838 = vmatpush2.bf16.msra.mxu0 %v953_v36  ;;  %v3367_v36 = vrot.slane %v3355_v38, %v3005_v13 }
 0x221   :  { %1891 = vmatpush2.bf16.msra.mxu1 %v1081_v19  ;;  %1839 = vmatprep.subr.bf16.mxu0 %v946_v45  ;;  %v1298_v45 = vunpack.c.l.s8.bf16 %v826_v18 }
 0x222   :  { %1892 = vmatprep.subr.bf16.mxu1 %v1074_v23  ;;  %v3370_v23 = vld [vmem:[#allocation10 + $0x4a8] sm:$0xff] }
 0x223   :  { %v1162_v18 = vunpack.c.h.s8.bf16 %v3370_v23 }
 0x224   :  { %1840 = vmatpush2.bf16.msra.mxu0 %v945_v27 }
 0x225   :  { %1893 = vmatpush2.bf16.msra.mxu1 %v1073_v2  ;;  %1841 = vmatprep.subr.bf16.mxu0 %v938_v53  ;;  %v3379_v2 = vrot.slane %v3353_v14, %v3013_v16  ;;  %v3381_v53 = vld [vmem:[#allocation10 + $0x4a0] sm:$0xff] }
 0x226   :  { %1894 = vmatprep.subr.bf16.mxu1 %v1066_v3  ;;  %v2521_v3 = vrot.slane %v3357_v52, %v3005_v13  ;;  %v1161_v62 = vunpack.c.h.s8.bf16 %v3381_v53 }
 0x228   :  { %1842 = vmatpush2.bf16.msra.mxu0 %v937_v32 }
 0x229   :  { %1895 = vmatpush2.bf16.msra.mxu1 %v1065_v25  ;;  %1843 = vmatprep.subr.bf16.mxu0 %v930_v46  ;;  %v1297_v25 = vunpack.c.l.s8.bf16 %v3348_v34  ;;  %v3401_v34 = vld [vmem:[#allocation10 + $0x468] sm:$0xff] }
 0x22a   :  { %1896 = vmatprep.subr.bf16.mxu1 %v1058_v51 }
 0x22c   :  { %1844 = vmatpush2.bf16.msra.mxu0 %v929_v11 }
 0x22d   :  { %1897 = vmatpush2.bf16.msra.mxu1 %v1057_v50  ;;  %v1529_v42 = vpop.f32.mrf.mxu0  ;;  %1919 = vmatprep.subr.bf16.mxu0 %v1178_v59  ;;  %v1582_v44 = vpop.f32.mrf.mxu1  ;;  %v3396_v50 = vrot.slane %v3355_v38, %v3013_v16 }
 0x22e   :  { %v1530_v60 = vadd.f32 %v1529_v42, %v3326_v43  ;;  %1972 = vmatprep.subr.bf16.mxu1 %v1306_v57  ;;  %v3372_v43 = vld [vmem:[#allocation10 + $0x6a8] sm:$0xff]  ;;  %v1289_v57 = vunpack.c.h.s8.bf16 %v3383_v0 }
 0x22f   :  { %1846 = vmatmul.mubr.bf16.vlgmr.msra.gmra.mxu0 %v3095_v1  ;;  %v1531_v19 = vpop.f32.mrf.mxu0  ;;  %v1584_v27 = vpop.f32.mrf.mxu1  ;;  %v1290_v11 = vunpack.c.h.s8.bf16 %v3372_v43  ;;  %v1282_v16 = vunpack.c.l.s8.bf16 %v3372_v43 }
 0x230   :  { %v1583_v29 = vadd.f32 %v1582_v44, %v1530_v60  ;;  %1899 = vmatmul.mubr.bf16.vlgmr.msra.gmra.mxu1 %v3100_v9  ;;  %1855 = vmatprep.mubr.bf16.mxu0 %v3150_v24  ;;  %v1532_v20 = vadd.f32 %v1531_v19, %v3330_v6  ;;  %v1169_v6 = vunpack.c.l.s8.bf16 %v761_v7  ;;  %v1154_v7 = vunpack.c.l.s8.bf16 %v3370_v23 }
 0x231   :  { %1908 = vmatprep.mubr.bf16.mxu1 %v3152_v48  ;;  %1920 = vmatpush1.bf16.msra.mxu0 %v1177_v55  ;;  %v1533_v32 = vpop.f32.mrf.mxu0  ;;  %v1586_v56 = vpop.f32.mrf.mxu1  ;;  %v3413_v19 = vrot.slane %v2521_v3, %v3005_v13 }
 0x232   :  { %1973 = vmatpush1.bf16.msra.mxu1 %v1305_v54  ;;  %v1585_v46 = vadd.f32 %v1584_v27, %v1532_v20  ;;  %v1534_v51 = vadd.f32 %v1533_v32, %v3332_v12  ;;  %1921 = vmatprep.subr.bf16.mxu0 %v1170_v37  ;;  %v3403_v12 = vld [vmem:[#allocation10 + $0x668] sm:$0xff]  ;;  %v3408_v54 = vld [vmem:[#allocation10 + $0x460] sm:$0xff]  ;;  %v1153_v20 = vunpack.c.l.s8.bf16 %v3381_v53  ;;  %v1281_v27 = vunpack.c.l.s8.bf16 %v3383_v0 }
 0x233   :  { %1974 = vmatprep.subr.bf16.mxu1 %v1298_v45  ;;  %v1535_v59 = vpop.f32.mrf.mxu0  ;;  %v1588_v44 = vpop.f32.mrf.mxu1  ;;  %v3410_v37 = vld [vmem:[#allocation10 + $0x660] sm:$0xff]  ;;  %v3416_v45 = vrot.slane %v2525_v17, %v3005_v13  ;;  %v1274_v3 = vunpack.c.h.s8.bf16 %v3403_v12  ;;  %v1145_v0 = vunpack.c.h.s8.bf16 %v3408_v54 }
 0x234   :  { %v2280_v42 = vmul.f32 %v3379_v2, %v1585_v46  ;;  %v1587_v55 = vadd.f32 %v1586_v56, %v1534_v51  ;;  %v1536_v60 = vadd.f32 %v1535_v59, %v3334_v5  ;;  %v2279_v5 = vmul.f32 %v3363_v31, %v1583_v29 }
 0x235   :  { %1922 = vmatpush1.bf16.msra.mxu0 %v1169_v6  ;;  %v1539_v23 = vpop.f32.mrf.mxu0  ;;  %v1592_v32 = vpop.f32.mrf.mxu1  ;;  %v1146_v46 = vunpack.c.h.s8.bf16 %v3401_v34  ;;  %v3428_v6 = vld [vmem:[#allocation10 + $0x428] sm:$0xff] }
 0x236   :  { %v2287_v43 = vmul.f32 %v3363_v31, %v1587_v55  ;;  %1975 = vmatpush1.bf16.msra.mxu1 %v1297_v25  ;;  %1923 = vmatprep.subr.bf16.mxu0 %v1162_v18  ;;  %v1589_v51 = vadd.f32 %v1588_v44, %v1536_v60  ;;  %v1540_v17 = vadd.f32 %v1539_v23, %v3340_v58  ;;  %v1138_v18 = vunpack.c.l.s8.bf16 %v3401_v34  ;;  %v3442_v23 = vld [vmem:[#allocation10 + $0x628] sm:$0xff]  ;;  %v3452_v44 = vld [vmem:[#allocation10 + $0x420] sm:$0xff] }
 0x237   :  { %1856 = vmatmul.mubr.bf16.gmra.mxu0 %v3148_v35  ;;  %1976 = vmatprep.subr.bf16.mxu1 %v1290_v11  ;;  %v1541_v53 = vpop.f32.mrf.mxu0  ;;  %v3431_v25 = vadd.f32 %v3396_v50, %v2280_v42  ;;  %v1594_v58 = vpop.f32.mrf.mxu1 }
 0x238   :  { %v2361_v56 = vadd.f32 %v3367_v36, %v2287_v43  ;;  %1909 = vmatmul.mubr.bf16.gmra.mxu1 %v3155_v40  ;;  %1951 = vmatprep.mubr.bf16.mxu0 %v3167_v4  ;;  %v2288_v59 = vmul.f32 %v3379_v2, %v1589_v51  ;;  %v1542_v55 = vadd.f32 %v1541_v53, %v3342_v8 }
 0x239   :  { %1924 = vmatpush1.bf16.msra.mxu0 %v1161_v62  ;;  %2004 = vmatprep.mubr.bf16.mxu1 %v3169_v21  ;;  %v1593_v42 = vadd.f32 %v1592_v32, %v1540_v17  ;;  %v1543_v60 = vpop.f32.mrf.mxu0  ;;  %v3445_v43 = vadd.f32 %v3367_v36, %v2279_v5  ;;  %v1596_v34 = vpop.f32.mrf.mxu1  ;;  %v2418_v5 = vmin.f32 %v3431_v25, 0.0  ;;  %v1258_v62 = vunpack.c.h.s8.bf16 %v3442_v23 }
 0x23a   :  { %v2425_v29 = vmin.f32 %v2361_v56, 0.0  ;;  %1977 = vmatpush1.bf16.msra.mxu1 %v1289_v57  ;;  %1925 = vmatprep.subr.bf16.mxu0 %v1154_v7  ;;  %v2362_v11 = vadd.f32 %v3396_v50, %v2288_v59  ;;  %v1544_v32 = vadd.f32 %v1543_v60, %v3344_v30  ;;  %v1595_v17 = vadd.f32 %v1594_v58, %v1542_v55 }
 0x23b   :  { %v2295_v8 = vmul.f32 %v3363_v31, %v1593_v42  ;;  %1978 = vmatprep.subr.bf16.mxu1 %v1282_v16  ;;  %v1545_v53 = vpop.f32.mrf.mxu0  ;;  %v1598_v51 = vpop.f32.mrf.mxu1  ;;  %v2393_v21 = vmax.f32 %v2361_v56, 0.0  ;;  %v3460_v16 = vld [vmem:[#allocation10 + $0x620] sm:$0xff]  ;;  %v2417_v58 = vmin.f32 %v3445_v43, 0.0 }
 0x23c   :  { %v2457_v57 = vmul.f32 %v2425_v29, %v3042_v26  ;;  %v1546_v7 = vadd.f32 %v1545_v53, %v3346_v49  ;;  %v2426_v59 = vmin.f32 %v2362_v11, 0.0  ;;  %v2296_v30 = vmul.f32 %v3379_v2, %v1595_v17 }
 0x23d   :  { %v2369_v42 = vadd.f32 %v3367_v36, %v2295_v8  ;;  %1926 = vmatpush1.bf16.msra.mxu0 %v1153_v20  ;;  %v1597_v55 = vadd.f32 %v1596_v34, %v1544_v32  ;;  %v1129_v29 = vunpack.c.h.s8.bf16 %v3452_v44  ;;  %v2394_v53 = vmax.f32 %v2362_v11, 0.0 }
 0x23e   :  { %1979 = vmatpush1.bf16.msra.mxu1 %v1281_v27  ;;  %v1599_v60 = vadd.f32 %v1598_v51, %v1546_v7  ;;  %v2489_v49 = vadd.f32 %v2457_v57, %v2393_v21  ;;  %v2458_v4 = vmul.f32 %v2426_v59, %v3042_v26  ;;  %v2370_v56 = vadd.f32 %v3396_v50, %v2296_v30 }
 0x23f   :  { %1927 = vmatprep.subr.bf16.mxu0 %v1146_v46  ;;  %1980 = vmatprep.subr.bf16.mxu1 %v1274_v3  ;;  %v2433_v8 = vmin.f32 %v2369_v42, 0.0  ;;  %v2303_v20 = vmul.f32 %v3363_v31, %v1597_v55  ;;  %v1257_v40 = vunpack.c.h.s8.bf16 %v3460_v16  ;;  %v2450_v27 = vmul.f32 %v2418_v5, %v3042_v26 }
 0x240   :  { %v2304_v17 = vmul.f32 %v3379_v2, %v1599_v60  ;;  %v2490_v34 = vadd.f32 %v2458_v4, %v2394_v53  ;;  %v2434_v51 = vmin.f32 %v2370_v56, 0.0  ;;  %v1122_v21 = vunpack.c.l.s8.bf16 %v3428_v6 }
 0x241   :  { %1928 = vmatpush1.bf16.msra.mxu0 %v1145_v0  ;;  %v2385_v11 = vmax.f32 %v3445_v43, 0.0  ;;  %v2449_v32 = vmul.f32 %v2417_v58, %v3042_v26  ;;  %v2377_v46 = vadd.f32 %v3367_v36, %v2303_v20  ;;  %v3913_v31 = vunpack.c.h.s8.bf16 %v3410_v37  ;;  %v794_v20 = vld [vmem:[#allocation10 + $0x5e8] sm:$0xff] }
 0x242   :  { %v2378_v3 = vadd.f32 %v3396_v50, %v2304_v17  ;;  %1929 = vmatprep.subr.bf16.mxu0 %v1138_v18  ;;  %v2386_v2 = vmax.f32 %v3431_v25, 0.0  ;;  %v2598_v4 = vmul.f32 %v3413_v19, %v2489_v49  ;;  %v2599_v0 = vmul.f32 %v3416_v45, %v2490_v34  ;;  %v858_v34 = vld [vmem:[#allocation10 + $0x7e8] sm:$0xff] }
 0x243   :  { %1981 = vmatpush1.bf16.msra.mxu1 %v3913_v31  ;;  %v2466_v5 = vmul.f32 %v2434_v51, %v3042_v26  ;;  %v3914_v43 = vunpack.c.l.s8.bf16 %v3403_v12  ;;  %v2465_v57 = vmul.f32 %v2433_v8, %v3042_v26  ;;  %v2402_v36 = vmax.f32 %v2370_v56, 0.0 }
 0x244   :  { %v2441_v7 = vmin.f32 %v2377_v46, 0.0  ;;  %v2442_v50 = vmin.f32 %v2378_v3, 0.0  ;;  %v2482_v59 = vadd.f32 %v2450_v27, %v2386_v2  ;;  %v3484_v30 = vadd.f32 %v2599_v0, %v2598_v4  ;;  %v857_v2 = vld [vmem:[#allocation10 + $0x7e0] sm:$0xff] }
 0x245   :  { %1982 = vmatprep.subr.bf16.mxu1 %v3914_v43  ;;  %v2401_v18 = vmax.f32 %v2369_v42, 0.0  ;;  %v2409_v58 = vmax.f32 %v2377_v46, 0.0  ;;  %v3915_v25 = vunpack.c.l.s8.bf16 %v3408_v54  ;;  %v2498_v55 = vadd.f32 %v2466_v5, %v2402_v36  ;;  %v786_v5 = vld [vmem:[#allocation10 + $0x5a8] sm:$0xff] }
 0x246   :  { %v2473_v60 = vmul.f32 %v2441_v7, %v3042_v26  ;;  %v2410_v49 = vmax.f32 %v2378_v3, 0.0  ;;  %v2474_v12 = vmul.f32 %v2442_v50, %v3042_v26  ;;  %v3916_v53 = vunpack.c.l.s8.bf16 %v3410_v37  ;;  %v850_v43 = vld [vmem:[#allocation10 + $0x7a8] sm:$0xff]  ;;  %v785_v7 = vld [vmem:[#allocation10 + $0x5a0] sm:$0xff] }
 0x247   :  { %1930 = vmatpush1.bf16.msra.mxu0 %v3915_v25  ;;  %v3917_v56 = vunpack.c.h.s8.bf16 %v3428_v6  ;;  %v2481_v8 = vadd.f32 %v2449_v32, %v2385_v11  ;;  %v1250_v42 = vunpack.c.l.s8.bf16 %v3442_v23  ;;  %v2497_v17 = vadd.f32 %v2465_v57, %v2401_v18  ;;  %v793_v11 = vld [vmem:[#allocation10 + $0x5e0] sm:$0xff] }
 0x248   :  { %1983 = vmatpush1.bf16.msra.mxu1 %v3916_v53  ;;  %v2505_v54 = vadd.f32 %v2473_v60, %v2409_v58  ;;  %v2506_v27 = vadd.f32 %v2474_v12, %v2410_v49  ;;  %v2591_v51 = vmul.f32 %v3416_v45, %v2482_v59  ;;  %v1121_v46 = vunpack.c.l.s8.bf16 %v3452_v44  ;;  %v849_v59 = vld [vmem:[#allocation10 + $0x7a0] sm:$0xff]  ;;  %v778_v60 = vld [vmem:[#allocation10 + $0x568] sm:$0xff] }
 0x249   :  { %1931 = vmatprep.subr.bf16.mxu0 %v3917_v56  ;;  %1984 = vmatprep.subr.bf16.mxu1 %v1258_v62  ;;  %v1249_v37 = vunpack.c.l.s8.bf16 %v3460_v16  ;;  %v2607_v3 = vmul.f32 %v3416_v45, %v2498_v55  ;;  %v1242_v23 = vunpack.c.h.s8.bf16 %v794_v20  ;;  %v2590_v32 = vmul.f32 %v3413_v19, %v2481_v8  ;;  %v842_v49 = vld [vmem:[#allocation10 + $0x768] sm:$0xff]  ;;  %v777_v8 = vld [vmem:[#allocation10 + $0x560] sm:$0xff] }
 0x24a   :  { %v2614_v6 = vmul.f32 %v3413_v19, %v2505_v54  ;;  %v2615_v62 = vmul.f32 %v3416_v45, %v2506_v27  ;;  %v1370_v31 = vunpack.c.h.s8.bf16 %v858_v34  ;;  %v1241_v16 = vunpack.c.h.s8.bf16 %v793_v11 }
 0x24b   :  { %1932 = vmatpush1.bf16.msra.mxu0 %v1129_v29  ;;  %v2606_v29 = vmul.f32 %v3413_v19, %v2497_v17  ;;  %v3505_v4 = vadd.f32 %v2591_v51, %v2590_v32  ;;  %v1369_v45 = vunpack.c.h.s8.bf16 %v857_v2  ;;  %v1362_v0 = vunpack.c.l.s8.bf16 %v858_v34  ;;  %v770_v51 = vld [vmem:[#allocation10 + $0x528] sm:$0xff] }
 0x24c   :  { %1985 = vmatpush1.bf16.msra.mxu1 %v1257_v40  ;;  %1933 = vmatprep.subr.bf16.mxu0 %v1122_v21  ;;  %v3503_v44 = vadd.f32 %v2615_v62, %v2614_v6  ;;  %v1234_v40 = vunpack.c.l.s8.bf16 %v794_v20  ;;  %v1233_v57 = vunpack.c.l.s8.bf16 %v793_v11  ;;  %v1361_v19 = vunpack.c.l.s8.bf16 %v857_v2  ;;  %v841_v20 = vld [vmem:[#allocation10 + $0x760] sm:$0xff] }
 0x24d   :  { %1986 = vmatprep.subr.bf16.mxu1 %v1250_v42  ;;  %v3507_v21 = vadd.f32 %v2607_v3, %v2606_v29  ;;  %v1226_v36 = vunpack.c.h.s8.bf16 %v786_v5  ;;  %v1354_v50 = vunpack.c.h.s8.bf16 %v850_v43  ;;  %v1225_v18 = vunpack.c.h.s8.bf16 %v785_v7  ;;  %v769_v62 = vld [vmem:[#allocation10 + $0x520] sm:$0xff] }
 0x24e   :  { %v1353_v58 = vunpack.c.h.s8.bf16 %v849_v59  ;;  %v1218_v25 = vunpack.c.l.s8.bf16 %v786_v5  ;;  %v1346_v55 = vunpack.c.l.s8.bf16 %v850_v43  ;;  %v1217_v12 = vunpack.c.l.s8.bf16 %v785_v7  ;;  %v833_v11 = vld [vmem:[#allocation10 + $0x720] sm:$0xff] }
 0x24f   :  { %1934 = vmatpush1.bf16.msra.mxu0 %v1121_v46  ;;  %v1345_v53 = vunpack.c.l.s8.bf16 %v849_v59  ;;  %v1210_v56 = vunpack.c.h.s8.bf16 %v778_v60  ;;  %v1338_v42 = vunpack.c.h.s8.bf16 %v842_v49  ;;  %v1209_v17 = vunpack.c.h.s8.bf16 %v777_v8  ;;  %v834_v46 = vld [vmem:[#allocation10 + $0x728] sm:$0xff] }
 0x250   :  { %1987 = vmatpush1.bf16.msra.mxu1 %v1249_v37  ;;  %1935 = vmatprep.subr.bf16.mxu0 %v1242_v23  ;;  %v1337_v54 = vunpack.c.h.s8.bf16 %v841_v20  ;;  %v1202_v27 = vunpack.c.l.s8.bf16 %v778_v60  ;;  %v1330_v34 = vunpack.c.l.s8.bf16 %v842_v49  ;;  %v1201_v37 = vunpack.c.l.s8.bf16 %v777_v8  ;;  %v628_v49 = vld [vmem:[#allocation10 + $0xb8] sm:$0xff] }
 0x251   :  { %1988 = vmatprep.subr.bf16.mxu1 %v1370_v31  ;;  %v1329_v3 = vunpack.c.l.s8.bf16 %v841_v20  ;;  %v1194_v6 = vunpack.c.h.s8.bf16 %v770_v51  ;;  %v1322_v23 = vunpack.c.h.s8.bf16 %v834_v46  ;;  %v1193_v32 = vunpack.c.h.s8.bf16 %v769_v62 }
 0x252   :  { %v1321_v31 = vunpack.c.h.s8.bf16 %v833_v11  ;;  %v1186_v2 = vunpack.c.l.s8.bf16 %v770_v51  ;;  %v1314_v29 = vunpack.c.l.s8.bf16 %v834_v46 }
 0x253   :  { %1936 = vmatpush2.bf16.msra.mxu0 %v1241_v16  ;;  %v636_v16 = vld [vmem:[#allocation10 + $0xf8] sm:$0xff] }
 0x254   :  { %1989 = vmatpush2.bf16.msra.mxu1 %v1369_v45  ;;  %1937 = vmatprep.subr.bf16.mxu0 %v1234_v40  ;;  %v700_v45 = vld [vmem:[#allocation10 + $0x2f8] sm:$0xff]  ;;  %v1185_v40 = vunpack.c.l.s8.bf16 %v769_v62  ;;  %v924_v5 = vunpack.c.h.s8.bf16 %v636_v16 }
 0x255   :  { %1990 = vmatprep.subr.bf16.mxu1 %v1362_v0  ;;  %v1313_v0 = vunpack.c.l.s8.bf16 %v833_v11  ;;  %v1052_v43 = vunpack.c.h.s8.bf16 %v700_v45  ;;  %v1044_v60 = vunpack.c.l.s8.bf16 %v700_v45  ;;  %v620_v45 = vld [vmem:[#allocation10 + $0x78] sm:$0xff] }
 0x257   :  { %1938 = vmatpush2.bf16.msra.mxu0 %v1233_v57  ;;  %v635_v57 = vld [vmem:[#allocation10 + $0xf0] sm:$0xff] }
 0x258   :  { %1991 = vmatpush2.bf16.msra.mxu1 %v1361_v19  ;;  %1939 = vmatprep.subr.bf16.mxu0 %v1226_v36  ;;  %v699_v19 = vld [vmem:[#allocation10 + $0x2f0] sm:$0xff] }
 0x259   :  { %1992 = vmatprep.subr.bf16.mxu1 %v1354_v50  ;;  %v923_v50 = vunpack.c.h.s8.bf16 %v635_v57 }
 0x25b   :  { %1940 = vmatpush2.bf16.msra.mxu0 %v1225_v18  ;;  %v1051_v18 = vunpack.c.h.s8.bf16 %v699_v19 }
 0x25c   :  { %1993 = vmatpush2.bf16.msra.mxu1 %v1353_v58  ;;  %1941 = vmatprep.subr.bf16.mxu0 %v1218_v25  ;;  %v916_v25 = vunpack.c.l.s8.bf16 %v636_v16 }
 0x25d   :  { %1994 = vmatprep.subr.bf16.mxu1 %v1346_v55 }
 0x25f   :  { %1942 = vmatpush2.bf16.msra.mxu0 %v1217_v12 }
 0x260   :  { %1995 = vmatpush2.bf16.msra.mxu1 %v1345_v53  ;;  %1943 = vmatprep.subr.bf16.mxu0 %v1210_v56  ;;  %v692_v56 = vld [vmem:[#allocation10 + $0x2b8] sm:$0xff] }
 0x261   :  { %1996 = vmatprep.subr.bf16.mxu1 %v1338_v42  ;;  %v915_v42 = vunpack.c.l.s8.bf16 %v635_v57  ;;  %v1036_v46 = vunpack.c.h.s8.bf16 %v692_v56  ;;  %v1028_v16 = vunpack.c.l.s8.bf16 %v692_v56  ;;  %v612_v56 = vld [vmem:[#allocation10 + $0x38] sm:$0xff] }
 0x263   :  { %1944 = vmatpush2.bf16.msra.mxu0 %v1209_v17  ;;  %v1043_v17 = vunpack.c.l.s8.bf16 %v699_v19 }
 0x264   :  { %1997 = vmatpush2.bf16.msra.mxu1 %v1337_v54  ;;  %1945 = vmatprep.subr.bf16.mxu0 %v1202_v27  ;;  %v908_v27 = vunpack.c.h.s8.bf16 %v628_v49 }
 0x265   :  { %1998 = vmatprep.subr.bf16.mxu1 %v1330_v34  ;;  %v627_v34 = vld [vmem:[#allocation10 + $0xb0] sm:$0xff] }
 0x266   :  { %v899_v57 = vunpack.c.l.s8.bf16 %v627_v34 }
 0x267   :  { %1946 = vmatpush2.bf16.msra.mxu0 %v1201_v37  ;;  %v691_v37 = vld [vmem:[#allocation10 + $0x2b0] sm:$0xff] }
 0x268   :  { %1999 = vmatpush2.bf16.msra.mxu1 %v1329_v3  ;;  %1947 = vmatprep.subr.bf16.mxu0 %v1194_v6 }
 0x269   :  { %2000 = vmatprep.subr.bf16.mxu1 %v1322_v23  ;;  %v907_v23 = vunpack.c.h.s8.bf16 %v627_v34 }
 0x26b   :  { %1948 = vmatpush2.bf16.msra.mxu0 %v1193_v32  ;;  %v1035_v32 = vunpack.c.h.s8.bf16 %v691_v37 }
 0x26c   :  { %2001 = vmatpush2.bf16.msra.mxu1 %v1321_v31  ;;  %1949 = vmatprep.subr.bf16.mxu0 %v1186_v2  ;;  %v900_v2 = vunpack.c.l.s8.bf16 %v628_v49  ;;  %v884_v49 = vunpack.c.l.s8.bf16 %v620_v45 }
 0x26d   :  { %2002 = vmatprep.subr.bf16.mxu1 %v1314_v29  ;;  %v1635_v36 = vpop.f32.mrf.mxu0 }
 0x26e   :  { %v1688_v7 = vpop.f32.mrf.mxu1 }
 0x26f   :  { %1950 = vmatpush2.bf16.msra.mxu0 %v1185_v40  ;;  %v3509_v59 = vadd.f32 %v1688_v7, %v1635_v36  ;;  %v1637_v58 = vpop.f32.mrf.mxu0  ;;  %v1027_v36 = vunpack.c.l.s8.bf16 %v691_v37 }
 0x270   :  { %2003 = vmatpush2.bf16.msra.mxu1 %v1313_v0  ;;  %2025 = vmatprep.subr.bf16.mxu0 %v924_v5  ;;  %v1690_v55 = vpop.f32.mrf.mxu1  ;;  %v684_v5 = vld [vmem:[#allocation10 + $0x278] sm:$0xff] }
 0x271   :  { %2078 = vmatprep.subr.bf16.mxu1 %v1052_v43  ;;  %v3514_v12 = vadd.f32 %v1690_v55, %v1637_v58  ;;  %v1639_v53 = vpop.f32.mrf.mxu0 }
 0x272   :  { %1952 = vmatmul.mubr.bf16.vlgmr.msra.gmra.mxu0 %v3292_v22  ;;  %v1692_v8 = vpop.f32.mrf.mxu1 }
 0x273   :  { %2005 = vmatmul.mubr.bf16.vlgmr.msra.gmra.mxu1 %v3297_v47  ;;  %1961 = vmatprep.mubr.bf16.mxu0 %v3299_v41  ;;  %v3517_v20 = vadd.f32 %v1692_v8, %v1639_v53  ;;  %v1641_v54 = vpop.f32.mrf.mxu0  ;;  %v1012_v53 = vunpack.c.l.s8.bf16 %v684_v5  ;;  %v676_v8 = vld [vmem:[#allocation10 + $0x238] sm:$0xff] }
 0x274   :  { %2014 = vmatprep.mubr.bf16.mxu1 %v3301_v39  ;;  %2026 = vmatpush1.bf16.msra.mxu0 %v923_v50  ;;  %v1694_v51 = vpop.f32.mrf.mxu1  ;;  %v892_v50 = vunpack.c.h.s8.bf16 %v620_v45  ;;  %v1004_v34 = vunpack.c.h.s8.bf16 %v676_v8 }
 0x275   :  { %2079 = vmatpush1.bf16.msra.mxu1 %v1051_v18  ;;  %2027 = vmatprep.subr.bf16.mxu0 %v916_v25  ;;  %v3519_v3 = vadd.f32 %v1694_v51, %v1641_v54  ;;  %v1645_v6 = vpop.f32.mrf.mxu0  ;;  %v619_v18 = vld [vmem:[#allocation10 + $0x70] sm:$0xff]  ;;  %v876_v54 = vunpack.c.h.s8.bf16 %v612_v56 }
 0x276   :  { %2080 = vmatprep.subr.bf16.mxu1 %v1044_v60  ;;  %v1698_v62 = vpop.f32.mrf.mxu1  ;;  %v683_v25 = vld [vmem:[#allocation10 + $0x270] sm:$0xff]  ;;  %v891_v60 = vunpack.c.h.s8.bf16 %v619_v18 }
 0x277   :  { %v3521_v11 = vadd.f32 %v1698_v62, %v1645_v6  ;;  %v1647_v31 = vpop.f32.mrf.mxu0  ;;  %v675_v51 = vld [vmem:[#allocation10 + $0x230] sm:$0xff]  ;;  %v868_v6 = vunpack.c.l.s8.bf16 %v612_v56  ;;  %v996_v62 = vunpack.c.l.s8.bf16 %v676_v8 }
 0x278   :  { %2028 = vmatpush1.bf16.msra.mxu0 %v915_v42  ;;  %v1700_v29 = vpop.f32.mrf.mxu1  ;;  %v883_v42 = vunpack.c.l.s8.bf16 %v619_v18  ;;  %v1003_v37 = vunpack.c.h.s8.bf16 %v675_v51 }
 0x279   :  { %2081 = vmatpush1.bf16.msra.mxu1 %v1043_v17  ;;  %2029 = vmatprep.subr.bf16.mxu0 %v908_v27  ;;  %v3526_v40 = vadd.f32 %v1700_v29, %v1647_v31  ;;  %v1649_v0 = vpop.f32.mrf.mxu0  ;;  %v1011_v17 = vunpack.c.l.s8.bf16 %v683_v25  ;;  %v611_v27 = vld [vmem:[#allocation10 + $0x30] sm:$0xff] }
 0x27a   :  { %1962 = vmatmul.mubr.bf16.gmra.mxu0 %v3307_v33  ;;  %2082 = vmatprep.subr.bf16.mxu1 %v1036_v46  ;;  %v1702_v43 = vpop.f32.mrf.mxu1  ;;  %v875_v46 = vunpack.c.h.s8.bf16 %v611_v27  ;;  %v867_v31 = vunpack.c.l.s8.bf16 %v611_v27 }
 0x27b   :  { %2015 = vmatmul.mubr.bf16.gmra.mxu1 %v3310_v63  ;;  %2057 = vmatprep.mubr.bf16.mxu0 %v3102_v10  ;;  %v3529_v19 = vadd.f32 %v1702_v43, %v1649_v0  ;;  %v1651_v7 = vpop.f32.mrf.mxu0  ;;  %v1020_v10 = vunpack.c.h.s8.bf16 %v684_v5  ;;  %v731_v0 = vld [vmem:[#allocation10 + $0x3f0] sm:$0xff] }
 0x27c   :  { %2030 = vmatpush1.bf16.msra.mxu0 %v907_v23  ;;  %2110 = vmatprep.mubr.bf16.mxu1 %v3107_v28  ;;  %v1704_v58 = vpop.f32.mrf.mxu1  ;;  %v1019_v28 = vunpack.c.h.s8.bf16 %v683_v25  ;;  %v668_v23 = vld [vmem:[#allocation10 + $0x1f8] sm:$0xff]  ;;  %v1115_v43 = vunpack.c.h.s8.bf16 %v731_v0  ;;  %v659_v25 = vld [vmem:[#allocation10 + $0x1b0] sm:$0xff] }
 0x27d   :  { %2083 = vmatpush1.bf16.msra.mxu1 %v1035_v32  ;;  %2031 = vmatprep.subr.bf16.mxu0 %v900_v2  ;;  %v3531_v55 = vadd.f32 %v1704_v58, %v1651_v7  ;;  %v732_v32 = vld [vmem:[#allocation10 + $0x3f8] sm:$0xff]  ;;  %v995_v2 = vunpack.c.l.s8.bf16 %v675_v51  ;;  %v988_v29 = vunpack.c.h.s8.bf16 %v668_v23  ;;  %v1107_v58 = vunpack.c.l.s8.bf16 %v731_v0  ;;  %v651_v51 = vld [vmem:[#allocation10 + $0x170] sm:$0xff] }
 0x27e   :  { %2084 = vmatprep.subr.bf16.mxu1 %v1028_v16  ;;  %v667_v16 = vld [vmem:[#allocation10 + $0x1f0] sm:$0xff]  ;;  %v1116_v45 = vunpack.c.h.s8.bf16 %v732_v32  ;;  %v660_v7 = vld [vmem:[#allocation10 + $0x1b8] sm:$0xff] }
 0x27f   :  { %v987_v5 = vunpack.c.h.s8.bf16 %v667_v16  ;;  %v979_v18 = vunpack.c.l.s8.bf16 %v667_v16  ;;  %v964_v56 = vunpack.c.l.s8.bf16 %v660_v7  ;;  %v643_v0 = vld [vmem:[#allocation10 + $0x130] sm:$0xff] }
 0x280   :  { %2032 = vmatpush1.bf16.msra.mxu0 %v899_v57  ;;  %v980_v57 = vunpack.c.l.s8.bf16 %v668_v23 }
 0x281   :  { %2085 = vmatpush1.bf16.msra.mxu1 %v1027_v36  ;;  %2033 = vmatprep.subr.bf16.mxu0 %v892_v50  ;;  %v1108_v36 = vunpack.c.l.s8.bf16 %v732_v32  ;;  %v724_v50 = vld [vmem:[#allocation10 + $0x3b8] sm:$0xff] }
 0x282   :  { %2086 = vmatprep.subr.bf16.mxu1 %v1020_v10  ;;  %v972_v10 = vunpack.c.h.s8.bf16 %v660_v7  ;;  %v1092_v8 = vunpack.c.l.s8.bf16 %v724_v50 }
 0x284   :  { %2034 = vmatpush1.bf16.msra.mxu0 %v891_v60  ;;  %v1100_v60 = vunpack.c.h.s8.bf16 %v724_v50 }
 0x285   :  { %2087 = vmatpush1.bf16.msra.mxu1 %v1019_v28  ;;  %2035 = vmatprep.subr.bf16.mxu0 %v884_v49  ;;  %v723_v28 = vld [vmem:[#allocation10 + $0x3b0] sm:$0xff]  ;;  %v971_v49 = vunpack.c.h.s8.bf16 %v659_v25 }
 0x286   :  { %2088 = vmatprep.subr.bf16.mxu1 %v1012_v53  ;;  %v1099_v53 = vunpack.c.h.s8.bf16 %v723_v28  ;;  %v1091_v27 = vunpack.c.l.s8.bf16 %v723_v28 }
 0x288   :  { %2036 = vmatpush1.bf16.msra.mxu0 %v883_v42  ;;  %v652_v42 = vld [vmem:[#allocation10 + $0x178] sm:$0xff] }
 0x289   :  { %2089 = vmatpush1.bf16.msra.mxu1 %v1011_v17  ;;  %2037 = vmatprep.subr.bf16.mxu0 %v876_v54  ;;  %v716_v17 = vld [vmem:[#allocation10 + $0x378] sm:$0xff]  ;;  %v963_v54 = vunpack.c.l.s8.bf16 %v659_v25  ;;  %v948_v23 = vunpack.c.l.s8.bf16 %v652_v42 }
 0x28a   :  { %2090 = vmatprep.subr.bf16.mxu1 %v1004_v34  ;;  %v956_v34 = vunpack.c.h.s8.bf16 %v652_v42  ;;  %v1076_v32 = vunpack.c.l.s8.bf16 %v716_v17  ;;  %v2529_v42 = vrot.slane %v3357_v52, %v3178_v61 }
 0x28c   :  { %2038 = vmatpush1.bf16.msra.mxu0 %v875_v46  ;;  %v1084_v46 = vunpack.c.h.s8.bf16 %v716_v17 }
 0x28d   :  { %2091 = vmatpush1.bf16.msra.mxu1 %v1003_v37  ;;  %2039 = vmatprep.subr.bf16.mxu0 %v868_v6  ;;  %v715_v37 = vld [vmem:[#allocation10 + $0x370] sm:$0xff]  ;;  %v955_v6 = vunpack.c.h.s8.bf16 %v651_v51 }
 0x28e   :  { %2092 = vmatprep.subr.bf16.mxu1 %v996_v62  ;;  %v1083_v62 = vunpack.c.h.s8.bf16 %v715_v37  ;;  %v1075_v16 = vunpack.c.l.s8.bf16 %v715_v37  ;;  %v3555_v37 = vld [vmem:[#allocation10 + $0x6b8] sm:$0xff] }
 0x290   :  { %2040 = vmatpush1.bf16.msra.mxu0 %v867_v31  ;;  %v644_v31 = vld [vmem:[#allocation10 + $0x138] sm:$0xff] }
 0x291   :  { %2093 = vmatpush1.bf16.msra.mxu1 %v995_v2  ;;  %2041 = vmatprep.subr.bf16.mxu0 %v988_v29  ;;  %v708_v2 = vld [vmem:[#allocation10 + $0x338] sm:$0xff]  ;;  %v947_v29 = vunpack.c.l.s8.bf16 %v651_v51  ;;  %v932_v7 = vunpack.c.l.s8.bf16 %v644_v31 }
 0x292   :  { %2094 = vmatprep.subr.bf16.mxu1 %v1116_v45  ;;  %v940_v45 = vunpack.c.h.s8.bf16 %v644_v31  ;;  %v1060_v50 = vunpack.c.l.s8.bf16 %v708_v2 }
 0x294   :  { %2042 = vmatpush2.bf16.msra.mxu0 %v987_v5  ;;  %v1068_v5 = vunpack.c.h.s8.bf16 %v708_v2  ;;  %v3561_v2 = vld [vmem:[#allocation10 + $0x4b0] sm:$0xff] }
 0x295   :  { %2095 = vmatpush2.bf16.msra.mxu1 %v1115_v43  ;;  %2043 = vmatprep.subr.bf16.mxu0 %v980_v57  ;;  %v707_v43 = vld [vmem:[#allocation10 + $0x330] sm:$0xff]  ;;  %v939_v57 = vunpack.c.h.s8.bf16 %v643_v0 }
 0x296   :  { %2096 = vmatprep.subr.bf16.mxu1 %v1108_v36  ;;  %v1067_v36 = vunpack.c.h.s8.bf16 %v707_v43  ;;  %v1059_v25 = vunpack.c.l.s8.bf16 %v707_v43 }
 0x298   :  { %2044 = vmatpush2.bf16.msra.mxu0 %v979_v18  ;;  %v764_v18 = vld [vmem:[#allocation10 + $0x4f8] sm:$0xff] }
 0x299   :  { %2097 = vmatpush2.bf16.msra.mxu1 %v1107_v58  ;;  %2045 = vmatprep.subr.bf16.mxu0 %v972_v10  ;;  %v3533_v58 = vld [vmem:[#allocation10 + $0x6f8] sm:$0xff]  ;;  %v931_v10 = vunpack.c.l.s8.bf16 %v643_v0  ;;  %v3919_v0 = vld [vmem:[#allocation21_spill] sm:$0xff] }
 0x29a   :  { %2098 = vmatprep.subr.bf16.mxu1 %v1100_v60  ;;  %v1180_v60 = vunpack.c.h.s8.bf16 %v764_v18  ;;  %v1308_v28 = vunpack.c.h.s8.bf16 %v3533_v58 }
 0x29c   :  { %2046 = vmatpush2.bf16.msra.mxu0 %v971_v49  ;;  %v3536_v49 = vld [vmem:[#allocation10 + $0x4f0] sm:$0xff] }
 0x29d   :  { %2099 = vmatpush2.bf16.msra.mxu1 %v1099_v53  ;;  %2047 = vmatprep.subr.bf16.mxu0 %v964_v56  ;;  %v3538_v53 = vld [vmem:[#allocation10 + $0x6f0] sm:$0xff] }
 0x29e   :  { %2100 = vmatprep.subr.bf16.mxu1 %v1092_v8  ;;  %v3542_v8 = vrot.slane %v3353_v14, %v3010_v15  ;;  %v1307_v51 = vunpack.c.h.s8.bf16 %v3538_v53  ;;  %v1299_v43 = vunpack.c.l.s8.bf16 %v3538_v53 }
 0x2a0   :  { %2048 = vmatpush2.bf16.msra.mxu0 %v963_v54 }
 0x2a1   :  { %2101 = vmatpush2.bf16.msra.mxu1 %v1091_v27  ;;  %2049 = vmatprep.subr.bf16.mxu0 %v956_v34  ;;  %v3549_v27 = vrot.slane %v3355_v38, %v3010_v15  ;;  %v1179_v34 = vunpack.c.h.s8.bf16 %v3536_v49 }
 0x2a2   :  { %2102 = vmatprep.subr.bf16.mxu1 %v1084_v46  ;;  %v3553_v46 = vld [vmem:[#allocation10 + $0x4b8] sm:$0xff] }
 0x2a4   :  { %2050 = vmatpush2.bf16.msra.mxu0 %v955_v6 }
 0x2a5   :  { %2103 = vmatpush2.bf16.msra.mxu1 %v1083_v62  ;;  %2051 = vmatprep.subr.bf16.mxu0 %v948_v23  ;;  %v1172_v62 = vunpack.c.l.s8.bf16 %v764_v18  ;;  %v1300_v23 = vunpack.c.l.s8.bf16 %v3533_v58  ;;  %v3587_v58 = vld [vmem:[#allocation10 + $0x478] sm:$0xff] }
 0x2a6   :  { %2104 = vmatprep.subr.bf16.mxu1 %v1076_v32  ;;  %v3918_v32 = vld [vmem:[#allocation27_spill] sm:$0xff] }
 0x2a7   :  { %v2533_v31 = vrot.slane %v3357_v52, %v3918_v32 }
 0x2a8   :  { %2052 = vmatpush2.bf16.msra.mxu0 %v947_v29 }
 0x2a9   :  { %2105 = vmatpush2.bf16.msra.mxu1 %v1075_v16  ;;  %2053 = vmatprep.subr.bf16.mxu0 %v940_v45 }
 0x2aa   :  { %2106 = vmatprep.subr.bf16.mxu1 %v1068_v5  ;;  %v3567_v5 = vrot.slane %v3353_v14, %v3919_v0  ;;  %v1292_v14 = vunpack.c.h.s8.bf16 %v3555_v37 }
 0x2ac   :  { %2054 = vmatpush2.bf16.msra.mxu0 %v939_v57  ;;  %v3570_v57 = vld [vmem:[#allocation10 + $0x6b0] sm:$0xff] }
 0x2ad   :  { %2107 = vmatpush2.bf16.msra.mxu1 %v1067_v36  ;;  %2055 = vmatprep.subr.bf16.mxu0 %v932_v7  ;;  %v3573_v36 = vrot.slane %v2529_v42, %v3005_v13 }
 0x2ae   :  { %2108 = vmatprep.subr.bf16.mxu1 %v1060_v50  ;;  %v1741_v56 = vpop.f32.mrf.mxu0 }
 0x2af   :  { %v1742_v17 = vadd.f32 %v1741_v56, %v3509_v59  ;;  %v1794_v54 = vpop.f32.mrf.mxu1  ;;  %v1171_v59 = vunpack.c.l.s8.bf16 %v3536_v49 }
 0x2b0   :  { %2056 = vmatpush2.bf16.msra.mxu0 %v931_v10  ;;  %v1743_v6 = vpop.f32.mrf.mxu0 }
 0x2b1   :  { %2109 = vmatpush2.bf16.msra.mxu1 %v1059_v25  ;;  %2131 = vmatprep.subr.bf16.mxu0 %v1180_v60  ;;  %v1795_v29 = vadd.f32 %v1794_v54, %v1742_v17  ;;  %v1744_v16 = vadd.f32 %v1743_v6, %v3514_v12  ;;  %v1796_v45 = vpop.f32.mrf.mxu1  ;;  %v1164_v12 = vunpack.c.h.s8.bf16 %v3553_v46  ;;  %v3592_v25 = vrot.slane %v2533_v31, %v3005_v13  ;;  %v3602_v54 = vld [vmem:[#allocation10 + $0x670] sm:$0xff] }
 0x2b2   :  { %2184 = vmatprep.subr.bf16.mxu1 %v1308_v28  ;;  %v1745_v52 = vpop.f32.mrf.mxu0  ;;  %v1291_v60 = vunpack.c.h.s8.bf16 %v3570_v57  ;;  %v1284_v28 = vunpack.c.l.s8.bf16 %v3555_v37  ;;  %v1148_v37 = vunpack.c.h.s8.bf16 %v3587_v58 }
 0x2b3   :  { %2058 = vmatmul.mubr.bf16.vlgmr.msra.gmra.mxu0 %v3095_v1  ;;  %v3579_v1 = vrot.slane %v3355_v38, %v3919_v0  ;;  %v2281_v7 = vmul.f32 %v3542_v8, %v1795_v29  ;;  %v1797_v50 = vadd.f32 %v1796_v45, %v1744_v16  ;;  %v1746_v18 = vadd.f32 %v1745_v52, %v3517_v20  ;;  %v3589_v38 = vld [vmem:[#allocation10 + $0x678] sm:$0xff]  ;;  %v3597_v20 = vld [vmem:[#allocation10 + $0x470] sm:$0xff] }
 0x2b4   :  { %2111 = vmatmul.mubr.bf16.vlgmr.msra.gmra.mxu1 %v3100_v9  ;;  %2067 = vmatprep.mubr.bf16.mxu0 %v3150_v24  ;;  %v1798_v9 = vpop.f32.mrf.mxu1  ;;  %v1163_v24 = vunpack.c.h.s8.bf16 %v3561_v2  ;;  %v1747_v10 = vpop.f32.mrf.mxu0  ;;  %v1276_v6 = vunpack.c.h.s8.bf16 %v3589_v38  ;;  %v1147_v29 = vunpack.c.h.s8.bf16 %v3597_v20  ;;  %v1275_v0 = vunpack.c.h.s8.bf16 %v3602_v54 }
 0x2b5   :  { %2120 = vmatprep.mubr.bf16.mxu1 %v3152_v48  ;;  %2132 = vmatpush1.bf16.msra.mxu0 %v1179_v34  ;;  %v1156_v48 = vunpack.c.l.s8.bf16 %v3553_v46  ;;  %v2355_v49 = vadd.f32 %v3549_v27, %v2281_v7  ;;  %v2282_v53 = vmul.f32 %v3567_v5, %v1797_v50  ;;  %v1799_v56 = vadd.f32 %v1798_v9, %v1746_v18  ;;  %v3616_v7 = vld [vmem:[#allocation10 + $0x438] sm:$0xff] }
 0x2b6   :  { %2185 = vmatpush1.bf16.msra.mxu1 %v1307_v51  ;;  %2133 = vmatprep.subr.bf16.mxu0 %v1172_v62  ;;  %v1748_v42 = vadd.f32 %v1747_v10, %v3519_v3  ;;  %v1800_v17 = vpop.f32.mrf.mxu1  ;;  %v1751_v34 = vpop.f32.mrf.mxu0  ;;  %v1155_v51 = vunpack.c.l.s8.bf16 %v3561_v2  ;;  %v1283_v46 = vunpack.c.l.s8.bf16 %v3570_v57  ;;  %v1140_v52 = vunpack.c.l.s8.bf16 %v3587_v58  ;;  %v3920_v10 = vld [vmem:[#allocation24_spill] sm:$0xff] }
 0x2b7   :  { %2186 = vmatprep.subr.bf16.mxu1 %v1300_v23  ;;  %v2419_v62 = vmin.f32 %v2355_v49, 0.0  ;;  %v3609_v31 = vadd.f32 %v3579_v1, %v2282_v53  ;;  %v2289_v23 = vmul.f32 %v3542_v8, %v1799_v56  ;;  %v1752_v2 = vadd.f32 %v1751_v34, %v3521_v11  ;;  %v3921_v53 = vld [vmem:[#allocation25_spill] sm:$0xff] }
 0x2b8   :  { %v1804_v3 = vpop.f32.mrf.mxu1  ;;  %v1801_v16 = vadd.f32 %v1800_v17, %v1748_v42  ;;  %v1753_v45 = vpop.f32.mrf.mxu0  ;;  %v1268_v11 = vunpack.c.l.s8.bf16 %v3589_v38  ;;  %v2387_v34 = vmax.f32 %v2355_v49, 0.0  ;;  %v3924_v38 = vunpack.c.l.s8.bf16 %v3602_v54  ;;  %v860_v54 = vld [vmem:[#allocation10 + $0x7f8] sm:$0xff] }
 0x2b9   :  { %2134 = vmatpush1.bf16.msra.mxu0 %v1171_v59  ;;  %v2451_v50 = vmul.f32 %v2419_v62, %v3042_v26  ;;  %v2420_v18 = vmin.f32 %v3609_v31, 0.0  ;;  %v2363_v59 = vadd.f32 %v3549_v27, %v2289_v23  ;;  %v1805_v9 = vadd.f32 %v1804_v3, %v1752_v2 }
 0x2ba   :  { %2187 = vmatpush1.bf16.msra.mxu1 %v1299_v43  ;;  %2135 = vmatprep.subr.bf16.mxu0 %v1164_v12  ;;  %v1806_v43 = vpop.f32.mrf.mxu1  ;;  %v2290_v12 = vmul.f32 %v3567_v5, %v1801_v16  ;;  %v1754_v56 = vadd.f32 %v1753_v45, %v3526_v40  ;;  %v1755_v42 = vpop.f32.mrf.mxu0  ;;  %v3631_v16 = vld [vmem:[#allocation10 + $0x638] sm:$0xff] }
 0x2bb   :  { %2068 = vmatmul.mubr.bf16.gmra.mxu0 %v3148_v35  ;;  %2188 = vmatprep.subr.bf16.mxu1 %v1292_v14  ;;  %v2427_v62 = vmin.f32 %v2363_v59, 0.0  ;;  %v3922_v35 = vld [vmem:[#allocation26_spill] sm:$0xff]  ;;  %v2297_v2 = vmul.f32 %v3542_v8, %v1805_v9  ;;  %v1756_v45 = vadd.f32 %v1755_v42, %v3529_v19  ;;  %v3649_v42 = vld [vmem:[#allocation10 + $0x430] sm:$0xff] }
 0x2bc   :  { %2121 = vmatmul.mubr.bf16.gmra.mxu1 %v3920_v10  ;;  %2163 = vmatprep.mubr.bf16.mxu0 %v3921_v53  ;;  %v2364_v3 = vadd.f32 %v3579_v1, %v2290_v12  ;;  %v1807_v40 = vadd.f32 %v1806_v43, %v1754_v56  ;;  %v1808_v10 = vpop.f32.mrf.mxu1  ;;  %v1757_v49 = vpop.f32.mrf.mxu0  ;;  %v2483_v53 = vadd.f32 %v2451_v50, %v2387_v34  ;;  %v2388_v43 = vmax.f32 %v3609_v31, 0.0 }
 0x2bd   :  { %2136 = vmatpush1.bf16.msra.mxu0 %v1163_v24  ;;  %2216 = vmatprep.mubr.bf16.mxu1 %v3922_v35  ;;  %v2452_v24 = vmul.f32 %v2420_v18, %v3042_v26  ;;  %v2395_v35 = vmax.f32 %v2363_v59, 0.0  ;;  %v2459_v14 = vmul.f32 %v2427_v62, %v3042_v26  ;;  %v2371_v17 = vadd.f32 %v3549_v27, %v2297_v2  ;;  %v803_v62 = vld [vmem:[#allocation10 + $0x630] sm:$0xff] }
 0x2be   :  { %2189 = vmatpush1.bf16.msra.mxu1 %v1291_v60  ;;  %2137 = vmatprep.subr.bf16.mxu0 %v1156_v48  ;;  %v2428_v23 = vmin.f32 %v2364_v3, 0.0  ;;  %v2298_v12 = vmul.f32 %v3567_v5, %v1807_v40  ;;  %v1260_v60 = vunpack.c.h.s8.bf16 %v3631_v16  ;;  %v1809_v9 = vadd.f32 %v1808_v10, %v1756_v45 }
 0x2bf   :  { %2190 = vmatprep.subr.bf16.mxu1 %v1284_v28  ;;  %v2491_v19 = vadd.f32 %v2459_v14, %v2395_v35  ;;  %v1758_v50 = vadd.f32 %v1757_v49, %v3531_v55  ;;  %v2396_v18 = vmax.f32 %v2364_v3, 0.0  ;;  %v2435_v56 = vmin.f32 %v2371_v17, 0.0  ;;  %v1810_v28 = vpop.f32.mrf.mxu1 }
 0x2c0   :  { %v2460_v59 = vmul.f32 %v2428_v23, %v3042_v26  ;;  %v2372_v48 = vadd.f32 %v3579_v1, %v2298_v12  ;;  %v2592_v31 = vmul.f32 %v3573_v36, %v2483_v53  ;;  %v2305_v55 = vmul.f32 %v3542_v8, %v1809_v9 }
 0x2c1   :  { %2138 = vmatpush1.bf16.msra.mxu0 %v1155_v51  ;;  %v2484_v51 = vadd.f32 %v2452_v24, %v2388_v43  ;;  %v1811_v34 = vadd.f32 %v1810_v28, %v1758_v50  ;;  %v2403_v23 = vmax.f32 %v2371_v17, 0.0  ;;  %v2467_v57 = vmul.f32 %v2435_v56, %v3042_v26 }
 0x2c2   :  { %2191 = vmatpush1.bf16.msra.mxu1 %v1283_v46  ;;  %2139 = vmatprep.subr.bf16.mxu0 %v1148_v37  ;;  %v2492_v14 = vadd.f32 %v2460_v59, %v2396_v18  ;;  %v2436_v46 = vmin.f32 %v2372_v48, 0.0  ;;  %v2600_v3 = vmul.f32 %v3573_v36, %v2491_v19  ;;  %v2379_v37 = vadd.f32 %v3549_v27, %v2305_v55  ;;  %v859_v55 = vld [vmem:[#allocation10 + $0x7f0] sm:$0xff] }
 0x2c3   :  { %2192 = vmatprep.subr.bf16.mxu1 %v1276_v6  ;;  %v2306_v2 = vmul.f32 %v3567_v5, %v1811_v34  ;;  %v1131_v8 = vunpack.c.h.s8.bf16 %v3649_v42  ;;  %v2499_v40 = vadd.f32 %v2467_v57, %v2403_v23  ;;  %v2404_v45 = vmax.f32 %v2372_v48, 0.0 }
 0x2c4   :  { %v2468_v6 = vmul.f32 %v2436_v46, %v3042_v26  ;;  %v1259_v17 = vunpack.c.h.s8.bf16 %v803_v62  ;;  %v2601_v27 = vmul.f32 %v3592_v25, %v2492_v14  ;;  %v2443_v10 = vmin.f32 %v2379_v37, 0.0  ;;  %v852_v46 = vld [vmem:[#allocation10 + $0x7b8] sm:$0xff] }
 0x2c5   :  { %2140 = vmatpush1.bf16.msra.mxu0 %v1147_v29  ;;  %v2380_v5 = vadd.f32 %v3579_v1, %v2306_v2  ;;  %v1124_v29 = vunpack.c.l.s8.bf16 %v3616_v7  ;;  %v2608_v49 = vmul.f32 %v3573_v36, %v2499_v40  ;;  %v2593_v24 = vmul.f32 %v3592_v25, %v2484_v51  ;;  %v787_v2 = vld [vmem:[#allocation10 + $0x5b0] sm:$0xff] }
 0x2c6   :  { %2193 = vmatpush1.bf16.msra.mxu1 %v1275_v0  ;;  %2141 = vmatprep.subr.bf16.mxu0 %v1140_v52  ;;  %v2500_v53 = vadd.f32 %v2468_v6, %v2404_v45  ;;  %v2623_v0 = vadd.f32 %v3505_v4, %v2592_v31  ;;  %v2411_v58 = vmax.f32 %v2379_v37, 0.0  ;;  %v2475_v52 = vmul.f32 %v2443_v10, %v3042_v26  ;;  %v795_v31 = vld [vmem:[#allocation10 + $0x5f0] sm:$0xff]  ;;  %v844_v10 = vld [vmem:[#allocation10 + $0x778] sm:$0xff] }
 0x2c7   :  { %2194 = vmatprep.subr.bf16.mxu1 %v1268_v11  ;;  %v2444_v35 = vmin.f32 %v2380_v5, 0.0  ;;  %v3923_v12 = vunpack.c.l.s8.bf16 %v3597_v20  ;;  %v2632_v1 = vadd.f32 %v3484_v30, %v2600_v3  ;;  %v3925_v11 = vunpack.c.h.s8.bf16 %v3616_v7  ;;  %v796_v30 = vld [vmem:[#allocation10 + $0x5f8] sm:$0xff] }
 0x2c8   :  { %v1252_v43 = vunpack.c.l.s8.bf16 %v3631_v16  ;;  %v3684_v19 = vadd.f32 %v2623_v0, %v2593_v24  ;;  %v2609_v4 = vmul.f32 %v3592_v25, %v2500_v53  ;;  %v2641_v9 = vadd.f32 %v3507_v21, %v2608_v49  ;;  %v779_v53 = vld [vmem:[#allocation10 + $0x570] sm:$0xff] }
 0x2c9   :  { %2142 = vmatpush1.bf16.msra.mxu0 %v3923_v12  ;;  %v2507_v50 = vadd.f32 %v2475_v52, %v2411_v58  ;;  %v2412_v18 = vmax.f32 %v2380_v5, 0.0  ;;  %v2476_v20 = vmul.f32 %v2444_v35, %v3042_v26  ;;  %v3689_v59 = vadd.f32 %v2632_v1, %v2601_v27  ;;  %v780_v27 = vld [vmem:[#allocation10 + $0x578] sm:$0xff]  ;;  %v843_v0 = vld [vmem:[#allocation10 + $0x770] sm:$0xff] }
 0x2ca   :  { %2195 = vmatpush1.bf16.msra.mxu1 %v3924_v38  ;;  %2143 = vmatprep.subr.bf16.mxu0 %v3925_v11  ;;  %v3691_v56 = vadd.f32 %v2641_v9, %v2609_v4  ;;  %v1123_v48 = vunpack.c.l.s8.bf16 %v3649_v42  ;;  %v1251_v21 = vunpack.c.l.s8.bf16 %v803_v62  ;;  %v1244_v28 = vunpack.c.h.s8.bf16 %v796_v30  ;;  %v788_v62 = vld [vmem:[#allocation10 + $0x5b8] sm:$0xff]  ;;  %v771_v9 = vld [vmem:[#allocation10 + $0x530] sm:$0xff] }
 0x2cb   :  { %2196 = vmatprep.subr.bf16.mxu1 %v1260_v60  ;;  %v2616_v7 = vmul.f32 %v3573_v36, %v2507_v50  ;;  %v2508_v16 = vadd.f32 %v2476_v20, %v2412_v18  ;;  %v1372_v60 = vunpack.c.h.s8.bf16 %v860_v54  ;;  %v1243_v14 = vunpack.c.h.s8.bf16 %v795_v31  ;;  %v772_v1 = vld [vmem:[#allocation10 + $0x538] sm:$0xff]  ;;  %v835_v18 = vld [vmem:[#allocation10 + $0x730] sm:$0xff] }
 0x2cc   :  { %v1371_v36 = vunpack.c.h.s8.bf16 %v859_v55  ;;  %v1236_v42 = vunpack.c.l.s8.bf16 %v796_v30  ;;  %v1364_v57 = vunpack.c.l.s8.bf16 %v860_v54  ;;  %v1235_v3 = vunpack.c.l.s8.bf16 %v795_v31  ;;  %v836_v38 = vld [vmem:[#allocation10 + $0x738] sm:$0xff] }
 0x2cd   :  { %2144 = vmatpush1.bf16.msra.mxu0 %v1131_v8  ;;  %v2617_v51 = vmul.f32 %v3592_v25, %v2508_v16  ;;  %v2650_v34 = vadd.f32 %v3503_v44, %v2616_v7  ;;  %v1363_v25 = vunpack.c.l.s8.bf16 %v859_v55  ;;  %v1228_v37 = vunpack.c.h.s8.bf16 %v788_v62  ;;  %v851_v8 = vld [vmem:[#allocation10 + $0x7b0] sm:$0xff] }
 0x2ce   :  { %2197 = vmatpush1.bf16.msra.mxu1 %v1259_v17  ;;  %2145 = vmatprep.subr.bf16.mxu0 %v1124_v29  ;;  %v1356_v44 = vunpack.c.h.s8.bf16 %v852_v46  ;;  %v1227_v40 = vunpack.c.h.s8.bf16 %v787_v2  ;;  %v1355_v45 = vunpack.c.h.s8.bf16 %v851_v8  ;;  %v1220_v6 = vunpack.c.l.s8.bf16 %v788_v62 }
 0x2cf   :  { %2198 = vmatprep.subr.bf16.mxu1 %v1252_v43  ;;  %v3697_v23 = vadd.f32 %v2650_v34, %v2617_v51  ;;  %v1348_v17 = vunpack.c.l.s8.bf16 %v852_v46  ;;  %v1219_v5 = vunpack.c.l.s8.bf16 %v787_v2  ;;  %v1347_v29 = vunpack.c.l.s8.bf16 %v851_v8 }
 0x2d0   :  { %v1212_v49 = vunpack.c.h.s8.bf16 %v780_v27  ;;  %v1340_v24 = vunpack.c.h.s8.bf16 %v844_v10  ;;  %v1211_v58 = vunpack.c.h.s8.bf16 %v779_v53  ;;  %v1339_v52 = vunpack.c.h.s8.bf16 %v843_v0 }
 0x2d1   :  { %2146 = vmatpush1.bf16.msra.mxu0 %v1123_v48  ;;  %v1204_v35 = vunpack.c.l.s8.bf16 %v780_v27  ;;  %v1332_v12 = vunpack.c.l.s8.bf16 %v844_v10  ;;  %v1203_v11 = vunpack.c.l.s8.bf16 %v779_v53  ;;  %v1331_v43 = vunpack.c.l.s8.bf16 %v843_v0 }
 0x2d2   :  { %2199 = vmatpush1.bf16.msra.mxu1 %v1251_v21  ;;  %2147 = vmatprep.subr.bf16.mxu0 %v1244_v28  ;;  %v1196_v4 = vunpack.c.h.s8.bf16 %v772_v1  ;;  %v1324_v50 = vunpack.c.h.s8.bf16 %v836_v38  ;;  %v1195_v20 = vunpack.c.h.s8.bf16 %v771_v9  ;;  %v1323_v30 = vunpack.c.h.s8.bf16 %v835_v18 }
 0x2d3   :  { %2200 = vmatprep.subr.bf16.mxu1 %v1372_v60  ;;  %v1188_v54 = vunpack.c.l.s8.bf16 %v772_v1  ;;  %v1316_v7 = vunpack.c.l.s8.bf16 %v836_v38  ;;  %v1187_v16 = vunpack.c.l.s8.bf16 %v771_v9  ;;  %v1315_v48 = vunpack.c.l.s8.bf16 %v835_v18 }
 0x2d5   :  { %2148 = vmatpush2.bf16.msra.mxu0 %v1243_v14 }
 0x2d6   :  { %2201 = vmatpush2.bf16.msra.mxu1 %v1371_v36  ;;  %2149 = vmatprep.subr.bf16.mxu0 %v1236_v42 }
 0x2d7   :  { %2202 = vmatprep.subr.bf16.mxu1 %v1364_v57 }
 0x2d9   :  { %2150 = vmatpush2.bf16.msra.mxu0 %v1235_v3 }
 0x2da   :  { %2203 = vmatpush2.bf16.msra.mxu1 %v1363_v25  ;;  %2151 = vmatprep.subr.bf16.mxu0 %v1228_v37 }
 0x2db   :  { %2204 = vmatprep.subr.bf16.mxu1 %v1356_v44 }
 0x2dd   :  { %2152 = vmatpush2.bf16.msra.mxu0 %v1227_v40 }
 0x2de   :  { %2205 = vmatpush2.bf16.msra.mxu1 %v1355_v45  ;;  %2153 = vmatprep.subr.bf16.mxu0 %v1220_v6 }
 0x2df   :  { %2206 = vmatprep.subr.bf16.mxu1 %v1348_v17 }
 0x2e1   :  { %2154 = vmatpush2.bf16.msra.mxu0 %v1219_v5 }
 0x2e2   :  { %2207 = vmatpush2.bf16.msra.mxu1 %v1347_v29  ;;  %2155 = vmatprep.subr.bf16.mxu0 %v1212_v49 }
 0x2e3   :  { %2208 = vmatprep.subr.bf16.mxu1 %v1340_v24 }
 0x2e5   :  { %2156 = vmatpush2.bf16.msra.mxu0 %v1211_v58 }
 0x2e6   :  { %2209 = vmatpush2.bf16.msra.mxu1 %v1339_v52  ;;  %2157 = vmatprep.subr.bf16.mxu0 %v1204_v35 }
 0x2e7   :  { %2210 = vmatprep.subr.bf16.mxu1 %v1332_v12 }
 0x2e9   :  { %2158 = vmatpush2.bf16.msra.mxu0 %v1203_v11 }
 0x2ea   :  { %2211 = vmatpush2.bf16.msra.mxu1 %v1331_v43  ;;  %2159 = vmatprep.subr.bf16.mxu0 %v1196_v4  ;;  %v3712_v43 = vld [vmem:[%s3889_s6] sm:$0xff] }
 0x2eb   :  { %2212 = vmatprep.subr.bf16.mxu1 %v1324_v50  ;;  %v2258_v4 = vrot.slane %v3712_v43, %v3178_v61 }
 0x2ed   :  { %2160 = vmatpush2.bf16.msra.mxu0 %v1195_v20 }
 0x2ee   :  { %2213 = vmatpush2.bf16.msra.mxu1 %v1323_v30  ;;  %2161 = vmatprep.subr.bf16.mxu0 %v1188_v54  ;;  %v3720_v30 = vld [vmem:[#allocation12] sm:$0xff] }
 0x2ef   :  { %2214 = vmatprep.subr.bf16.mxu1 %v1316_v7  ;;  %v1847_v21 = vpop.f32.mrf.mxu0  ;;  %v2332_v54 = vrot.slane %v3720_v30, %v3178_v61 }
 0x2f0   :  { %v1900_v28 = vpop.f32.mrf.mxu1 }
 0x2f1   :  { %2162 = vmatpush2.bf16.msra.mxu0 %v1187_v16  ;;  %v1849_v31 = vpop.f32.mrf.mxu0  ;;  %v1901_v10 = vadd.f32 %v1900_v28, %v1847_v21  ;;  %v3926_v16 = vld [vmem:[#allocation22_spill] sm:$0xff] }
 0x2f2   :  { %2215 = vmatpush2.bf16.msra.mxu1 %v1315_v48  ;;  %v1902_v51 = vpop.f32.mrf.mxu1  ;;  %v2262_v48 = vrot.slane %v3712_v43, %v3926_v16 }
 0x2f3   :  { %v1851_v60 = vpop.f32.mrf.mxu0  ;;  %v1903_v58 = vadd.f32 %v1902_v51, %v1849_v31 }
 0x2f4   :  { %2164 = vmatmul.mubr.bf16.vlgmr.msra.gmra.mxu0 %v3292_v22  ;;  %v1904_v55 = vpop.f32.mrf.mxu1 }
 0x2f5   :  { %2217 = vmatmul.mubr.bf16.vlgmr.msra.gmra.mxu1 %v3297_v47  ;;  %2173 = vmatprep.mubr.bf16.mxu0 %v3299_v41  ;;  %v1853_v34 = vpop.f32.mrf.mxu0  ;;  %v1905_v5 = vadd.f32 %v1904_v55, %v1851_v60 }
 0x2f6   :  { %2226 = vmatprep.mubr.bf16.mxu1 %v3301_v39  ;;  %v1906_v14 = vpop.f32.mrf.mxu1 }
 0x2f7   :  { %v1857_v36 = vpop.f32.mrf.mxu0  ;;  %v1907_v52 = vadd.f32 %v1906_v14, %v1853_v34 }
 0x2f8   :  { %v1910_v22 = vpop.f32.mrf.mxu1 }
 0x2f9   :  { %v1859_v42 = vpop.f32.mrf.mxu0  ;;  %v1911_v38 = vadd.f32 %v1910_v22, %v1857_v36 }
 0x2fa   :  { %v1912_v47 = vpop.f32.mrf.mxu1 }
 0x2fb   :  { %v1861_v57 = vpop.f32.mrf.mxu0  ;;  %v1913_v28 = vadd.f32 %v1912_v47, %v1859_v42 }
 0x2fc   :  { %2174 = vmatmul.mubr.bf16.gmra.mxu0 %v3307_v33  ;;  %v1914_v41 = vpop.f32.mrf.mxu1 }
 0x2fd   :  { %2227 = vmatmul.mubr.bf16.gmra.mxu1 %v3310_v63  ;;  %v1863_v62 = vpop.f32.mrf.mxu0  ;;  %v1915_v31 = vadd.f32 %v1914_v41, %v1861_v57 }
 0x2fe   :  { %v1916_v39 = vpop.f32.mrf.mxu1 }
 0x2ff   :  { %v1917_v14 = vadd.f32 %v1916_v39, %v1863_v62 }
 0x332   :  { %v1953_v46 = vpop.f32.mrf.mxu0 }
 0x333   :  { %v2006_v33 = vpop.f32.mrf.mxu1  ;;  %v1954_v53 = vadd.f32 %v1953_v46, %v1901_v10  ;;  %v2744_v10 = vld [vmem:[#allocation13] sm:$0xff] }
 0x334   :  { %v1955_v3 = vpop.f32.mrf.mxu0 }
 0x335   :  { %v2008_v63 = vpop.f32.mrf.mxu1  ;;  %v1956_v12 = vadd.f32 %v1955_v3, %v1903_v58  ;;  %v2007_v11 = vadd.f32 %v2006_v33, %v1954_v53  ;;  %v2336_v3 = vrot.slane %v3720_v30, %v3926_v16 }
 0x336   :  { %v1957_v25 = vpop.f32.mrf.mxu0 }
 0x337   :  { %v2010_v37 = vpop.f32.mrf.mxu1  ;;  %v1958_v24 = vadd.f32 %v1957_v25, %v1905_v5  ;;  %v2009_v7 = vadd.f32 %v2008_v63, %v1956_v12  ;;  %v2283_v51 = vmul.f32 %v2258_v4, %v2007_v11  ;;  %v3738_v5 = vunpack.c.h.bf16 %v2744_v10 }
 0x338   :  { %v1959_v2 = vpop.f32.mrf.mxu0 }
 0x339   :  { %v2012_v44 = vpop.f32.mrf.mxu1  ;;  %v1960_v1 = vadd.f32 %v1959_v2, %v1907_v52  ;;  %v2011_v9 = vadd.f32 %v2010_v37, %v1958_v24  ;;  %v2284_v33 = vmul.f32 %v2262_v48, %v2009_v7  ;;  %v2357_v25 = vadd.f32 %v2332_v54, %v2283_v51 }
 0x33a   :  { %v1963_v8 = vpop.f32.mrf.mxu0 }
 0x33b   :  { %v2016_v40 = vpop.f32.mrf.mxu1  ;;  %v1964_v20 = vadd.f32 %v1963_v8, %v1911_v38  ;;  %v2013_v21 = vadd.f32 %v2012_v44, %v1960_v1  ;;  %v2291_v60 = vmul.f32 %v2258_v4, %v2011_v9  ;;  %v2358_v8 = vadd.f32 %v2336_v3, %v2284_v33 }
 0x33c   :  { %v1965_v45 = vpop.f32.mrf.mxu0  ;;  %v2421_v39 = vmin.f32 %v2357_v25, 0.0  ;;  %v2389_v11 = vmax.f32 %v2357_v25, 0.0 }
 0x33d   :  { %v2018_v6 = vpop.f32.mrf.mxu1  ;;  %v2017_v36 = vadd.f32 %v2016_v40, %v1964_v20  ;;  %v1966_v22 = vadd.f32 %v1965_v45, %v1913_v28  ;;  %v2292_v63 = vmul.f32 %v2262_v48, %v2013_v21  ;;  %v2365_v37 = vadd.f32 %v2332_v54, %v2291_v60 }
 0x33e   :  { %v1967_v17 = vpop.f32.mrf.mxu0  ;;  %v2422_v52 = vmin.f32 %v2358_v8, 0.0  ;;  %v2541_v20 = vrot.slane %v3738_v5, %v3010_v15 }
 0x33f   :  { %v2020_v27 = vpop.f32.mrf.mxu1  ;;  %v1968_v46 = vadd.f32 %v1967_v17, %v1915_v31  ;;  %v2299_v57 = vmul.f32 %v2258_v4, %v2017_v36  ;;  %v2019_v41 = vadd.f32 %v2018_v6, %v1966_v22  ;;  %v2366_v62 = vadd.f32 %v2336_v3, %v2292_v63 }
 0x340   :  { %v1969_v29 = vpop.f32.mrf.mxu0  ;;  %v2429_v40 = vmin.f32 %v2365_v37, 0.0  ;;  %v2453_v6 = vmul.f32 %v2421_v39, %v3042_v26  ;;  %v2397_v7 = vmax.f32 %v2365_v37, 0.0  ;;  %v2454_v28 = vmul.f32 %v2422_v52, %v3042_v26 }
 0x341   :  { %v2022_v49 = vpop.f32.mrf.mxu1  ;;  %v1970_v2 = vadd.f32 %v1969_v29, %v1917_v14  ;;  %v2021_v44 = vadd.f32 %v2020_v27, %v1968_v46  ;;  %v2373_v29 = vadd.f32 %v2332_v54, %v2299_v57  ;;  %v2300_v24 = vmul.f32 %v2262_v48, %v2019_v41  ;;  %v3927_v57 = vld [vmem:[#allocation23_spill] sm:$0xff] }
 0x342   :  { %v2430_v12 = vmin.f32 %v2366_v62, 0.0  ;;  %v2461_v27 = vmul.f32 %v2429_v40, %v3042_v26  ;;  %v2390_v22 = vmax.f32 %v2358_v8, 0.0  ;;  %v2398_v46 = vmax.f32 %v2366_v62, 0.0 }
 0x343   :  { %v2023_v45 = vadd.f32 %v2022_v49, %v1970_v2  ;;  %v2307_v58 = vmul.f32 %v2258_v4, %v2021_v44  ;;  %v2537_v49 = vrot.slane %v3738_v5, %v3005_v13  ;;  %v2437_v4 = vmin.f32 %v2373_v29, 0.0 }
 0x344   :  { %v2374_v16 = vadd.f32 %v2336_v3, %v2300_v24  ;;  %v2462_v31 = vmul.f32 %v2430_v12, %v3042_v26  ;;  %v2493_v51 = vadd.f32 %v2461_v27, %v2397_v7  ;;  %v3762_v15 = vrot.slane %v2541_v20, %v3005_v13 }
 0x345   :  { %v2308_v1 = vmul.f32 %v2262_v48, %v2023_v45  ;;  %v2381_v21 = vadd.f32 %v2332_v54, %v2307_v58  ;;  %v2485_v48 = vadd.f32 %v2453_v6, %v2389_v11  ;;  %v3757_v36 = vrot.slane %v2537_v49, %v3005_v13 }
 0x346   :  { %v2469_v54 = vmul.f32 %v2437_v4, %v3042_v26  ;;  %v2438_v63 = vmin.f32 %v2374_v16, 0.0  ;;  %v3767_v37 = vrot.slane %v3712_v43, %v3918_v32  ;;  %v3771_v2 = vrot.slane %v3720_v30, %v3918_v32 }
 0x347   :  { %v2382_v60 = vadd.f32 %v2336_v3, %v2308_v1  ;;  %v2445_v25 = vmin.f32 %v2381_v21, 0.0  ;;  %v2494_v3 = vadd.f32 %v2462_v31, %v2398_v46  ;;  %v3775_v41 = vrot.slane %v3712_v43, %v3927_v57 }
 0x348   :  { %v2486_v44 = vadd.f32 %v2454_v28, %v2390_v22  ;;  %v2405_v8 = vmax.f32 %v2373_v29, 0.0  ;;  %v2594_v40 = vmul.f32 %v3757_v36, %v2485_v48  ;;  %v2602_v45 = vmul.f32 %v3757_v36, %v2493_v51 }
 0x349   :  { %v2446_v62 = vmin.f32 %v2382_v60, 0.0  ;;  %v3785_v58 = vrot.slane %v3720_v30, %v3927_v57  ;;  %v2545_v43 = vrot.slane %v3738_v5, %v3178_v61  ;;  %v2549_v29 = vrot.slane %v3738_v5, %v3918_v32 }
 0x34a   :  { %v2501_v52 = vadd.f32 %v2469_v54, %v2405_v8  ;;  %v2406_v12 = vmax.f32 %v2374_v16, 0.0  ;;  %v2470_v6 = vmul.f32 %v2438_v63, %v3042_v26  ;;  %v2477_v27 = vmul.f32 %v2445_v25, %v3042_v26 }
 0x34b   :  { %v2595_v30 = vmul.f32 %v3762_v15, %v2486_v44  ;;  %v2603_v11 = vmul.f32 %v3762_v15, %v2494_v3  ;;  %v2413_v61 = vmax.f32 %v2381_v21, 0.0  ;;  %v2478_v20 = vmul.f32 %v2446_v62, %v3042_v26 }
 0x34c   :  { %v2625_v5 = vadd.f32 %v3684_v19, %v2594_v40  ;;  %v2634_v7 = vadd.f32 %v3689_v59, %v2602_v45  ;;  %v2414_v48 = vmax.f32 %v2382_v60, 0.0  ;;  %v2502_v21 = vadd.f32 %v2470_v6, %v2406_v12 }
 0x34d   :  { %v2509_v31 = vadd.f32 %v2477_v27, %v2413_v61  ;;  %v2610_v22 = vmul.f32 %v3757_v36, %v2501_v52  ;;  %v3810_v25 = vrot.slane %v2549_v29, %v3005_v13 }
 0x34e   :  { %v2626_v3 = vadd.f32 %v2625_v5, %v2595_v30  ;;  %v3812_v57 = vadd.f32 %v2634_v7, %v2603_v11  ;;  %v3819_v45 = vmul.f32 %v3762_v15, %v2502_v21 }
 0x373   :  { %v3705_v0 = vpop.f32.mrf.mxu0 }
 0x374   :  { %v3707_v35 = vpop.f32.mrf.mxu1 }
 0x375   :  { %v3716_v50 = vpop.f32.mrf.mxu0  ;;  %v2113_v10 = vadd.f32 %v3707_v35, %v3705_v0 }
 0x376   :  { %v3718_v18 = vpop.f32.mrf.mxu1 }
 0x377   :  { %v3726_v55 = vpop.f32.mrf.mxu0  ;;  %v2115_v0 = vadd.f32 %v3718_v18, %v3716_v50  ;;  %v3803_v18 = vrot.slane %v2545_v43, %v3005_v13  ;;  %v3822_v13 = vadd.f32 %v3691_v56, %v2610_v22 }
 0x378   :  { %v3728_v34 = vpop.f32.mrf.mxu1 }
 0x379   :  { %v3732_v42 = vpop.f32.mrf.mxu0  ;;  %v2117_v4 = vadd.f32 %v3728_v34, %v3726_v55  ;;  %v2510_v34 = vadd.f32 %v2478_v20, %v2414_v48 }
 0x37a   :  { %v3734_v47 = vpop.f32.mrf.mxu1 }
 0x37b   :  { %v3736_v17 = vpop.f32.mrf.mxu0  ;;  %v2119_v19 = vadd.f32 %v3734_v47, %v3732_v42  ;;  %v3834_v56 = vmul.f32 %v3762_v15, %v2510_v34 }
 0x37c   :  { %v3740_v53 = vpop.f32.mrf.mxu1 }
 0x37d   :  { %v3744_v38 = vpop.f32.mrf.mxu0  ;;  %v2123_v47 = vadd.f32 %v3740_v53, %v3736_v17 }
 0x37e   :  { %v3748_v9 = vpop.f32.mrf.mxu1 }
 0x37f   :  { %v3754_v14 = vpop.f32.mrf.mxu0  ;;  %v2125_v43 = vadd.f32 %v3748_v9, %v3744_v38 }
 0x380   :  { %v3759_v33 = vpop.f32.mrf.mxu1 }
 0x381   :  { %v3777_v39 = vpop.f32.mrf.mxu0  ;;  %v2127_v17 = vadd.f32 %v3759_v33, %v3754_v14 }
 0x382   :  { %v2128_v24 = vpop.f32.mrf.mxu1 }
 0x3b4   :  { %v2165_v1 = vpop.f32.mrf.mxu0 }
 0x3b5   :  { %v2166_v35 = vadd.f32 %v2165_v1, %v2113_v10  ;;  %v2218_v49 = vpop.f32.mrf.mxu1  ;;  %v3825_v10 = vmul.f32 %v3757_v36, %v2509_v31  ;;  %v2129_v36 = vadd.f32 %v2128_v24, %v3777_v39 }
 0x3b6   :  { %v2167_v32 = vpop.f32.mrf.mxu0 }
 0x3b7   :  { %v2219_v16 = vadd.f32 %v2218_v49, %v2166_v35  ;;  %v2168_v28 = vadd.f32 %v2167_v32, %v2115_v0  ;;  %v2220_v50 = vpop.f32.mrf.mxu1 }
 0x3b8   :  { %v2169_v51 = vpop.f32.mrf.mxu0 }
 0x3b9   :  { %v2285_v59 = vmul.f32 %v3767_v37, %v2219_v16  ;;  %v2221_v46 = vadd.f32 %v2220_v50, %v2168_v28  ;;  %v2170_v54 = vadd.f32 %v2169_v51, %v2117_v4  ;;  %v2222_v55 = vpop.f32.mrf.mxu1 }
 0x3ba   :  { %v2171_v63 = vpop.f32.mrf.mxu0 }
 0x3bb   :  { %v2359_v60 = vadd.f32 %v3771_v2, %v2285_v59  ;;  %v2286_v44 = vmul.f32 %v3775_v41, %v2221_v46  ;;  %v2223_v8 = vadd.f32 %v2222_v55, %v2170_v54  ;;  %v2172_v62 = vadd.f32 %v2171_v63, %v2119_v19  ;;  %v2224_v42 = vpop.f32.mrf.mxu1 }
 0x3bc   :  { %v2175_v40 = vpop.f32.mrf.mxu0 }
 0x3bd   :  { %v2423_v29 = vmin.f32 %v2359_v60, 0.0  ;;  %v2360_v52 = vadd.f32 %v3785_v58, %v2286_v44  ;;  %v2293_v12 = vmul.f32 %v3767_v37, %v2223_v8  ;;  %v2228_v6 = vpop.f32.mrf.mxu1  ;;  %v2225_v53 = vadd.f32 %v2224_v42, %v2172_v62 }
 0x3be   :  { %v2176_v27 = vadd.f32 %v2175_v40, %v2123_v47  ;;  %v2177_v1 = vpop.f32.mrf.mxu0  ;;  %v2391_v49 = vmax.f32 %v2359_v60, 0.0 }
 0x3bf   :  { %v2424_v0 = vmin.f32 %v2360_v52, 0.0  ;;  %v2367_v38 = vadd.f32 %v3771_v2, %v2293_v12  ;;  %v2178_v9 = vadd.f32 %v2177_v1, %v2125_v43  ;;  %v2230_v35 = vpop.f32.mrf.mxu1  ;;  %v2294_v30 = vmul.f32 %v3775_v41, %v2225_v53 }
 0x3c0   :  { %v2229_v11 = vadd.f32 %v2228_v6, %v2176_v27  ;;  %v2179_v61 = vpop.f32.mrf.mxu0  ;;  %v2455_v14 = vmul.f32 %v2423_v29, %v3042_v26  ;;  %v2392_v15 = vmax.f32 %v2360_v52, 0.0 }
 0x3c1   :  { %v2431_v33 = vmin.f32 %v2367_v38, 0.0  ;;  %v2231_v20 = vadd.f32 %v2230_v35, %v2178_v9  ;;  %v2180_v32 = vadd.f32 %v2179_v61, %v2127_v17  ;;  %v2232_v5 = vpop.f32.mrf.mxu1  ;;  %v2368_v7 = vadd.f32 %v3785_v58, %v2294_v30 }
 0x3c2   :  { %v2301_v39 = vmul.f32 %v3767_v37, %v2229_v11  ;;  %v2181_v24 = vpop.f32.mrf.mxu0  ;;  %v2456_v4 = vmul.f32 %v2424_v0, %v3042_v26  ;;  %v2487_v16 = vadd.f32 %v2455_v14, %v2391_v49  ;;  %v2399_v28 = vmax.f32 %v2367_v38, 0.0 }
 0x3c3   :  { %v2302_v50 = vmul.f32 %v3775_v41, %v2231_v20  ;;  %v2233_v31 = vadd.f32 %v2232_v5, %v2180_v32  ;;  %v2182_v48 = vadd.f32 %v2181_v24, %v2129_v36  ;;  %v2463_v51 = vmul.f32 %v2431_v33, %v3042_v26  ;;  %v2234_v19 = vpop.f32.mrf.mxu1 }
 0x3c4   :  { %v2432_v21 = vmin.f32 %v2368_v7, 0.0  ;;  %v2375_v22 = vadd.f32 %v3771_v2, %v2301_v39  ;;  %v2488_v59 = vadd.f32 %v2456_v4, %v2392_v15  ;;  %v2596_v34 = vmul.f32 %v3803_v18, %v2487_v16 }
 0x3c5   :  { %v2376_v46 = vadd.f32 %v3785_v58, %v2302_v50  ;;  %v2309_v54 = vmul.f32 %v3767_v37, %v2233_v31  ;;  %v2235_v55 = vadd.f32 %v2234_v19, %v2182_v48  ;;  %v2400_v63 = vmax.f32 %v2368_v7, 0.0 }
 0x3c6   :  { %v2439_v60 = vmin.f32 %v2375_v22, 0.0  ;;  %v2597_v44 = vmul.f32 %v3810_v25, %v2488_v59  ;;  %v2464_v8 = vmul.f32 %v2432_v21, %v3042_v26  ;;  %v2627_v40 = vadd.f32 %v2626_v3, %v2596_v34 }
 0x3c7   :  { %v2440_v62 = vmin.f32 %v2376_v46, 0.0  ;;  %v2383_v42 = vadd.f32 %v3771_v2, %v2309_v54  ;;  %v2310_v47 = vmul.f32 %v3775_v41, %v2235_v55  ;;  %v2407_v43 = vmax.f32 %v2375_v22, 0.0 }
 0x3c8   :  { %v2495_v29 = vadd.f32 %v2463_v51, %v2399_v28  ;;  %v2496_v52 = vadd.f32 %v2464_v8, %v2400_v63  ;;  %v2471_v37 = vmul.f32 %v2439_v60, %v3042_v26  ;;  %v2628_v17 = vadd.f32 %v2627_v40, %v2597_v44 }
 0x3c9   :  { %v2447_v12 = vmin.f32 %v2383_v42, 0.0  ;;  %v2384_v6 = vadd.f32 %v3785_v58, %v2310_v47  ;;  %v2408_v53 = vmax.f32 %v2376_v46, 0.0  ;;  %v2472_v36 = vmul.f32 %v2440_v62, %v3042_v26 }
 0x3ca   :  { %v2604_v27 = vmul.f32 %v3803_v18, %v2495_v29  ;;  %v2605_v1 = vmul.f32 %v3810_v25, %v2496_v52  ;;  %v2503_v2 = vadd.f32 %v2471_v37, %v2407_v43  ;;  %v2415_v0 = vmax.f32 %v2383_v42, 0.0  ;;  %2629 = vadd.xlane.f32.xlu0 %v2628_v17 }
 0x3cb   :  { %v2479_v41 = vmul.f32 %v2447_v12, %v3042_v26  ;;  %v2448_v3 = vmin.f32 %v2384_v6, 0.0  ;;  %v2652_v38 = vadd.f32 %v3697_v23, %v3825_v10  ;;  %v2504_v58 = vadd.f32 %v2472_v36, %v2408_v53 }
 0x3cc   :  { %v2636_v9 = vadd.f32 %v3812_v57, %v2604_v27  ;;  %v2612_v35 = vmul.f32 %v3803_v18, %v2503_v2  ;;  %v2644_v49 = vadd.f32 %v3822_v13, %v3819_v45  ;;  %v2416_v30 = vmax.f32 %v2384_v6, 0.0 }
 0x3cd   :  { %v2480_v11 = vmul.f32 %v2448_v3, %v3042_v26  ;;  %v2511_v61 = vadd.f32 %v2479_v41, %v2415_v0  ;;  %v2613_v33 = vmul.f32 %v3810_v25, %v2504_v58  ;;  %v2653_v23 = vadd.f32 %v2652_v38, %v3834_v56 }
 0x3ce   :  { %v2637_v14 = vadd.f32 %v2636_v9, %v2605_v1  ;;  %v2645_v20 = vadd.f32 %v2644_v49, %v2612_v35  ;;  %v2659_v13 = vstv %s3884_s1  ;;  %s2908_s1 = smov [#allocation15]  }
 0x3cf   :  { %v2512_v32 = vadd.f32 %v2480_v11, %v2416_v30  ;;  %v2620_v5 = vmul.f32 %v3803_v18, %v2511_v61  ;;  %s2689_s24 = sshll.u32 %s2908_s1, 4  ;;  %s2690_s24 = int_to_ptr.vmem [resolvable:$true] %s2689_s24 }
 0x3d0   :  { %2638 = vadd.xlane.f32.xlu0 %v2637_v14  ;;  %v2646_v57 = vadd.f32 %v2645_v20, %v2613_v33  ;;  %s2865_s3 = scalar_lea.vmem %s2690_s24, 512  ;;  %p2870_p3 = scmp.lt.s32.totalorder %s2690_s24, %s2690_s24 }
 0x3d1   :  { %v2621_v10 = vmul.f32 %v3810_v25, %v2512_v32  ;;  %v2654_v15 = vadd.f32 %v2653_v23, %v2620_v5  ;;  %p2866_p2 = scmp.ne.s32.totalorder %s2690_s24, %s2865_s3  ;;  %p2871_p4 = scmp.lt.s32.totalorder %s2865_s3, %s2865_s3 }
 0x3d2   :  { %2647 = vadd.xlane.f32.xlu1 %v2646_v57 }
 0x3d3   :  { %v2655_v45 = vadd.f32 %v2654_v15, %v2621_v10  ;;  %p2872_p5 = por %p2871_p4, %p2870_p3 }
 0x3d5   :  { %p2873_p6 = pnand %p2872_p5, %p2866_p2 }
 0x3d6   :  { %2656 = vadd.xlane.f32.xlu1 %v2655_v45 }
 0x453   :  { %v2630_v7 = vpop.xlane.xlu0 %2629 }
 0x454   :  { %v2660_v39 = vadd.f32 %v2659_v13, %v2630_v7 }
 0x456   :  { %v2668_v24 = vmin.f32 %v2660_v39, 0.0  ;;  %v2664_v4 = vmax.f32 %v2660_v39, 0.0 }
 0x458   :  { %v2672_v18 = vmul.f32 %v2668_v24, %v3042_v26 }
 0x459   :  { %v2639_v16 = vpop.xlane.xlu0 %2638 }
 0x45a   :  { %v2661_v56 = vadd.f32 %v2659_v13, %v2639_v16  ;;  %v2676_v28 = vadd.f32 %v2672_v18, %v2664_v4 }
 0x45b   :  { %v2648_v50 = vpop.xlane.xlu1 %2647 }
 0x45c   :  { %v2669_v31 = vmin.f32 %v2661_v56, 0.0  ;;  %v2662_v25 = vadd.f32 %v2659_v13, %v2648_v50  ;;  %2680 = vst [vmem:[#allocation15] sm:$0xff] %v2676_v28  ;;  %v2665_v48 = vmax.f32 %v2661_v56, 0.0 }
 0x45e   :  { %v2673_v51 = vmul.f32 %v2669_v31, %v3042_v26  ;;  %v2670_v21 = vmin.f32 %v2662_v25, 0.0  ;;  %v2666_v59 = vmax.f32 %v2662_v25, 0.0 }
 0x45f   :  { %v2657_v22 = vpop.xlane.xlu1 %2656 }
 0x460   :  { %v2677_v19 = vadd.f32 %v2673_v51, %v2665_v48  ;;  %v2674_v46 = vmul.f32 %v2670_v21, %v3042_v26  ;;  %v2663_v54 = vadd.f32 %v2659_v13, %v2657_v22 }
 0x462   :  { %2681 = vst [vmem:[#allocation15 + $0x8] sm:$0xff] %v2677_v19  ;;  %v2678_v55 = vadd.f32 %v2674_v46, %v2666_v59  ;;  %v2671_v34 = vmin.f32 %v2663_v54, 0.0  ;;  %v2667_v63 = vmax.f32 %v2663_v54, 0.0 }
 0x464   :  { %2682 = vst [vmem:[#allocation15 + $0x10] sm:$0xff] %v2678_v55  ;;  %v2675_v60 = vmul.f32 %v2671_v34, %v3042_v26 }
 0x466   :  { %v2679_v44 = vadd.f32 %v2675_v60, %v2667_v63 }
 0x468   :  { %2683 = vst [vmem:[#allocation15 + $0x18] sm:$0xff] %v2679_v44 }
 0x469   :  { %2876 = shalt.err (!%p2873_p6)
}
 0x46a   :  { %2695 = dma.vmem_to_hbm [thread:$0]  %s2690_s24, 512, %s3892_s9, [#allocation6], %s2902_s25, %s2902_s25, %s2903_s26  }
 0x46b   :  { %2893 = dma.done.wait [#allocation6], 512  }
 0x46c   :  { %2894 = vsyncadd [#allocation6], 4294966784 }
 0x46d   :  { %2699 = vsyncpa [#allocation5], 1 }
 0x46e   :  { %2700 = vsyncpa [#allocation8], 1 }
 0x46f   :  { %2701 = vsyncpa [#allocation11], 1 }
 0x470   :  { %2702 = vsyncpa [#allocation14], 1 }
 0x471   :  { %2703 = vsyncpa [#allocation6], 1 }

</bundles_post_ra>
